<compile_context>
chip_gen: v6e
topology: v6e:2x2x1
jax: 0.10.0
libtpu: 0.0.40
codegen_flags: <defaults>
</compile_context>

<pallas_src>
import functools

import jax
import jax.numpy as jnp
from jax import lax
from jax.experimental import pallas as pl
from jax.experimental.pallas import tpu as pltpu

MXU_DTYPE = jnp.bfloat16          # MXU operand dtype; accumulation / elementwise stay f32


# ------------------------------------------------------------------ fused block kernel

def _bottle_block_kernel(*refs, heads, downsample, sc_conv):
    """One whole BottleBlock for one batch element; everything stays in VMEM."""
    f32 = jnp.float32
    it = iter(refs)
    x_ref = next(it)                                             # (1, N, C)
    if sc_conv:
        sc_ref = next(it)                                        # (1, No, Ksc)
        wsc_ref, ssc_ref, bsc_ref = next(it), next(it), next(it)
    w1_ref, s1_ref, b1_ref = next(it), next(it), next(it)        # (C,A) bf16, (1,A), (1,A)
    wq_ref, wk_ref, wv_ref = next(it), next(it), next(it)        # (heads,A,dh) bf16 each
    emb_ref, hpool_ref = next(it), next(it)                      # (N,dh) f32, (heads,A,dh) f32
    pool_ref = next(it) if downsample else None                  # (No,N) f32
    s2_ref, b2_ref, w2_ref = next(it), next(it), next(it)        # (heads,1,dh)x2, (heads,dh,dim_out) bf16
    s3_ref, b3_ref = next(it), next(it)                          # (1,dim_out) x2
    o_ref = next(it)                                             # (1, No, dim_out)

    x = x_ref[0]                                                 # (N, C) f32

    # ---- Conv1x1 + BN1 + ReLU (main-branch stem) ----
    y = jnp.dot(x.astype(MXU_DTYPE), w1_ref[...], preferred_element_type=f32)
    y = jnp.maximum(y * s1_ref[...] + b1_ref[...], 0.0)          # (N, A) f32
    y_bf = y.astype(MXU_DTYPE)

    # spe = AdaptiveAvgPool2d(1)(y): spatial mean per channel (head-mean comes later
    # via the hoisted hpool constant, which also does the lane broadcast on the MXU).
    col_mean = jnp.mean(y, axis=0, keepdims=True)                # (1, A) f32

    emb = emb_ref[...]                                           # (N, dh) f32
    pool_mat = pool_ref[...] if downsample else None
    kt_dn = (((1,), (1,)), ((), ()))                             # a @ b^T

    acc = None
    for h in range(heads):                                       # static, fully unrolled
        # per-head projections: weights pre-split on a leading head axis -> no lane slicing
        q = jnp.dot(y_bf, wq_ref[h], preferred_element_type=f32)     # scale folded into wq
        k = jnp.dot(y_bf, wk_ref[h], preferred_element_type=f32)
        v = jnp.dot(y_bf, wv_ref[h], preferred_element_type=f32)

        # logits: q@k^T + q@emb^T == q@(k+emb)^T
        sim = lax.dot_general(q.astype(MXU_DTYPE), (k + emb).astype(MXU_DTYPE),
                              kt_dn, preferred_element_type=f32)      # (N, N)
        sim = sim - jnp.max(sim, axis=-1, keepdims=True)
        p = jnp.exp(sim)
        attn = p * pl.reciprocal(jnp.sum(p, axis=-1, keepdims=True), approx=True)

        out = jnp.dot(attn.astype(MXU_DTYPE), v.astype(MXU_DTYPE),
                      preferred_element_type=f32)                     # (N, dh)

        # 2x2 AvgPool fused in (constant 0.25 pooling matrix), f32 for precision.
        if downsample:
            out = jnp.dot(pool_mat, out, preferred_element_type=f32)  # (No, dh)

        # spe per-head scalar, broadcast across dim_head lanes by the MXU itself.
        spe = jnp.dot(col_mean, hpool_ref[h], preferred_element_type=f32)   # (1, dh)

        # (out + attn2@v)/2 == 0.5*(1+spe)*out, then BN2 + ReLU, then conv2 slice.
        z = jnp.maximum(out * ((0.5 + 0.5 * spe) * s2_ref[h]) + b2_ref[h], 0.0)
        contrib = jnp.dot(z.astype(MXU_DTYPE), w2_ref[h], preferred_element_type=f32)
        acc = contrib if acc is None else acc + contrib              # (No, dim_out)

    net = acc * s3_ref[...] + b3_ref[...]                             # BN3

    # ---- shortcut branch ----
    if sc_conv:
        sc = jnp.dot(sc_ref[0].astype(MXU_DTYPE), wsc_ref[...],
                     preferred_element_type=f32)
        sc = jnp.maximum(sc * ssc_ref[...] + bsc_ref[...], 0.0)
    else:
        sc = x                                                        # identity (C == dim_out, No == N)

    o_ref[0] = jnp.maximum(net + sc, 0.0).astype(o_ref.dtype)


def _const_spec(shape):
    n = len(shape)
    return pl.BlockSpec(shape, lambda b, _n=n: (0,) * _n)


# ----------------------------------------------------------------------- JAX glue ops

def im2col_3x3_s2_p1(x):
    """x: (B, H, W, C) -> (B, H//2, W//2, 9*C) patches for a 3x3 / stride 2 / pad 1 conv."""
    B, H, W, C = x.shape
    Ho, Wo = H // 2, W // 2
    xp = jnp.pad(x, ((0, 0), (1, 1), (1, 1), (0, 0)))
    patches = []
    for dh in range(3):
        for dw in range(3):
            patches.append(xp[:, dh:dh + 2 * Ho:2, dw:dw + 2 * Wo:2, :])
    p = jnp.stack(patches, axis=-2)                 # (B, Ho, Wo, 9, C)
    return p.reshape(B, Ho, Wo, 9 * C)


# ------------------------------------------------------------------------ block forward

def bottle_block_forward(x, blk):
    """x: (B, H, W, C) NHWC -> (B, H', W', dim_out), one fused Pallas kernel."""
    B, H, W, C = x.shape
    cfg = blk['cfg']
    heads = cfg['heads']
    downsample = cfg['downsample']
    sc_conv = cfg['sc_conv']
    dim_out = cfg['dim_out']
    N = H * W
    Ho, Wo = (H // 2, W // 2) if downsample else (H, W)
    No = Ho * Wo
    if not sc_conv:
        assert C == dim_out and not downsample

    args = [x.reshape(B, N, C)]
    in_specs = [pl.BlockSpec((1, N, C), lambda b: (b, 0, 0))]

    if sc_conv:
        if downsample:
            cols = im2col_3x3_s2_p1(x).reshape(B, No, 9 * C)
        else:
            cols = x.reshape(B, N, C)
        Ksc = cols.shape[-1]
        args += [cols, blk['wsc'], blk['ssc'], blk['bsc']]
        in_specs += [pl.BlockSpec((1, No, Ksc), lambda b: (b, 0, 0)),
                     _const_spec(blk['wsc'].shape),
                     _const_spec(blk['ssc'].shape),
                     _const_spec(blk['bsc'].shape)]

    for name in ('w1', 's1', 'b1', 'wq', 'wk', 'wv', 'emb', 'hpool'):
        args.append(blk[name])
        in_specs.append(_const_spec(blk[name].shape))
    if downsample:
        args.append(blk['pool'])
        in_specs.append(_const_spec(blk['pool'].shape))
    for name in ('s2', 'b2', 'w2', 's3', 'b3'):
        args.append(blk[name])
        in_specs.append(_const_spec(blk[name].shape))

    out = pl.pallas_call(
        functools.partial(_bottle_block_kernel, heads=heads,
                          downsample=downsample, sc_conv=sc_conv),
        out_shape=jax.ShapeDtypeStruct((B, No, dim_out), jnp.float32),
        grid=(B,),
        in_specs=in_specs,
        out_specs=pl.BlockSpec((1, No, dim_out), lambda b: (b, 0, 0)),
        compiler_params=pltpu.CompilerParams(dimension_semantics=("parallel",)),
    )(*args)
    return out.reshape(B, Ho, Wo, dim_out)


# ------------------------------------------------------------------------ parameter init

def _bn_affine(key, c, zero_gamma=False):
    """Eval-mode BatchNorm folded to (scale, bias) with synthetic deterministic stats."""
    kg, kb, km, kv = jax.random.split(key, 4)
    gamma = jnp.zeros((c,)) if zero_gamma else 1.0 + 0.1 * jax.random.normal(kg, (c,))
    beta = 0.1 * jax.random.normal(kb, (c,))
    rm = 0.1 * jax.random.normal(km, (c,))
    rv = jax.random.uniform(kv, (c,), minval=0.5, maxval=1.5)
    scale = gamma / jnp.sqrt(rv + 1e-5)
    bias = beta - rm * scale
    return scale.astype(jnp.float32), bias.astype(jnp.float32)


def init_bottle_block(key, *, dim, fmap_size, dim_out, proj_factor, heads, dim_head,
                      downsample, zero_init_bn3=False):
    """Kernel-ready parameters: bf16 MXU weights, per-head stacking, hoisted constants."""
    A = dim_out // proj_factor                       # attention_dim
    inner = heads * dim_head
    assert inner == A, "heads*dim_head must equal dim_out//proj_factor"
    f32, bf = jnp.float32, MXU_DTYPE
    ks = jax.random.split(key, 10)
    blk = {'cfg': dict(heads=heads, dim_head=dim_head, downsample=downsample,
                       dim_out=dim_out, attn_dim=A,
                       sc_conv=(dim != dim_out or downsample))}

    if blk['cfg']['sc_conv']:
        if downsample:
            w = jax.random.normal(ks[0], (3, 3, dim, dim_out)) * (9 * dim) ** -0.5
            blk['wsc'] = w.reshape(9 * dim, dim_out).astype(bf)
        else:
            blk['wsc'] = (jax.random.normal(ks[0], (dim, dim_out)) * dim ** -0.5).astype(bf)
        ssc, bsc = _bn_affine(ks[1], dim_out)
        blk['ssc'], blk['bsc'] = ssc.reshape(1, dim_out), bsc.reshape(1, dim_out)

    blk['w1'] = (jax.random.normal(ks[2], (dim, A)) * dim ** -0.5).astype(bf)
    s1, b1 = _bn_affine(ks[3], A)
    blk['s1'], blk['b1'] = s1.reshape(1, A), b1.reshape(1, A)

    # qkv conv weights, pre-split per head (column layout: q|k|v, channel = h*dh + d).
    qkv_w = jax.random.normal(ks[4], (A, 3 * inner)) * A ** -0.5
    scale = dim_head ** -0.5

    def per_head(cols):                               # (A, inner) -> (heads, A, dh)
        return cols.reshape(A, heads, dim_head).transpose(1, 0, 2)

    blk['wq'] = (per_head(qkv_w[:, :inner]) * scale).astype(bf)      # q-scale folded in
    blk['wk'] = per_head(qkv_w[:, inner:2 * inner]).astype(bf)
    blk['wv'] = per_head(qkv_w[:, 2 * inner:]).astype(bf)

    # AbsPosEmb (height + width), flattened h-major like the fmap rows.
    pos_h = jax.random.normal(ks[5], (fmap_size, dim_head)) * scale
    pos_w = jax.random.normal(ks[6], (fmap_size, dim_head)) * scale
    blk['emb'] = (pos_h[:, None, :] + pos_w[None, :, :]
                  ).reshape(fmap_size * fmap_size, dim_head).astype(f32)

    # spe head-pooling constant (hoisted out of the kernel); broadcast over dim_head lanes.
    ch = jnp.arange(A)
    hp = (ch[None, :] // dim_head == jnp.arange(heads)[:, None]).astype(f32) / dim_head
    blk['hpool'] = jnp.tile(hp[:, :, None], (1, 1, dim_head)).astype(f32)  # (heads, A, dh)

    s2, b2 = _bn_affine(ks[7], A)
    blk['s2'] = s2.reshape(heads, 1, dim_head)
    blk['b2'] = b2.reshape(heads, 1, dim_head)

    # conv2 (PyTorch default init).  The module zero-inits BN3's gamma (net[-1].weight);
    # controlled by zero_init_bn3 (default False so the full path is exercised).
    w2 = jax.random.normal(ks[8], (A, dim_out)) * A ** -0.5
    blk['w2'] = w2.reshape(heads, dim_head, dim_out).astype(bf)
    s3, b3 = _bn_affine(ks[9], dim_out, zero_gamma=zero_init_bn3)
    blk['s3'], blk['b3'] = s3.reshape(1, dim_out), b3.reshape(1, dim_out)

    if downsample:
        # 2x2 / stride-2 average-pool as a constant (No, N) 0.25 matrix.
        Wf = fmap_size
        Wo = Wf // 2
        r = jnp.arange(Wf * Wf)
        o = (r // Wf // 2) * Wo + (r % Wf) // 2
        blk['pool'] = (jax.nn.one_hot(o, (Wf // 2) * Wo, dtype=f32).T * 0.25)
    return blk


def init_bottle_stack(key, *, dim, fmap_size, dim_out, proj_factor, num_layers, heads,
                      dim_head, downsample, zero_init_bn3=False):
    blocks = []
    keys = jax.random.split(key, num_layers)
    for i in range(num_layers):
        is_first = i == 0
        layer_dim = dim if is_first else dim_out
        layer_downsample = is_first and downsample
        layer_fmap = fmap_size // (2 if downsample and (not is_first) else 1)
        blocks.append(init_bottle_block(
            keys[i], dim=layer_dim, fmap_size=layer_fmap, dim_out=dim_out,
            proj_factor=proj_factor, heads=heads, dim_head=dim_head,
            downsample=layer_downsample, zero_init_bn3=zero_init_bn3))
    return blocks


# -------------------------------------------------------------------------- forward pass

def bottle_stack_forward(x, blocks, *, dim, fmap_size):
    # x: (B, C, H, W, 1) -> squeeze, assert, NCHW -> NHWC
    x = jnp.squeeze(x, axis=4)
    B, C, H, W = x.shape
    assert C == dim, f'channels of feature map {C} must match channels given at init {dim}'
    assert H == fmap_size and W == fmap_size
    x = jnp.transpose(x, (0, 2, 3, 1))            # NHWC
    for blk in blocks:
        x = bottle_block_forward(x, blk)
    x = jnp.transpose(x, (0, 3, 1, 2))            # back to NCHW
    return x[..., None]                           # unsqueeze(dim=4)


# --------------------------------------------------------------------------------- main

if __name__ == "__main__":
    B = 2
    DIM = 4           # input channels
    FMAP = 8          # fmap_size
    DIM_OUT = 64
    PROJ_FACTOR = 4   # attention_dim = 16
    NUM_LAYERS = 3
    HEADS = 2
    DIM_HEAD = 8      # heads * dim_head == attention_dim (required by the module's shapes)
    DOWNSAMPLE = True

    key = jax.random.PRNGKey(0)
    kx, kp = jax.random.split(key)
    x = jax.random.normal(kx, (B, DIM, FMAP, FMAP, 1), dtype=jnp.float32)

    blocks = init_bottle_stack(
        kp, dim=DIM, fmap_size=FMAP, dim_out=DIM_OUT, proj_factor=PROJ_FACTOR,
        num_layers=NUM_LAYERS, heads=HEADS, dim_head=DIM_HEAD, downsample=DOWNSAMPLE)

    fwd = jax.jit(lambda t: bottle_stack_forward(t, blocks, dim=DIM, fmap_size=FMAP))
    y = fwd(x)
    y = jax.block_until_ready(y)

    expected = (B, DIM_OUT, FMAP // 2, FMAP // 2, 1)
    assert y.shape == expected, (y.shape, expected)
    assert bool(jnp.all(jnp.isfinite(y)))
    print("KERNEL_OK")
</pallas_src>

<mosaic_0001>
module attributes {stable_mosaic.version = 11 : i64} {
  func.func @_bottle_block_kernel(%arg0: i32, %arg1: memref<1x64x4xf32, #tpu.memory_space<vmem>>, %arg2: memref<1x16x36xf32, #tpu.memory_space<vmem>>, %arg3: memref<36x64xbf16, #tpu.memory_space<vmem>>, %arg4: memref<1x64xf32, #tpu.memory_space<vmem>>, %arg5: memref<1x64xf32, #tpu.memory_space<vmem>>, %arg6: memref<4x16xbf16, #tpu.memory_space<vmem>>, %arg7: memref<1x16xf32, #tpu.memory_space<vmem>>, %arg8: memref<1x16xf32, #tpu.memory_space<vmem>>, %arg9: memref<2x16x8xbf16, #tpu.memory_space<vmem>>, %arg10: memref<2x16x8xbf16, #tpu.memory_space<vmem>>, %arg11: memref<2x16x8xbf16, #tpu.memory_space<vmem>>, %arg12: memref<64x8xf32, #tpu.memory_space<vmem>>, %arg13: memref<2x16x8xf32, #tpu.memory_space<vmem>>, %arg14: memref<16x64xf32, #tpu.memory_space<vmem>>, %arg15: memref<2x1x8xf32, #tpu.memory_space<vmem>>, %arg16: memref<2x1x8xf32, #tpu.memory_space<vmem>>, %arg17: memref<2x8x64xbf16, #tpu.memory_space<vmem>>, %arg18: memref<1x64xf32, #tpu.memory_space<vmem>>, %arg19: memref<1x64xf32, #tpu.memory_space<vmem>>, %arg20: memref<1x16x64xf32, #tpu.memory_space<vmem>>) attributes {dimension_semantics = [#tpu.dimension_semantics<parallel>], iteration_bounds = array<i64: 2>, scalar_prefetch = 0 : i64, scratch_operands = 0 : i64, tpu.core_type = #tpu.core_type<tc>, window_params = [{transform_indices = @transform_0, window_bounds = array<i64: 1, 64, 4>}, {transform_indices = @transform_1, window_bounds = array<i64: 1, 16, 36>}, {pipeline_mode = #tpu.pipeline_mode<synchronous>, transform_indices = @transform_2, window_bounds = array<i64: 36, 64>}, {pipeline_mode = #tpu.pipeline_mode<synchronous>, transform_indices = @transform_3, window_bounds = array<i64: 1, 64>}, {pipeline_mode = #tpu.pipeline_mode<synchronous>, transform_indices = @transform_4, window_bounds = array<i64: 1, 64>}, {pipeline_mode = #tpu.pipeline_mode<synchronous>, transform_indices = @transform_5, window_bounds = array<i64: 4, 16>}, {pipeline_mode = #tpu.pipeline_mode<synchronous>, transform_indices = @transform_6, window_bounds = array<i64: 1, 16>}, {pipeline_mode = #tpu.pipeline_mode<synchronous>, transform_indices = @transform_7, window_bounds = array<i64: 1, 16>}, {pipeline_mode = #tpu.pipeline_mode<synchronous>, transform_indices = @transform_8, window_bounds = array<i64: 2, 16, 8>}, {pipeline_mode = #tpu.pipeline_mode<synchronous>, transform_indices = @transform_9, window_bounds = array<i64: 2, 16, 8>}, {pipeline_mode = #tpu.pipeline_mode<synchronous>, transform_indices = @transform_10, window_bounds = array<i64: 2, 16, 8>}, {pipeline_mode = #tpu.pipeline_mode<synchronous>, transform_indices = @transform_11, window_bounds = array<i64: 64, 8>}, {pipeline_mode = #tpu.pipeline_mode<synchronous>, transform_indices = @transform_12, window_bounds = array<i64: 2, 16, 8>}, {pipeline_mode = #tpu.pipeline_mode<synchronous>, transform_indices = @transform_13, window_bounds = array<i64: 16, 64>}, {pipeline_mode = #tpu.pipeline_mode<synchronous>, transform_indices = @transform_14, window_bounds = array<i64: 2, 1, 8>}, {pipeline_mode = #tpu.pipeline_mode<synchronous>, transform_indices = @transform_15, window_bounds = array<i64: 2, 1, 8>}, {pipeline_mode = #tpu.pipeline_mode<synchronous>, transform_indices = @transform_16, window_bounds = array<i64: 2, 8, 64>}, {pipeline_mode = #tpu.pipeline_mode<synchronous>, transform_indices = @transform_17, window_bounds = array<i64: 1, 64>}, {pipeline_mode = #tpu.pipeline_mode<synchronous>, transform_indices = @transform_18, window_bounds = array<i64: 1, 64>}, {transform_indices = @transform_19, window_bounds = array<i64: 1, 16, 64>}]} {
    %c0 = arith.constant 0 : index
    %c0_0 = arith.constant 0 : index
    %c0_1 = arith.constant 0 : index
    %0 = vector.load %arg1[%c0, %c0_0, %c0_1] : memref<1x64x4xf32, #tpu.memory_space<vmem>>, vector<1x64x4xf32>
    %1 = vector.shape_cast %0 : vector<1x64x4xf32> to vector<64x4xf32>
    %2 = arith.truncf %1 : vector<64x4xf32> to vector<64x4xbf16>
    %c0_2 = arith.constant 0 : index
    %c0_3 = arith.constant 0 : index
    %3 = vector.load %arg6[%c0_2, %c0_3] : memref<4x16xbf16, #tpu.memory_space<vmem>>, vector<4x16xbf16>
    %cst = arith.constant dense<0.000000e+00> : vector<64x16xf32>
    %4 = tpu.matmul %2, %3, %cst {dimension_numbers = #tpu.dot_dimension_numbers<[1], [0], [0], [1], [0, 0, 1, 1], [], []>} : vector<64x4xbf16>, vector<4x16xbf16>, vector<64x16xf32> -> vector<64x16xf32>
    %c0_4 = arith.constant 0 : index
    %c0_5 = arith.constant 0 : index
    %5 = vector.load %arg7[%c0_4, %c0_5] : memref<1x16xf32, #tpu.memory_space<vmem>>, vector<1x16xf32>
    %6 = vector.broadcast %5 : vector<1x16xf32> to vector<64x16xf32>
    %7 = arith.mulf %4, %6 : vector<64x16xf32>
    %c0_6 = arith.constant 0 : index
    %c0_7 = arith.constant 0 : index
    %8 = vector.load %arg8[%c0_6, %c0_7] : memref<1x16xf32, #tpu.memory_space<vmem>>, vector<1x16xf32>
    %9 = vector.broadcast %8 : vector<1x16xf32> to vector<64x16xf32>
    %10 = arith.addf %7, %9 : vector<64x16xf32>
    %cst_8 = arith.constant 0.000000e+00 : f32
    %11 = vector.broadcast %cst_8 : f32 to vector<64x16xf32>
    %12 = arith.maximumf %10, %11 : vector<64x16xf32>
    %13 = arith.truncf %12 : vector<64x16xf32> to vector<64x16xbf16>
    %cst_9 = arith.constant dense<0.000000e+00> : vector<16xf32>
    %14 = vector.multi_reduction <add>, %12, %cst_9 [0] : vector<64x16xf32> to vector<16xf32>
    %15 = vector.shape_cast %14 : vector<16xf32> to vector<1x16xf32>
    %cst_10 = arith.constant 6.400000e+01 : f32
    %16 = vector.broadcast %cst_10 : f32 to vector<1x16xf32>
    %17 = arith.divf %15, %16 : vector<1x16xf32>
    %c0_11 = arith.constant 0 : index
    %c0_12 = arith.constant 0 : index
    %18 = vector.load %arg12[%c0_11, %c0_12] : memref<64x8xf32, #tpu.memory_space<vmem>>, vector<64x8xf32>
    %c0_13 = arith.constant 0 : index
    %c0_14 = arith.constant 0 : index
    %19 = vector.load %arg14[%c0_13, %c0_14] : memref<16x64xf32, #tpu.memory_space<vmem>>, vector<16x64xf32>
    %c0_15 = arith.constant 0 : index
    %c0_16 = arith.constant 0 : index
    %c0_17 = arith.constant 0 : index
    %20 = vector.load %arg9[%c0_15, %c0_16, %c0_17] : memref<2x16x8xbf16, #tpu.memory_space<vmem>>, vector<1x16x8xbf16>
    %21 = vector.shape_cast %20 : vector<1x16x8xbf16> to vector<16x8xbf16>
    %cst_18 = arith.constant dense<0.000000e+00> : vector<64x8xf32>
    %22 = tpu.matmul %13, %21, %cst_18 {dimension_numbers = #tpu.dot_dimension_numbers<[1], [0], [0], [1], [0, 0, 1, 1], [], []>} : vector<64x16xbf16>, vector<16x8xbf16>, vector<64x8xf32> -> vector<64x8xf32>
    %c0_19 = arith.constant 0 : index
    %c0_20 = arith.constant 0 : index
    %c0_21 = arith.constant 0 : index
    %23 = vector.load %arg10[%c0_19, %c0_20, %c0_21] : memref<2x16x8xbf16, #tpu.memory_space<vmem>>, vector<1x16x8xbf16>
    %24 = vector.shape_cast %23 : vector<1x16x8xbf16> to vector<16x8xbf16>
    %cst_22 = arith.constant dense<0.000000e+00> : vector<64x8xf32>
    %25 = tpu.matmul %13, %24, %cst_22 {dimension_numbers = #tpu.dot_dimension_numbers<[1], [0], [0], [1], [0, 0, 1, 1], [], []>} : vector<64x16xbf16>, vector<16x8xbf16>, vector<64x8xf32> -> vector<64x8xf32>
    %c0_23 = arith.constant 0 : index
    %c0_24 = arith.constant 0 : index
    %c0_25 = arith.constant 0 : index
    %26 = vector.load %arg11[%c0_23, %c0_24, %c0_25] : memref<2x16x8xbf16, #tpu.memory_space<vmem>>, vector<1x16x8xbf16>
    %27 = vector.shape_cast %26 : vector<1x16x8xbf16> to vector<16x8xbf16>
    %cst_26 = arith.constant dense<0.000000e+00> : vector<64x8xf32>
    %28 = tpu.matmul %13, %27, %cst_26 {dimension_numbers = #tpu.dot_dimension_numbers<[1], [0], [0], [1], [0, 0, 1, 1], [], []>} : vector<64x16xbf16>, vector<16x8xbf16>, vector<64x8xf32> -> vector<64x8xf32>
    %29 = arith.truncf %22 : vector<64x8xf32> to vector<64x8xbf16>
    %30 = arith.addf %25, %18 : vector<64x8xf32>
    %31 = arith.truncf %30 : vector<64x8xf32> to vector<64x8xbf16>
    %cst_27 = arith.constant dense<0.000000e+00> : vector<64x64xf32>
    %32 = tpu.matmul %29, %31, %cst_27 {dimension_numbers = #tpu.dot_dimension_numbers<[1], [1], [0], [0], [0, 0, 1, 0], [], []>} : vector<64x8xbf16>, vector<64x8xbf16>, vector<64x64xf32> -> vector<64x64xf32>
    %cst_28 = arith.constant dense<0xFF800000> : vector<64xf32>
    %33 = vector.multi_reduction <maximumf>, %32, %cst_28 [1] : vector<64x64xf32> to vector<64xf32>
    %34 = vector.shape_cast %33 : vector<64xf32> to vector<64x1xf32>
    %35 = vector.broadcast %34 : vector<64x1xf32> to vector<64x64xf32>
    %36 = arith.subf %32, %35 : vector<64x64xf32>
    %37 = math.exp %36 : vector<64x64xf32>
    %cst_29 = arith.constant dense<0.000000e+00> : vector<64xf32>
    %38 = vector.multi_reduction <add>, %37, %cst_29 [1] : vector<64x64xf32> to vector<64xf32>
    %39 = vector.shape_cast %38 : vector<64xf32> to vector<64x1xf32>
    %40 = tpu.reciprocal %39 {approx = true} : vector<64x1xf32> -> vector<64x1xf32>
    %41 = vector.broadcast %40 : vector<64x1xf32> to vector<64x64xf32>
    %42 = arith.mulf %37, %41 : vector<64x64xf32>
    %43 = arith.truncf %42 : vector<64x64xf32> to vector<64x64xbf16>
    %44 = arith.truncf %28 : vector<64x8xf32> to vector<64x8xbf16>
    %cst_30 = arith.constant dense<0.000000e+00> : vector<64x8xf32>
    %45 = tpu.matmul %43, %44, %cst_30 {dimension_numbers = #tpu.dot_dimension_numbers<[1], [0], [0], [1], [0, 0, 1, 1], [], []>} : vector<64x64xbf16>, vector<64x8xbf16>, vector<64x8xf32> -> vector<64x8xf32>
    %cst_31 = arith.constant dense<0.000000e+00> : vector<16x8xf32>
    %46 = tpu.matmul %19, %45, %cst_31 {dimension_numbers = #tpu.dot_dimension_numbers<[1], [0], [0], [1], [0, 0, 1, 1], [], []>} : vector<16x64xf32>, vector<64x8xf32>, vector<16x8xf32> -> vector<16x8xf32>
    %c0_32 = arith.constant 0 : index
    %c0_33 = arith.constant 0 : index
    %c0_34 = arith.constant 0 : index
    %47 = vector.load %arg13[%c0_32, %c0_33, %c0_34] : memref<2x16x8xf32, #tpu.memory_space<vmem>>, vector<1x16x8xf32>
    %48 = vector.shape_cast %47 : vector<1x16x8xf32> to vector<16x8xf32>
    %cst_35 = arith.constant dense<0.000000e+00> : vector<1x8xf32>
    %49 = tpu.matmul %17, %48, %cst_35 {dimension_numbers = #tpu.dot_dimension_numbers<[1], [0], [0], [1], [0, 0, 1, 1], [], []>} : vector<1x16xf32>, vector<16x8xf32>, vector<1x8xf32> -> vector<1x8xf32>
    %cst_36 = arith.constant 5.000000e-01 : f32
    %50 = vector.broadcast %cst_36 : f32 to vector<1x8xf32>
    %51 = arith.mulf %50, %49 : vector<1x8xf32>
    %cst_37 = arith.constant 5.000000e-01 : f32
    %52 = vector.broadcast %cst_37 : f32 to vector<1x8xf32>
    %53 = arith.addf %52, %51 : vector<1x8xf32>
    %c0_38 = arith.constant 0 : index
    %c0_39 = arith.constant 0 : index
    %c0_40 = arith.constant 0 : index
    %54 = vector.load %arg15[%c0_38, %c0_39, %c0_40] : memref<2x1x8xf32, #tpu.memory_space<vmem>>, vector<1x1x8xf32>
    %55 = vector.shape_cast %54 : vector<1x1x8xf32> to vector<1x8xf32>
    %56 = arith.mulf %53, %55 : vector<1x8xf32>
    %57 = vector.broadcast %56 : vector<1x8xf32> to vector<16x8xf32>
    %58 = arith.mulf %46, %57 : vector<16x8xf32>
    %c0_41 = arith.constant 0 : index
    %c0_42 = arith.constant 0 : index
    %c0_43 = arith.constant 0 : index
    %59 = vector.load %arg16[%c0_41, %c0_42, %c0_43] : memref<2x1x8xf32, #tpu.memory_space<vmem>>, vector<1x1x8xf32>
    %60 = vector.shape_cast %59 : vector<1x1x8xf32> to vector<1x8xf32>
    %61 = vector.broadcast %60 : vector<1x8xf32> to vector<16x8xf32>
    %62 = arith.addf %58, %61 : vector<16x8xf32>
    %cst_44 = arith.constant 0.000000e+00 : f32
    %63 = vector.broadcast %cst_44 : f32 to vector<16x8xf32>
    %64 = arith.maximumf %62, %63 : vector<16x8xf32>
    %65 = arith.truncf %64 : vector<16x8xf32> to vector<16x8xbf16>
    %c0_45 = arith.constant 0 : index
    %c0_46 = arith.constant 0 : index
    %c0_47 = arith.constant 0 : index
    %66 = vector.load %arg17[%c0_45, %c0_46, %c0_47] : memref<2x8x64xbf16, #tpu.memory_space<vmem>>, vector<1x8x64xbf16>
    %67 = vector.shape_cast %66 : vector<1x8x64xbf16> to vector<8x64xbf16>
    %cst_48 = arith.constant dense<0.000000e+00> : vector<16x64xf32>
    %68 = tpu.matmul %65, %67, %cst_48 {dimension_numbers = #tpu.dot_dimension_numbers<[1], [0], [0], [1], [0, 0, 1, 1], [], []>} : vector<16x8xbf16>, vector<8x64xbf16>, vector<16x64xf32> -> vector<16x64xf32>
    %c1 = arith.constant 1 : index
    %c0_49 = arith.constant 0 : index
    %c0_50 = arith.constant 0 : index
    %69 = vector.load %arg9[%c1, %c0_49, %c0_50] : memref<2x16x8xbf16, #tpu.memory_space<vmem>>, vector<1x16x8xbf16>
    %70 = vector.shape_cast %69 : vector<1x16x8xbf16> to vector<16x8xbf16>
    %cst_51 = arith.constant dense<0.000000e+00> : vector<64x8xf32>
    %71 = tpu.matmul %13, %70, %cst_51 {dimension_numbers = #tpu.dot_dimension_numbers<[1], [0], [0], [1], [0, 0, 1, 1], [], []>} : vector<64x16xbf16>, vector<16x8xbf16>, vector<64x8xf32> -> vector<64x8xf32>
    %c1_52 = arith.constant 1 : index
    %c0_53 = arith.constant 0 : index
    %c0_54 = arith.constant 0 : index
    %72 = vector.load %arg10[%c1_52, %c0_53, %c0_54] : memref<2x16x8xbf16, #tpu.memory_space<vmem>>, vector<1x16x8xbf16>
    %73 = vector.shape_cast %72 : vector<1x16x8xbf16> to vector<16x8xbf16>
    %cst_55 = arith.constant dense<0.000000e+00> : vector<64x8xf32>
    %74 = tpu.matmul %13, %73, %cst_55 {dimension_numbers = #tpu.dot_dimension_numbers<[1], [0], [0], [1], [0, 0, 1, 1], [], []>} : vector<64x16xbf16>, vector<16x8xbf16>, vector<64x8xf32> -> vector<64x8xf32>
    %c1_56 = arith.constant 1 : index
    %c0_57 = arith.constant 0 : index
    %c0_58 = arith.constant 0 : index
    %75 = vector.load %arg11[%c1_56, %c0_57, %c0_58] : memref<2x16x8xbf16, #tpu.memory_space<vmem>>, vector<1x16x8xbf16>
    %76 = vector.shape_cast %75 : vector<1x16x8xbf16> to vector<16x8xbf16>
    %cst_59 = arith.constant dense<0.000000e+00> : vector<64x8xf32>
    %77 = tpu.matmul %13, %76, %cst_59 {dimension_numbers = #tpu.dot_dimension_numbers<[1], [0], [0], [1], [0, 0, 1, 1], [], []>} : vector<64x16xbf16>, vector<16x8xbf16>, vector<64x8xf32> -> vector<64x8xf32>
    %78 = arith.truncf %71 : vector<64x8xf32> to vector<64x8xbf16>
    %79 = arith.addf %74, %18 : vector<64x8xf32>
    %80 = arith.truncf %79 : vector<64x8xf32> to vector<64x8xbf16>
    %cst_60 = arith.constant dense<0.000000e+00> : vector<64x64xf32>
    %81 = tpu.matmul %78, %80, %cst_60 {dimension_numbers = #tpu.dot_dimension_numbers<[1], [1], [0], [0], [0, 0, 1, 0], [], []>} : vector<64x8xbf16>, vector<64x8xbf16>, vector<64x64xf32> -> vector<64x64xf32>
    %cst_61 = arith.constant dense<0xFF800000> : vector<64xf32>
    %82 = vector.multi_reduction <maximumf>, %81, %cst_61 [1] : vector<64x64xf32> to vector<64xf32>
    %83 = vector.shape_cast %82 : vector<64xf32> to vector<64x1xf32>
    %84 = vector.broadcast %83 : vector<64x1xf32> to vector<64x64xf32>
    %85 = arith.subf %81, %84 : vector<64x64xf32>
    %86 = math.exp %85 : vector<64x64xf32>
    %cst_62 = arith.constant dense<0.000000e+00> : vector<64xf32>
    %87 = vector.multi_reduction <add>, %86, %cst_62 [1] : vector<64x64xf32> to vector<64xf32>
    %88 = vector.shape_cast %87 : vector<64xf32> to vector<64x1xf32>
    %89 = tpu.reciprocal %88 {approx = true} : vector<64x1xf32> -> vector<64x1xf32>
    %90 = vector.broadcast %89 : vector<64x1xf32> to vector<64x64xf32>
    %91 = arith.mulf %86, %90 : vector<64x64xf32>
    %92 = arith.truncf %91 : vector<64x64xf32> to vector<64x64xbf16>
    %93 = arith.truncf %77 : vector<64x8xf32> to vector<64x8xbf16>
    %cst_63 = arith.constant dense<0.000000e+00> : vector<64x8xf32>
    %94 = tpu.matmul %92, %93, %cst_63 {dimension_numbers = #tpu.dot_dimension_numbers<[1], [0], [0], [1], [0, 0, 1, 1], [], []>} : vector<64x64xbf16>, vector<64x8xbf16>, vector<64x8xf32> -> vector<64x8xf32>
    %cst_64 = arith.constant dense<0.000000e+00> : vector<16x8xf32>
    %95 = tpu.matmul %19, %94, %cst_64 {dimension_numbers = #tpu.dot_dimension_numbers<[1], [0], [0], [1], [0, 0, 1, 1], [], []>} : vector<16x64xf32>, vector<64x8xf32>, vector<16x8xf32> -> vector<16x8xf32>
    %c1_65 = arith.constant 1 : index
    %c0_66 = arith.constant 0 : index
    %c0_67 = arith.constant 0 : index
    %96 = vector.load %arg13[%c1_65, %c0_66, %c0_67] : memref<2x16x8xf32, #tpu.memory_space<vmem>>, vector<1x16x8xf32>
    %97 = vector.shape_cast %96 : vector<1x16x8xf32> to vector<16x8xf32>
    %cst_68 = arith.constant dense<0.000000e+00> : vector<1x8xf32>
    %98 = tpu.matmul %17, %97, %cst_68 {dimension_numbers = #tpu.dot_dimension_numbers<[1], [0], [0], [1], [0, 0, 1, 1], [], []>} : vector<1x16xf32>, vector<16x8xf32>, vector<1x8xf32> -> vector<1x8xf32>
    %cst_69 = arith.constant 5.000000e-01 : f32
    %99 = vector.broadcast %cst_69 : f32 to vector<1x8xf32>
    %100 = arith.mulf %99, %98 : vector<1x8xf32>
    %cst_70 = arith.constant 5.000000e-01 : f32
    %101 = vector.broadcast %cst_70 : f32 to vector<1x8xf32>
    %102 = arith.addf %101, %100 : vector<1x8xf32>
    %c1_71 = arith.constant 1 : index
    %c0_72 = arith.constant 0 : index
    %c0_73 = arith.constant 0 : index
    %103 = vector.load %arg15[%c1_71, %c0_72, %c0_73] : memref<2x1x8xf32, #tpu.memory_space<vmem>>, vector<1x1x8xf32>
    %104 = vector.shape_cast %103 : vector<1x1x8xf32> to vector<1x8xf32>
    %105 = arith.mulf %102, %104 : vector<1x8xf32>
    %106 = vector.broadcast %105 : vector<1x8xf32> to vector<16x8xf32>
    %107 = arith.mulf %95, %106 : vector<16x8xf32>
    %c1_74 = arith.constant 1 : index
    %c0_75 = arith.constant 0 : index
    %c0_76 = arith.constant 0 : index
    %108 = vector.load %arg16[%c1_74, %c0_75, %c0_76] : memref<2x1x8xf32, #tpu.memory_space<vmem>>, vector<1x1x8xf32>
    %109 = vector.shape_cast %108 : vector<1x1x8xf32> to vector<1x8xf32>
    %110 = vector.broadcast %109 : vector<1x8xf32> to vector<16x8xf32>
    %111 = arith.addf %107, %110 : vector<16x8xf32>
    %cst_77 = arith.constant 0.000000e+00 : f32
    %112 = vector.broadcast %cst_77 : f32 to vector<16x8xf32>
    %113 = arith.maximumf %111, %112 : vector<16x8xf32>
    %114 = arith.truncf %113 : vector<16x8xf32> to vector<16x8xbf16>
    %c1_78 = arith.constant 1 : index
    %c0_79 = arith.constant 0 : index
    %c0_80 = arith.constant 0 : index
    %115 = vector.load %arg17[%c1_78, %c0_79, %c0_80] : memref<2x8x64xbf16, #tpu.memory_space<vmem>>, vector<1x8x64xbf16>
    %116 = vector.shape_cast %115 : vector<1x8x64xbf16> to vector<8x64xbf16>
    %cst_81 = arith.constant dense<0.000000e+00> : vector<16x64xf32>
    %117 = tpu.matmul %114, %116, %cst_81 {dimension_numbers = #tpu.dot_dimension_numbers<[1], [0], [0], [1], [0, 0, 1, 1], [], []>} : vector<16x8xbf16>, vector<8x64xbf16>, vector<16x64xf32> -> vector<16x64xf32>
    %118 = arith.addf %68, %117 : vector<16x64xf32>
    %c0_82 = arith.constant 0 : index
    %c0_83 = arith.constant 0 : index
    %119 = vector.load %arg18[%c0_82, %c0_83] : memref<1x64xf32, #tpu.memory_space<vmem>>, vector<1x64xf32>
    %120 = vector.broadcast %119 : vector<1x64xf32> to vector<16x64xf32>
    %121 = arith.mulf %118, %120 : vector<16x64xf32>
    %c0_84 = arith.constant 0 : index
    %c0_85 = arith.constant 0 : index
    %122 = vector.load %arg19[%c0_84, %c0_85] : memref<1x64xf32, #tpu.memory_space<vmem>>, vector<1x64xf32>
    %123 = vector.broadcast %122 : vector<1x64xf32> to vector<16x64xf32>
    %124 = arith.addf %121, %123 : vector<16x64xf32>
    %c0_86 = arith.constant 0 : index
    %c0_87 = arith.constant 0 : index
    %c0_88 = arith.constant 0 : index
    %125 = vector.load %arg2[%c0_86, %c0_87, %c0_88] : memref<1x16x36xf32, #tpu.memory_space<vmem>>, vector<1x16x36xf32>
    %126 = vector.shape_cast %125 : vector<1x16x36xf32> to vector<16x36xf32>
    %127 = arith.truncf %126 : vector<16x36xf32> to vector<16x36xbf16>
    %c0_89 = arith.constant 0 : index
    %c0_90 = arith.constant 0 : index
    %128 = vector.load %arg3[%c0_89, %c0_90] : memref<36x64xbf16, #tpu.memory_space<vmem>>, vector<36x64xbf16>
    %cst_91 = arith.constant dense<0.000000e+00> : vector<16x64xf32>
    %129 = tpu.matmul %127, %128, %cst_91 {dimension_numbers = #tpu.dot_dimension_numbers<[1], [0], [0], [1], [0, 0, 1, 1], [], []>} : vector<16x36xbf16>, vector<36x64xbf16>, vector<16x64xf32> -> vector<16x64xf32>
    %c0_92 = arith.constant 0 : index
    %c0_93 = arith.constant 0 : index
    %130 = vector.load %arg4[%c0_92, %c0_93] : memref<1x64xf32, #tpu.memory_space<vmem>>, vector<1x64xf32>
    %131 = vector.broadcast %130 : vector<1x64xf32> to vector<16x64xf32>
    %132 = arith.mulf %129, %131 : vector<16x64xf32>
    %c0_94 = arith.constant 0 : index
    %c0_95 = arith.constant 0 : index
    %133 = vector.load %arg5[%c0_94, %c0_95] : memref<1x64xf32, #tpu.memory_space<vmem>>, vector<1x64xf32>
    %134 = vector.broadcast %133 : vector<1x64xf32> to vector<16x64xf32>
    %135 = arith.addf %132, %134 : vector<16x64xf32>
    %cst_96 = arith.constant 0.000000e+00 : f32
    %136 = vector.broadcast %cst_96 : f32 to vector<16x64xf32>
    %137 = arith.maximumf %135, %136 : vector<16x64xf32>
    %138 = arith.addf %124, %137 : vector<16x64xf32>
    %cst_97 = arith.constant 0.000000e+00 : f32
    %139 = vector.broadcast %cst_97 : f32 to vector<16x64xf32>
    %140 = arith.maximumf %138, %139 : vector<16x64xf32>
    %c0_98 = arith.constant 0 : index
    %c0_99 = arith.constant 0 : index
    %c0_100 = arith.constant 0 : index
    %141 = vector.load %arg20[%c0_98, %c0_99, %c0_100] : memref<1x16x64xf32, #tpu.memory_space<vmem>>, vector<1x16x64xf32>
    %142 = vector.shape_cast %141 : vector<1x16x64xf32> to vector<16x64xf32>
    %143 = vector.shape_cast %140 : vector<16x64xf32> to vector<1x16x64xf32>
    tpu.vector_store %arg20[%c0_98, %c0_99, %c0_100], %143 {strides = array<i32>} : memref<1x16x64xf32, #tpu.memory_space<vmem>>, vector<1x16x64xf32>,
    return
  }
  func.func @transform_0(%arg0: i32) -> (i32, i32, i32) {
    %c0_i32 = arith.constant 0 : i32
    %c0_i32_0 = arith.constant 0 : i32
    %c0_i32_1 = arith.constant 0 : i32
    return %arg0, %c0_i32, %c0_i32_0 : i32, i32, i32
  }
  func.func @transform_1(%arg0: i32) -> (i32, i32, i32) {
    %c0_i32 = arith.constant 0 : i32
    %c0_i32_0 = arith.constant 0 : i32
    %c0_i32_1 = arith.constant 0 : i32
    return %arg0, %c0_i32, %c0_i32_0 : i32, i32, i32
  }
  func.func @transform_2(%arg0: i32) -> (i32, i32) {
    %c0_i32 = arith.constant 0 : i32
    %c0_i32_0 = arith.constant 0 : i32
    %c0_i32_1 = arith.constant 0 : i32
    return %c0_i32, %c0_i32_0 : i32, i32
  }
  func.func @transform_3(%arg0: i32) -> (i32, i32) {
    %c0_i32 = arith.constant 0 : i32
    %c0_i32_0 = arith.constant 0 : i32
    %c0_i32_1 = arith.constant 0 : i32
    return %c0_i32, %c0_i32_0 : i32, i32
  }
  func.func @transform_4(%arg0: i32) -> (i32, i32) {
    %c0_i32 = arith.constant 0 : i32
    %c0_i32_0 = arith.constant 0 : i32
    %c0_i32_1 = arith.constant 0 : i32
    return %c0_i32, %c0_i32_0 : i32, i32
  }
  func.func @transform_5(%arg0: i32) -> (i32, i32) {
    %c0_i32 = arith.constant 0 : i32
    %c0_i32_0 = arith.constant 0 : i32
    %c0_i32_1 = arith.constant 0 : i32
    return %c0_i32, %c0_i32_0 : i32, i32
  }
  func.func @transform_6(%arg0: i32) -> (i32, i32) {
    %c0_i32 = arith.constant 0 : i32
    %c0_i32_0 = arith.constant 0 : i32
    %c0_i32_1 = arith.constant 0 : i32
    return %c0_i32, %c0_i32_0 : i32, i32
  }
  func.func @transform_7(%arg0: i32) -> (i32, i32) {
    %c0_i32 = arith.constant 0 : i32
    %c0_i32_0 = arith.constant 0 : i32
    %c0_i32_1 = arith.constant 0 : i32
    return %c0_i32, %c0_i32_0 : i32, i32
  }
  func.func @transform_8(%arg0: i32) -> (i32, i32, i32) {
    %c0_i32 = arith.constant 0 : i32
    %c0_i32_0 = arith.constant 0 : i32
    %c0_i32_1 = arith.constant 0 : i32
    %c0_i32_2 = arith.constant 0 : i32
    return %c0_i32, %c0_i32_0, %c0_i32_1 : i32, i32, i32
  }
  func.func @transform_9(%arg0: i32) -> (i32, i32, i32) {
    %c0_i32 = arith.constant 0 : i32
    %c0_i32_0 = arith.constant 0 : i32
    %c0_i32_1 = arith.constant 0 : i32
    %c0_i32_2 = arith.constant 0 : i32
    return %c0_i32, %c0_i32_0, %c0_i32_1 : i32, i32, i32
  }
  func.func @transform_10(%arg0: i32) -> (i32, i32, i32) {
    %c0_i32 = arith.constant 0 : i32
    %c0_i32_0 = arith.constant 0 : i32
    %c0_i32_1 = arith.constant 0 : i32
    %c0_i32_2 = arith.constant 0 : i32
    return %c0_i32, %c0_i32_0, %c0_i32_1 : i32, i32, i32
  }
  func.func @transform_11(%arg0: i32) -> (i32, i32) {
    %c0_i32 = arith.constant 0 : i32
    %c0_i32_0 = arith.constant 0 : i32
    %c0_i32_1 = arith.constant 0 : i32
    return %c0_i32, %c0_i32_0 : i32, i32
  }
  func.func @transform_12(%arg0: i32) -> (i32, i32, i32) {
    %c0_i32 = arith.constant 0 : i32
    %c0_i32_0 = arith.constant 0 : i32
    %c0_i32_1 = arith.constant 0 : i32
    %c0_i32_2 = arith.constant 0 : i32
    return %c0_i32, %c0_i32_0, %c0_i32_1 : i32, i32, i32
  }
  func.func @transform_13(%arg0: i32) -> (i32, i32) {
    %c0_i32 = arith.constant 0 : i32
    %c0_i32_0 = arith.constant 0 : i32
    %c0_i32_1 = arith.constant 0 : i32
    return %c0_i32, %c0_i32_0 : i32, i32
  }
  func.func @transform_14(%arg0: i32) -> (i32, i32, i32) {
    %c0_i32 = arith.constant 0 : i32
    %c0_i32_0 = arith.constant 0 : i32
    %c0_i32_1 = arith.constant 0 : i32
    %c0_i32_2 = arith.constant 0 : i32
    return %c0_i32, %c0_i32_0, %c0_i32_1 : i32, i32, i32
  }
  func.func @transform_15(%arg0: i32) -> (i32, i32, i32) {
    %c0_i32 = arith.constant 0 : i32
    %c0_i32_0 = arith.constant 0 : i32
    %c0_i32_1 = arith.constant 0 : i32
    %c0_i32_2 = arith.constant 0 : i32
    return %c0_i32, %c0_i32_0, %c0_i32_1 : i32, i32, i32
  }
  func.func @transform_16(%arg0: i32) -> (i32, i32, i32) {
    %c0_i32 = arith.constant 0 : i32
    %c0_i32_0 = arith.constant 0 : i32
    %c0_i32_1 = arith.constant 0 : i32
    %c0_i32_2 = arith.constant 0 : i32
    return %c0_i32, %c0_i32_0, %c0_i32_1 : i32, i32, i32
  }
  func.func @transform_17(%arg0: i32) -> (i32, i32) {
    %c0_i32 = arith.constant 0 : i32
    %c0_i32_0 = arith.constant 0 : i32
    %c0_i32_1 = arith.constant 0 : i32
    return %c0_i32, %c0_i32_0 : i32, i32
  }
  func.func @transform_18(%arg0: i32) -> (i32, i32) {
    %c0_i32 = arith.constant 0 : i32
    %c0_i32_0 = arith.constant 0 : i32
    %c0_i32_1 = arith.constant 0 : i32
    return %c0_i32, %c0_i32_0 : i32, i32
  }
  func.func @transform_19(%arg0: i32) -> (i32, i32, i32) {
    %c0_i32 = arith.constant 0 : i32
    %c0_i32_0 = arith.constant 0 : i32
    %c0_i32_1 = arith.constant 0 : i32
    return %arg0, %c0_i32, %c0_i32_0 : i32, i32, i32
  }
}

module attributes {stable_mosaic.version = 11 : i64} {
  func.func @_bottle_block_kernel(%arg0: i32, %arg1: memref<1x16x64xf32, #tpu.memory_space<vmem>>, %arg2: memref<64x16xbf16, #tpu.memory_space<vmem>>, %arg3: memref<1x16xf32, #tpu.memory_space<vmem>>, %arg4: memref<1x16xf32, #tpu.memory_space<vmem>>, %arg5: memref<2x16x8xbf16, #tpu.memory_space<vmem>>, %arg6: memref<2x16x8xbf16, #tpu.memory_space<vmem>>, %arg7: memref<2x16x8xbf16, #tpu.memory_space<vmem>>, %arg8: memref<16x8xf32, #tpu.memory_space<vmem>>, %arg9: memref<2x16x8xf32, #tpu.memory_space<vmem>>, %arg10: memref<2x1x8xf32, #tpu.memory_space<vmem>>, %arg11: memref<2x1x8xf32, #tpu.memory_space<vmem>>, %arg12: memref<2x8x64xbf16, #tpu.memory_space<vmem>>, %arg13: memref<1x64xf32, #tpu.memory_space<vmem>>, %arg14: memref<1x64xf32, #tpu.memory_space<vmem>>, %arg15: memref<1x16x64xf32, #tpu.memory_space<vmem>>) attributes {dimension_semantics = [#tpu.dimension_semantics<parallel>], iteration_bounds = array<i64: 2>, scalar_prefetch = 0 : i64, scratch_operands = 0 : i64, tpu.core_type = #tpu.core_type<tc>, window_params = [{transform_indices = @transform_0, window_bounds = array<i64: 1, 16, 64>}, {pipeline_mode = #tpu.pipeline_mode<synchronous>, transform_indices = @transform_1, window_bounds = array<i64: 64, 16>}, {pipeline_mode = #tpu.pipeline_mode<synchronous>, transform_indices = @transform_2, window_bounds = array<i64: 1, 16>}, {pipeline_mode = #tpu.pipeline_mode<synchronous>, transform_indices = @transform_3, window_bounds = array<i64: 1, 16>}, {pipeline_mode = #tpu.pipeline_mode<synchronous>, transform_indices = @transform_4, window_bounds = array<i64: 2, 16, 8>}, {pipeline_mode = #tpu.pipeline_mode<synchronous>, transform_indices = @transform_5, window_bounds = array<i64: 2, 16, 8>}, {pipeline_mode = #tpu.pipeline_mode<synchronous>, transform_indices = @transform_6, window_bounds = array<i64: 2, 16, 8>}, {pipeline_mode = #tpu.pipeline_mode<synchronous>, transform_indices = @transform_7, window_bounds = array<i64: 16, 8>}, {pipeline_mode = #tpu.pipeline_mode<synchronous>, transform_indices = @transform_8, window_bounds = array<i64: 2, 16, 8>}, {pipeline_mode = #tpu.pipeline_mode<synchronous>, transform_indices = @transform_9, window_bounds = array<i64: 2, 1, 8>}, {pipeline_mode = #tpu.pipeline_mode<synchronous>, transform_indices = @transform_10, window_bounds = array<i64: 2, 1, 8>}, {pipeline_mode = #tpu.pipeline_mode<synchronous>, transform_indices = @transform_11, window_bounds = array<i64: 2, 8, 64>}, {pipeline_mode = #tpu.pipeline_mode<synchronous>, transform_indices = @transform_12, window_bounds = array<i64: 1, 64>}, {pipeline_mode = #tpu.pipeline_mode<synchronous>, transform_indices = @transform_13, window_bounds = array<i64: 1, 64>}, {transform_indices = @transform_14, window_bounds = array<i64: 1, 16, 64>}]} {
    %c0 = arith.constant 0 : index
    %c0_0 = arith.constant 0 : index
    %c0_1 = arith.constant 0 : index
    %0 = vector.load %arg1[%c0, %c0_0, %c0_1] : memref<1x16x64xf32, #tpu.memory_space<vmem>>, vector<1x16x64xf32>
    %1 = vector.shape_cast %0 : vector<1x16x64xf32> to vector<16x64xf32>
    %2 = arith.truncf %1 : vector<16x64xf32> to vector<16x64xbf16>
    %c0_2 = arith.constant 0 : index
    %c0_3 = arith.constant 0 : index
    %3 = vector.load %arg2[%c0_2, %c0_3] : memref<64x16xbf16, #tpu.memory_space<vmem>>, vector<64x16xbf16>
    %cst = arith.constant dense<0.000000e+00> : vector<16x16xf32>
    %4 = tpu.matmul %2, %3, %cst {dimension_numbers = #tpu.dot_dimension_numbers<[1], [0], [0], [1], [0, 0, 1, 1], [], []>} : vector<16x64xbf16>, vector<64x16xbf16>, vector<16x16xf32> -> vector<16x16xf32>
    %c0_4 = arith.constant 0 : index
    %c0_5 = arith.constant 0 : index
    %5 = vector.load %arg3[%c0_4, %c0_5] : memref<1x16xf32, #tpu.memory_space<vmem>>, vector<1x16xf32>
    %6 = vector.broadcast %5 : vector<1x16xf32> to vector<16x16xf32>
    %7 = arith.mulf %4, %6 : vector<16x16xf32>
    %c0_6 = arith.constant 0 : index
    %c0_7 = arith.constant 0 : index
    %8 = vector.load %arg4[%c0_6, %c0_7] : memref<1x16xf32, #tpu.memory_space<vmem>>, vector<1x16xf32>
    %9 = vector.broadcast %8 : vector<1x16xf32> to vector<16x16xf32>
    %10 = arith.addf %7, %9 : vector<16x16xf32>
    %cst_8 = arith.constant 0.000000e+00 : f32
    %11 = vector.broadcast %cst_8 : f32 to vector<16x16xf32>
    %12 = arith.maximumf %10, %11 : vector<16x16xf32>
    %13 = arith.truncf %12 : vector<16x16xf32> to vector<16x16xbf16>
    %cst_9 = arith.constant dense<0.000000e+00> : vector<16xf32>
    %14 = vector.multi_reduction <add>, %12, %cst_9 [0] : vector<16x16xf32> to vector<16xf32>
    %15 = vector.shape_cast %14 : vector<16xf32> to vector<1x16xf32>
    %cst_10 = arith.constant 1.600000e+01 : f32
    %16 = vector.broadcast %cst_10 : f32 to vector<1x16xf32>
    %17 = arith.divf %15, %16 : vector<1x16xf32>
    %c0_11 = arith.constant 0 : index
    %c0_12 = arith.constant 0 : index
    %18 = vector.load %arg8[%c0_11, %c0_12] : memref<16x8xf32, #tpu.memory_space<vmem>>, vector<16x8xf32>
    %c0_13 = arith.constant 0 : index
    %c0_14 = arith.constant 0 : index
    %c0_15 = arith.constant 0 : index
    %19 = vector.load %arg5[%c0_13, %c0_14, %c0_15] : memref<2x16x8xbf16, #tpu.memory_space<vmem>>, vector<1x16x8xbf16>
    %20 = vector.shape_cast %19 : vector<1x16x8xbf16> to vector<16x8xbf16>
    %cst_16 = arith.constant dense<0.000000e+00> : vector<16x8xf32>
    %21 = tpu.matmul %13, %20, %cst_16 {dimension_numbers = #tpu.dot_dimension_numbers<[1], [0], [0], [1], [0, 0, 1, 1], [], []>} : vector<16x16xbf16>, vector<16x8xbf16>, vector<16x8xf32> -> vector<16x8xf32>
    %c0_17 = arith.constant 0 : index
    %c0_18 = arith.constant 0 : index
    %c0_19 = arith.constant 0 : index
    %22 = vector.load %arg6[%c0_17, %c0_18, %c0_19] : memref<2x16x8xbf16, #tpu.memory_space<vmem>>, vector<1x16x8xbf16>
    %23 = vector.shape_cast %22 : vector<1x16x8xbf16> to vector<16x8xbf16>
    %cst_20 = arith.constant dense<0.000000e+00> : vector<16x8xf32>
    %24 = tpu.matmul %13, %23, %cst_20 {dimension_numbers = #tpu.dot_dimension_numbers<[1], [0], [0], [1], [0, 0, 1, 1], [], []>} : vector<16x16xbf16>, vector<16x8xbf16>, vector<16x8xf32> -> vector<16x8xf32>
    %c0_21 = arith.constant 0 : index
    %c0_22 = arith.constant 0 : index
    %c0_23 = arith.constant 0 : index
    %25 = vector.load %arg7[%c0_21, %c0_22, %c0_23] : memref<2x16x8xbf16, #tpu.memory_space<vmem>>, vector<1x16x8xbf16>
    %26 = vector.shape_cast %25 : vector<1x16x8xbf16> to vector<16x8xbf16>
    %cst_24 = arith.constant dense<0.000000e+00> : vector<16x8xf32>
    %27 = tpu.matmul %13, %26, %cst_24 {dimension_numbers = #tpu.dot_dimension_numbers<[1], [0], [0], [1], [0, 0, 1, 1], [], []>} : vector<16x16xbf16>, vector<16x8xbf16>, vector<16x8xf32> -> vector<16x8xf32>
    %28 = arith.truncf %21 : vector<16x8xf32> to vector<16x8xbf16>
    %29 = arith.addf %24, %18 : vector<16x8xf32>
    %30 = arith.truncf %29 : vector<16x8xf32> to vector<16x8xbf16>
    %cst_25 = arith.constant dense<0.000000e+00> : vector<16x16xf32>
    %31 = tpu.matmul %28, %30, %cst_25 {dimension_numbers = #tpu.dot_dimension_numbers<[1], [1], [0], [0], [0, 0, 1, 0], [], []>} : vector<16x8xbf16>, vector<16x8xbf16>, vector<16x16xf32> -> vector<16x16xf32>
    %cst_26 = arith.constant dense<0xFF800000> : vector<16xf32>
    %32 = vector.multi_reduction <maximumf>, %31, %cst_26 [1] : vector<16x16xf32> to vector<16xf32>
    %33 = vector.shape_cast %32 : vector<16xf32> to vector<16x1xf32>
    %34 = vector.broadcast %33 : vector<16x1xf32> to vector<16x16xf32>
    %35 = arith.subf %31, %34 : vector<16x16xf32>
    %36 = math.exp %35 : vector<16x16xf32>
    %cst_27 = arith.constant dense<0.000000e+00> : vector<16xf32>
    %37 = vector.multi_reduction <add>, %36, %cst_27 [1] : vector<16x16xf32> to vector<16xf32>
    %38 = vector.shape_cast %37 : vector<16xf32> to vector<16x1xf32>
    %39 = tpu.reciprocal %38 {approx = true} : vector<16x1xf32> -> vector<16x1xf32>
    %40 = vector.broadcast %39 : vector<16x1xf32> to vector<16x16xf32>
    %41 = arith.mulf %36, %40 : vector<16x16xf32>
    %42 = arith.truncf %41 : vector<16x16xf32> to vector<16x16xbf16>
    %43 = arith.truncf %27 : vector<16x8xf32> to vector<16x8xbf16>
    %cst_28 = arith.constant dense<0.000000e+00> : vector<16x8xf32>
    %44 = tpu.matmul %42, %43, %cst_28 {dimension_numbers = #tpu.dot_dimension_numbers<[1], [0], [0], [1], [0, 0, 1, 1], [], []>} : vector<16x16xbf16>, vector<16x8xbf16>, vector<16x8xf32> -> vector<16x8xf32>
    %c0_29 = arith.constant 0 : index
    %c0_30 = arith.constant 0 : index
    %c0_31 = arith.constant 0 : index
    %45 = vector.load %arg9[%c0_29, %c0_30, %c0_31] : memref<2x16x8xf32, #tpu.memory_space<vmem>>, vector<1x16x8xf32>
    %46 = vector.shape_cast %45 : vector<1x16x8xf32> to vector<16x8xf32>
    %cst_32 = arith.constant dense<0.000000e+00> : vector<1x8xf32>
    %47 = tpu.matmul %17, %46, %cst_32 {dimension_numbers = #tpu.dot_dimension_numbers<[1], [0], [0], [1], [0, 0, 1, 1], [], []>} : vector<1x16xf32>, vector<16x8xf32>, vector<1x8xf32> -> vector<1x8xf32>
    %cst_33 = arith.constant 5.000000e-01 : f32
    %48 = vector.broadcast %cst_33 : f32 to vector<1x8xf32>
    %49 = arith.mulf %48, %47 : vector<1x8xf32>
    %cst_34 = arith.constant 5.000000e-01 : f32
    %50 = vector.broadcast %cst_34 : f32 to vector<1x8xf32>
    %51 = arith.addf %50, %49 : vector<1x8xf32>
    %c0_35 = arith.constant 0 : index
    %c0_36 = arith.constant 0 : index
    %c0_37 = arith.constant 0 : index
    %52 = vector.load %arg10[%c0_35, %c0_36, %c0_37] : memref<2x1x8xf32, #tpu.memory_space<vmem>>, vector<1x1x8xf32>
    %53 = vector.shape_cast %52 : vector<1x1x8xf32> to vector<1x8xf32>
    %54 = arith.mulf %51, %53 : vector<1x8xf32>
    %55 = vector.broadcast %54 : vector<1x8xf32> to vector<16x8xf32>
    %56 = arith.mulf %44, %55 : vector<16x8xf32>
    %c0_38 = arith.constant 0 : index
    %c0_39 = arith.constant 0 : index
    %c0_40 = arith.constant 0 : index
    %57 = vector.load %arg11[%c0_38, %c0_39, %c0_40] : memref<2x1x8xf32, #tpu.memory_space<vmem>>, vector<1x1x8xf32>
    %58 = vector.shape_cast %57 : vector<1x1x8xf32> to vector<1x8xf32>
    %59 = vector.broadcast %58 : vector<1x8xf32> to vector<16x8xf32>
    %60 = arith.addf %56, %59 : vector<16x8xf32>
    %cst_41 = arith.constant 0.000000e+00 : f32
    %61 = vector.broadcast %cst_41 : f32 to vector<16x8xf32>
    %62 = arith.maximumf %60, %61 : vector<16x8xf32>
    %63 = arith.truncf %62 : vector<16x8xf32> to vector<16x8xbf16>
    %c0_42 = arith.constant 0 : index
    %c0_43 = arith.constant 0 : index
    %c0_44 = arith.constant 0 : index
    %64 = vector.load %arg12[%c0_42, %c0_43, %c0_44] : memref<2x8x64xbf16, #tpu.memory_space<vmem>>, vector<1x8x64xbf16>
    %65 = vector.shape_cast %64 : vector<1x8x64xbf16> to vector<8x64xbf16>
    %cst_45 = arith.constant dense<0.000000e+00> : vector<16x64xf32>
    %66 = tpu.matmul %63, %65, %cst_45 {dimension_numbers = #tpu.dot_dimension_numbers<[1], [0], [0], [1], [0, 0, 1, 1], [], []>} : vector<16x8xbf16>, vector<8x64xbf16>, vector<16x64xf32> -> vector<16x64xf32>
    %c1 = arith.constant 1 : index
    %c0_46 = arith.constant 0 : index
    %c0_47 = arith.constant 0 : index
    %67 = vector.load %arg5[%c1, %c0_46, %c0_47] : memref<2x16x8xbf16, #tpu.memory_space<vmem>>, vector<1x16x8xbf16>
    %68 = vector.shape_cast %67 : vector<1x16x8xbf16> to vector<16x8xbf16>
    %cst_48 = arith.constant dense<0.000000e+00> : vector<16x8xf32>
    %69 = tpu.matmul %13, %68, %cst_48 {dimension_numbers = #tpu.dot_dimension_numbers<[1], [0], [0], [1], [0, 0, 1, 1], [], []>} : vector<16x16xbf16>, vector<16x8xbf16>, vector<16x8xf32> -> vector<16x8xf32>
    %c1_49 = arith.constant 1 : index
    %c0_50 = arith.constant 0 : index
    %c0_51 = arith.constant 0 : index
    %70 = vector.load %arg6[%c1_49, %c0_50, %c0_51] : memref<2x16x8xbf16, #tpu.memory_space<vmem>>, vector<1x16x8xbf16>
    %71 = vector.shape_cast %70 : vector<1x16x8xbf16> to vector<16x8xbf16>
    %cst_52 = arith.constant dense<0.000000e+00> : vector<16x8xf32>
    %72 = tpu.matmul %13, %71, %cst_52 {dimension_numbers = #tpu.dot_dimension_numbers<[1], [0], [0], [1], [0, 0, 1, 1], [], []>} : vector<16x16xbf16>, vector<16x8xbf16>, vector<16x8xf32> -> vector<16x8xf32>
    %c1_53 = arith.constant 1 : index
    %c0_54 = arith.constant 0 : index
    %c0_55 = arith.constant 0 : index
    %73 = vector.load %arg7[%c1_53, %c0_54, %c0_55] : memref<2x16x8xbf16, #tpu.memory_space<vmem>>, vector<1x16x8xbf16>
    %74 = vector.shape_cast %73 : vector<1x16x8xbf16> to vector<16x8xbf16>
    %cst_56 = arith.constant dense<0.000000e+00> : vector<16x8xf32>
    %75 = tpu.matmul %13, %74, %cst_56 {dimension_numbers = #tpu.dot_dimension_numbers<[1], [0], [0], [1], [0, 0, 1, 1], [], []>} : vector<16x16xbf16>, vector<16x8xbf16>, vector<16x8xf32> -> vector<16x8xf32>
    %76 = arith.truncf %69 : vector<16x8xf32> to vector<16x8xbf16>
    %77 = arith.addf %72, %18 : vector<16x8xf32>
    %78 = arith.truncf %77 : vector<16x8xf32> to vector<16x8xbf16>
    %cst_57 = arith.constant dense<0.000000e+00> : vector<16x16xf32>
    %79 = tpu.matmul %76, %78, %cst_57 {dimension_numbers = #tpu.dot_dimension_numbers<[1], [1], [0], [0], [0, 0, 1, 0], [], []>} : vector<16x8xbf16>, vector<16x8xbf16>, vector<16x16xf32> -> vector<16x16xf32>
    %cst_58 = arith.constant dense<0xFF800000> : vector<16xf32>
    %80 = vector.multi_reduction <maximumf>, %79, %cst_58 [1] : vector<16x16xf32> to vector<16xf32>
    %81 = vector.shape_cast %80 : vector<16xf32> to vector<16x1xf32>
    %82 = vector.broadcast %81 : vector<16x1xf32> to vector<16x16xf32>
    %83 = arith.subf %79, %82 : vector<16x16xf32>
    %84 = math.exp %83 : vector<16x16xf32>
    %cst_59 = arith.constant dense<0.000000e+00> : vector<16xf32>
    %85 = vector.multi_reduction <add>, %84, %cst_59 [1] : vector<16x16xf32> to vector<16xf32>
    %86 = vector.shape_cast %85 : vector<16xf32> to vector<16x1xf32>
    %87 = tpu.reciprocal %86 {approx = true} : vector<16x1xf32> -> vector<16x1xf32>
    %88 = vector.broadcast %87 : vector<16x1xf32> to vector<16x16xf32>
    %89 = arith.mulf %84, %88 : vector<16x16xf32>
    %90 = arith.truncf %89 : vector<16x16xf32> to vector<16x16xbf16>
    %91 = arith.truncf %75 : vector<16x8xf32> to vector<16x8xbf16>
    %cst_60 = arith.constant dense<0.000000e+00> : vector<16x8xf32>
    %92 = tpu.matmul %90, %91, %cst_60 {dimension_numbers = #tpu.dot_dimension_numbers<[1], [0], [0], [1], [0, 0, 1, 1], [], []>} : vector<16x16xbf16>, vector<16x8xbf16>, vector<16x8xf32> -> vector<16x8xf32>
    %c1_61 = arith.constant 1 : index
    %c0_62 = arith.constant 0 : index
    %c0_63 = arith.constant 0 : index
    %93 = vector.load %arg9[%c1_61, %c0_62, %c0_63] : memref<2x16x8xf32, #tpu.memory_space<vmem>>, vector<1x16x8xf32>
    %94 = vector.shape_cast %93 : vector<1x16x8xf32> to vector<16x8xf32>
    %cst_64 = arith.constant dense<0.000000e+00> : vector<1x8xf32>
    %95 = tpu.matmul %17, %94, %cst_64 {dimension_numbers = #tpu.dot_dimension_numbers<[1], [0], [0], [1], [0, 0, 1, 1], [], []>} : vector<1x16xf32>, vector<16x8xf32>, vector<1x8xf32> -> vector<1x8xf32>
    %cst_65 = arith.constant 5.000000e-01 : f32
    %96 = vector.broadcast %cst_65 : f32 to vector<1x8xf32>
    %97 = arith.mulf %96, %95 : vector<1x8xf32>
    %cst_66 = arith.constant 5.000000e-01 : f32
    %98 = vector.broadcast %cst_66 : f32 to vector<1x8xf32>
    %99 = arith.addf %98, %97 : vector<1x8xf32>
    %c1_67 = arith.constant 1 : index
    %c0_68 = arith.constant 0 : index
    %c0_69 = arith.constant 0 : index
    %100 = vector.load %arg10[%c1_67, %c0_68, %c0_69] : memref<2x1x8xf32, #tpu.memory_space<vmem>>, vector<1x1x8xf32>
    %101 = vector.shape_cast %100 : vector<1x1x8xf32> to vector<1x8xf32>
    %102 = arith.mulf %99, %101 : vector<1x8xf32>
    %103 = vector.broadcast %102 : vector<1x8xf32> to vector<16x8xf32>
    %104 = arith.mulf %92, %103 : vector<16x8xf32>
    %c1_70 = arith.constant 1 : index
    %c0_71 = arith.constant 0 : index
    %c0_72 = arith.constant 0 : index
    %105 = vector.load %arg11[%c1_70, %c0_71, %c0_72] : memref<2x1x8xf32, #tpu.memory_space<vmem>>, vector<1x1x8xf32>
    %106 = vector.shape_cast %105 : vector<1x1x8xf32> to vector<1x8xf32>
    %107 = vector.broadcast %106 : vector<1x8xf32> to vector<16x8xf32>
    %108 = arith.addf %104, %107 : vector<16x8xf32>
    %cst_73 = arith.constant 0.000000e+00 : f32
    %109 = vector.broadcast %cst_73 : f32 to vector<16x8xf32>
    %110 = arith.maximumf %108, %109 : vector<16x8xf32>
    %111 = arith.truncf %110 : vector<16x8xf32> to vector<16x8xbf16>
    %c1_74 = arith.constant 1 : index
    %c0_75 = arith.constant 0 : index
    %c0_76 = arith.constant 0 : index
    %112 = vector.load %arg12[%c1_74, %c0_75, %c0_76] : memref<2x8x64xbf16, #tpu.memory_space<vmem>>, vector<1x8x64xbf16>
    %113 = vector.shape_cast %112 : vector<1x8x64xbf16> to vector<8x64xbf16>
    %cst_77 = arith.constant dense<0.000000e+00> : vector<16x64xf32>
    %114 = tpu.matmul %111, %113, %cst_77 {dimension_numbers = #tpu.dot_dimension_numbers<[1], [0], [0], [1], [0, 0, 1, 1], [], []>} : vector<16x8xbf16>, vector<8x64xbf16>, vector<16x64xf32> -> vector<16x64xf32>
    %115 = arith.addf %66, %114 : vector<16x64xf32>
    %c0_78 = arith.constant 0 : index
    %c0_79 = arith.constant 0 : index
    %116 = vector.load %arg13[%c0_78, %c0_79] : memref<1x64xf32, #tpu.memory_space<vmem>>, vector<1x64xf32>
    %117 = vector.broadcast %116 : vector<1x64xf32> to vector<16x64xf32>
    %118 = arith.mulf %115, %117 : vector<16x64xf32>
    %c0_80 = arith.constant 0 : index
    %c0_81 = arith.constant 0 : index
    %119 = vector.load %arg14[%c0_80, %c0_81] : memref<1x64xf32, #tpu.memory_space<vmem>>, vector<1x64xf32>
    %120 = vector.broadcast %119 : vector<1x64xf32> to vector<16x64xf32>
    %121 = arith.addf %118, %120 : vector<16x64xf32>
    %122 = arith.addf %121, %1 : vector<16x64xf32>
    %cst_82 = arith.constant 0.000000e+00 : f32
    %123 = vector.broadcast %cst_82 : f32 to vector<16x64xf32>
    %124 = arith.maximumf %122, %123 : vector<16x64xf32>
    %c0_83 = arith.constant 0 : index
    %c0_84 = arith.constant 0 : index
    %c0_85 = arith.constant 0 : index
    %125 = vector.load %arg15[%c0_83, %c0_84, %c0_85] : memref<1x16x64xf32, #tpu.memory_space<vmem>>, vector<1x16x64xf32>
    %126 = vector.shape_cast %125 : vector<1x16x64xf32> to vector<16x64xf32>
    %127 = vector.shape_cast %124 : vector<16x64xf32> to vector<1x16x64xf32>
    tpu.vector_store %arg15[%c0_83, %c0_84, %c0_85], %127 {strides = array<i32>} : memref<1x16x64xf32, #tpu.memory_space<vmem>>, vector<1x16x64xf32>,
    return
  }
  func.func @transform_0(%arg0: i32) -> (i32, i32, i32) {
    %c0_i32 = arith.constant 0 : i32
    %c0_i32_0 = arith.constant 0 : i32
    %c0_i32_1 = arith.constant 0 : i32
    return %arg0, %c0_i32, %c0_i32_0 : i32, i32, i32
  }
  func.func @transform_1(%arg0: i32) -> (i32, i32) {
    %c0_i32 = arith.constant 0 : i32
    %c0_i32_0 = arith.constant 0 : i32
    %c0_i32_1 = arith.constant 0 : i32
    return %c0_i32, %c0_i32_0 : i32, i32
  }
  func.func @transform_2(%arg0: i32) -> (i32, i32) {
    %c0_i32 = arith.constant 0 : i32
    %c0_i32_0 = arith.constant 0 : i32
    %c0_i32_1 = arith.constant 0 : i32
    return %c0_i32, %c0_i32_0 : i32, i32
  }
  func.func @transform_3(%arg0: i32) -> (i32, i32) {
    %c0_i32 = arith.constant 0 : i32
    %c0_i32_0 = arith.constant 0 : i32
    %c0_i32_1 = arith.constant 0 : i32
    return %c0_i32, %c0_i32_0 : i32, i32
  }
  func.func @transform_4(%arg0: i32) -> (i32, i32, i32) {
    %c0_i32 = arith.constant 0 : i32
    %c0_i32_0 = arith.constant 0 : i32
    %c0_i32_1 = arith.constant 0 : i32
    %c0_i32_2 = arith.constant 0 : i32
    return %c0_i32, %c0_i32_0, %c0_i32_1 : i32, i32, i32
  }
  func.func @transform_5(%arg0: i32) -> (i32, i32, i32) {
    %c0_i32 = arith.constant 0 : i32
    %c0_i32_0 = arith.constant 0 : i32
    %c0_i32_1 = arith.constant 0 : i32
    %c0_i32_2 = arith.constant 0 : i32
    return %c0_i32, %c0_i32_0, %c0_i32_1 : i32, i32, i32
  }
  func.func @transform_6(%arg0: i32) -> (i32, i32, i32) {
    %c0_i32 = arith.constant 0 : i32
    %c0_i32_0 = arith.constant 0 : i32
    %c0_i32_1 = arith.constant 0 : i32
    %c0_i32_2 = arith.constant 0 : i32
    return %c0_i32, %c0_i32_0, %c0_i32_1 : i32, i32, i32
  }
  func.func @transform_7(%arg0: i32) -> (i32, i32) {
    %c0_i32 = arith.constant 0 : i32
    %c0_i32_0 = arith.constant 0 : i32
    %c0_i32_1 = arith.constant 0 : i32
    return %c0_i32, %c0_i32_0 : i32, i32
  }
  func.func @transform_8(%arg0: i32) -> (i32, i32, i32) {
    %c0_i32 = arith.constant 0 : i32
    %c0_i32_0 = arith.constant 0 : i32
    %c0_i32_1 = arith.constant 0 : i32
    %c0_i32_2 = arith.constant 0 : i32
    return %c0_i32, %c0_i32_0, %c0_i32_1 : i32, i32, i32
  }
  func.func @transform_9(%arg0: i32) -> (i32, i32, i32) {
    %c0_i32 = arith.constant 0 : i32
    %c0_i32_0 = arith.constant 0 : i32
    %c0_i32_1 = arith.constant 0 : i32
    %c0_i32_2 = arith.constant 0 : i32
    return %c0_i32, %c0_i32_0, %c0_i32_1 : i32, i32, i32
  }
  func.func @transform_10(%arg0: i32) -> (i32, i32, i32) {
    %c0_i32 = arith.constant 0 : i32
    %c0_i32_0 = arith.constant 0 : i32
    %c0_i32_1 = arith.constant 0 : i32
    %c0_i32_2 = arith.constant 0 : i32
    return %c0_i32, %c0_i32_0, %c0_i32_1 : i32, i32, i32
  }
  func.func @transform_11(%arg0: i32) -> (i32, i32, i32) {
    %c0_i32 = arith.constant 0 : i32
    %c0_i32_0 = arith.constant 0 : i32
    %c0_i32_1 = arith.constant 0 : i32
    %c0_i32_2 = arith.constant 0 : i32
    return %c0_i32, %c0_i32_0, %c0_i32_1 : i32, i32, i32
  }
  func.func @transform_12(%arg0: i32) -> (i32, i32) {
    %c0_i32 = arith.constant 0 : i32
    %c0_i32_0 = arith.constant 0 : i32
    %c0_i32_1 = arith.constant 0 : i32
    return %c0_i32, %c0_i32_0 : i32, i32
  }
  func.func @transform_13(%arg0: i32) -> (i32, i32) {
    %c0_i32 = arith.constant 0 : i32
    %c0_i32_0 = arith.constant 0 : i32
    %c0_i32_1 = arith.constant 0 : i32
    return %c0_i32, %c0_i32_0 : i32, i32
  }
  func.func @transform_14(%arg0: i32) -> (i32, i32, i32) {
    %c0_i32 = arith.constant 0 : i32
    %c0_i32_0 = arith.constant 0 : i32
    %c0_i32_1 = arith.constant 0 : i32
    return %arg0, %c0_i32, %c0_i32_0 : i32, i32, i32
  }
}

module attributes {stable_mosaic.version = 11 : i64} {
  func.func @_bottle_block_kernel(%arg0: i32, %arg1: memref<1x16x64xf32, #tpu.memory_space<vmem>>, %arg2: memref<64x16xbf16, #tpu.memory_space<vmem>>, %arg3: memref<1x16xf32, #tpu.memory_space<vmem>>, %arg4: memref<1x16xf32, #tpu.memory_space<vmem>>, %arg5: memref<2x16x8xbf16, #tpu.memory_space<vmem>>, %arg6: memref<2x16x8xbf16, #tpu.memory_space<vmem>>, %arg7: memref<2x16x8xbf16, #tpu.memory_space<vmem>>, %arg8: memref<16x8xf32, #tpu.memory_space<vmem>>, %arg9: memref<2x16x8xf32, #tpu.memory_space<vmem>>, %arg10: memref<2x1x8xf32, #tpu.memory_space<vmem>>, %arg11: memref<2x1x8xf32, #tpu.memory_space<vmem>>, %arg12: memref<2x8x64xbf16, #tpu.memory_space<vmem>>, %arg13: memref<1x64xf32, #tpu.memory_space<vmem>>, %arg14: memref<1x64xf32, #tpu.memory_space<vmem>>, %arg15: memref<1x16x64xf32, #tpu.memory_space<vmem>>) attributes {dimension_semantics = [#tpu.dimension_semantics<parallel>], iteration_bounds = array<i64: 2>, scalar_prefetch = 0 : i64, scratch_operands = 0 : i64, tpu.core_type = #tpu.core_type<tc>, window_params = [{transform_indices = @transform_0, window_bounds = array<i64: 1, 16, 64>}, {pipeline_mode = #tpu.pipeline_mode<synchronous>, transform_indices = @transform_1, window_bounds = array<i64: 64, 16>}, {pipeline_mode = #tpu.pipeline_mode<synchronous>, transform_indices = @transform_2, window_bounds = array<i64: 1, 16>}, {pipeline_mode = #tpu.pipeline_mode<synchronous>, transform_indices = @transform_3, window_bounds = array<i64: 1, 16>}, {pipeline_mode = #tpu.pipeline_mode<synchronous>, transform_indices = @transform_4, window_bounds = array<i64: 2, 16, 8>}, {pipeline_mode = #tpu.pipeline_mode<synchronous>, transform_indices = @transform_5, window_bounds = array<i64: 2, 16, 8>}, {pipeline_mode = #tpu.pipeline_mode<synchronous>, transform_indices = @transform_6, window_bounds = array<i64: 2, 16, 8>}, {pipeline_mode = #tpu.pipeline_mode<synchronous>, transform_indices = @transform_7, window_bounds = array<i64: 16, 8>}, {pipeline_mode = #tpu.pipeline_mode<synchronous>, transform_indices = @transform_8, window_bounds = array<i64: 2, 16, 8>}, {pipeline_mode = #tpu.pipeline_mode<synchronous>, transform_indices = @transform_9, window_bounds = array<i64: 2, 1, 8>}, {pipeline_mode = #tpu.pipeline_mode<synchronous>, transform_indices = @transform_10, window_bounds = array<i64: 2, 1, 8>}, {pipeline_mode = #tpu.pipeline_mode<synchronous>, transform_indices = @transform_11, window_bounds = array<i64: 2, 8, 64>}, {pipeline_mode = #tpu.pipeline_mode<synchronous>, transform_indices = @transform_12, window_bounds = array<i64: 1, 64>}, {pipeline_mode = #tpu.pipeline_mode<synchronous>, transform_indices = @transform_13, window_bounds = array<i64: 1, 64>}, {transform_indices = @transform_14, window_bounds = array<i64: 1, 16, 64>}]} {
    %c0 = arith.constant 0 : index
    %c0_0 = arith.constant 0 : index
    %c0_1 = arith.constant 0 : index
    %0 = vector.load %arg1[%c0, %c0_0, %c0_1] : memref<1x16x64xf32, #tpu.memory_space<vmem>>, vector<1x16x64xf32>
    %1 = vector.shape_cast %0 : vector<1x16x64xf32> to vector<16x64xf32>
    %2 = arith.truncf %1 : vector<16x64xf32> to vector<16x64xbf16>
    %c0_2 = arith.constant 0 : index
    %c0_3 = arith.constant 0 : index
    %3 = vector.load %arg2[%c0_2, %c0_3] : memref<64x16xbf16, #tpu.memory_space<vmem>>, vector<64x16xbf16>
    %cst = arith.constant dense<0.000000e+00> : vector<16x16xf32>
    %4 = tpu.matmul %2, %3, %cst {dimension_numbers = #tpu.dot_dimension_numbers<[1], [0], [0], [1], [0, 0, 1, 1], [], []>} : vector<16x64xbf16>, vector<64x16xbf16>, vector<16x16xf32> -> vector<16x16xf32>
    %c0_4 = arith.constant 0 : index
    %c0_5 = arith.constant 0 : index
    %5 = vector.load %arg3[%c0_4, %c0_5] : memref<1x16xf32, #tpu.memory_space<vmem>>, vector<1x16xf32>
    %6 = vector.broadcast %5 : vector<1x16xf32> to vector<16x16xf32>
    %7 = arith.mulf %4, %6 : vector<16x16xf32>
    %c0_6 = arith.constant 0 : index
    %c0_7 = arith.constant 0 : index
    %8 = vector.load %arg4[%c0_6, %c0_7] : memref<1x16xf32, #tpu.memory_space<vmem>>, vector<1x16xf32>
    %9 = vector.broadcast %8 : vector<1x16xf32> to vector<16x16xf32>
    %10 = arith.addf %7, %9 : vector<16x16xf32>
    %cst_8 = arith.constant 0.000000e+00 : f32
    %11 = vector.broadcast %cst_8 : f32 to vector<16x16xf32>
    %12 = arith.maximumf %10, %11 : vector<16x16xf32>
    %13 = arith.truncf %12 : vector<16x16xf32> to vector<16x16xbf16>
    %cst_9 = arith.constant dense<0.000000e+00> : vector<16xf32>
    %14 = vector.multi_reduction <add>, %12, %cst_9 [0] : vector<16x16xf32> to vector<16xf32>
    %15 = vector.shape_cast %14 : vector<16xf32> to vector<1x16xf32>
    %cst_10 = arith.constant 1.600000e+01 : f32
    %16 = vector.broadcast %cst_10 : f32 to vector<1x16xf32>
    %17 = arith.divf %15, %16 : vector<1x16xf32>
    %c0_11 = arith.constant 0 : index
    %c0_12 = arith.constant 0 : index
    %18 = vector.load %arg8[%c0_11, %c0_12] : memref<16x8xf32, #tpu.memory_space<vmem>>, vector<16x8xf32>
    %c0_13 = arith.constant 0 : index
    %c0_14 = arith.constant 0 : index
    %c0_15 = arith.constant 0 : index
    %19 = vector.load %arg5[%c0_13, %c0_14, %c0_15] : memref<2x16x8xbf16, #tpu.memory_space<vmem>>, vector<1x16x8xbf16>
    %20 = vector.shape_cast %19 : vector<1x16x8xbf16> to vector<16x8xbf16>
    %cst_16 = arith.constant dense<0.000000e+00> : vector<16x8xf32>
    %21 = tpu.matmul %13, %20, %cst_16 {dimension_numbers = #tpu.dot_dimension_numbers<[1], [0], [0], [1], [0, 0, 1, 1], [], []>} : vector<16x16xbf16>, vector<16x8xbf16>, vector<16x8xf32> -> vector<16x8xf32>
    %c0_17 = arith.constant 0 : index
    %c0_18 = arith.constant 0 : index
    %c0_19 = arith.constant 0 : index
    %22 = vector.load %arg6[%c0_17, %c0_18, %c0_19] : memref<2x16x8xbf16, #tpu.memory_space<vmem>>, vector<1x16x8xbf16>
    %23 = vector.shape_cast %22 : vector<1x16x8xbf16> to vector<16x8xbf16>
    %cst_20 = arith.constant dense<0.000000e+00> : vector<16x8xf32>
    %24 = tpu.matmul %13, %23, %cst_20 {dimension_numbers = #tpu.dot_dimension_numbers<[1], [0], [0], [1], [0, 0, 1, 1], [], []>} : vector<16x16xbf16>, vector<16x8xbf16>, vector<16x8xf32> -> vector<16x8xf32>
    %c0_21 = arith.constant 0 : index
    %c0_22 = arith.constant 0 : index
    %c0_23 = arith.constant 0 : index
    %25 = vector.load %arg7[%c0_21, %c0_22, %c0_23] : memref<2x16x8xbf16, #tpu.memory_space<vmem>>, vector<1x16x8xbf16>
    %26 = vector.shape_cast %25 : vector<1x16x8xbf16> to vector<16x8xbf16>
    %cst_24 = arith.constant dense<0.000000e+00> : vector<16x8xf32>
    %27 = tpu.matmul %13, %26, %cst_24 {dimension_numbers = #tpu.dot_dimension_numbers<[1], [0], [0], [1], [0, 0, 1, 1], [], []>} : vector<16x16xbf16>, vector<16x8xbf16>, vector<16x8xf32> -> vector<16x8xf32>
    %28 = arith.truncf %21 : vector<16x8xf32> to vector<16x8xbf16>
    %29 = arith.addf %24, %18 : vector<16x8xf32>
    %30 = arith.truncf %29 : vector<16x8xf32> to vector<16x8xbf16>
    %cst_25 = arith.constant dense<0.000000e+00> : vector<16x16xf32>
    %31 = tpu.matmul %28, %30, %cst_25 {dimension_numbers = #tpu.dot_dimension_numbers<[1], [1], [0], [0], [0, 0, 1, 0], [], []>} : vector<16x8xbf16>, vector<16x8xbf16>, vector<16x16xf32> -> vector<16x16xf32>
    %cst_26 = arith.constant dense<0xFF800000> : vector<16xf32>
    %32 = vector.multi_reduction <maximumf>, %31, %cst_26 [1] : vector<16x16xf32> to vector<16xf32>
    %33 = vector.shape_cast %32 : vector<16xf32> to vector<16x1xf32>
    %34 = vector.broadcast %33 : vector<16x1xf32> to vector<16x16xf32>
    %35 = arith.subf %31, %34 : vector<16x16xf32>
    %36 = math.exp %35 : vector<16x16xf32>
    %cst_27 = arith.constant dense<0.000000e+00> : vector<16xf32>
    %37 = vector.multi_reduction <add>, %36, %cst_27 [1] : vector<16x16xf32> to vector<16xf32>
    %38 = vector.shape_cast %37 : vector<16xf32> to vector<16x1xf32>
    %39 = tpu.reciprocal %38 {approx = true} : vector<16x1xf32> -> vector<16x1xf32>
    %40 = vector.broadcast %39 : vector<16x1xf32> to vector<16x16xf32>
    %41 = arith.mulf %36, %40 : vector<16x16xf32>
    %42 = arith.truncf %41 : vector<16x16xf32> to vector<16x16xbf16>
    %43 = arith.truncf %27 : vector<16x8xf32> to vector<16x8xbf16>
    %cst_28 = arith.constant dense<0.000000e+00> : vector<16x8xf32>
    %44 = tpu.matmul %42, %43, %cst_28 {dimension_numbers = #tpu.dot_dimension_numbers<[1], [0], [0], [1], [0, 0, 1, 1], [], []>} : vector<16x16xbf16>, vector<16x8xbf16>, vector<16x8xf32> -> vector<16x8xf32>
    %c0_29 = arith.constant 0 : index
    %c0_30 = arith.constant 0 : index
    %c0_31 = arith.constant 0 : index
    %45 = vector.load %arg9[%c0_29, %c0_30, %c0_31] : memref<2x16x8xf32, #tpu.memory_space<vmem>>, vector<1x16x8xf32>
    %46 = vector.shape_cast %45 : vector<1x16x8xf32> to vector<16x8xf32>
    %cst_32 = arith.constant dense<0.000000e+00> : vector<1x8xf32>
    %47 = tpu.matmul %17, %46, %cst_32 {dimension_numbers = #tpu.dot_dimension_numbers<[1], [0], [0], [1], [0, 0, 1, 1], [], []>} : vector<1x16xf32>, vector<16x8xf32>, vector<1x8xf32> -> vector<1x8xf32>
    %cst_33 = arith.constant 5.000000e-01 : f32
    %48 = vector.broadcast %cst_33 : f32 to vector<1x8xf32>
    %49 = arith.mulf %48, %47 : vector<1x8xf32>
    %cst_34 = arith.constant 5.000000e-01 : f32
    %50 = vector.broadcast %cst_34 : f32 to vector<1x8xf32>
    %51 = arith.addf %50, %49 : vector<1x8xf32>
    %c0_35 = arith.constant 0 : index
    %c0_36 = arith.constant 0 : index
    %c0_37 = arith.constant 0 : index
    %52 = vector.load %arg10[%c0_35, %c0_36, %c0_37] : memref<2x1x8xf32, #tpu.memory_space<vmem>>, vector<1x1x8xf32>
    %53 = vector.shape_cast %52 : vector<1x1x8xf32> to vector<1x8xf32>
    %54 = arith.mulf %51, %53 : vector<1x8xf32>
    %55 = vector.broadcast %54 : vector<1x8xf32> to vector<16x8xf32>
    %56 = arith.mulf %44, %55 : vector<16x8xf32>
    %c0_38 = arith.constant 0 : index
    %c0_39 = arith.constant 0 : index
    %c0_40 = arith.constant 0 : index
    %57 = vector.load %arg11[%c0_38, %c0_39, %c0_40] : memref<2x1x8xf32, #tpu.memory_space<vmem>>, vector<1x1x8xf32>
    %58 = vector.shape_cast %57 : vector<1x1x8xf32> to vector<1x8xf32>
    %59 = vector.broadcast %58 : vector<1x8xf32> to vector<16x8xf32>
    %60 = arith.addf %56, %59 : vector<16x8xf32>
    %cst_41 = arith.constant 0.000000e+00 : f32
    %61 = vector.broadcast %cst_41 : f32 to vector<16x8xf32>
    %62 = arith.maximumf %60, %61 : vector<16x8xf32>
    %63 = arith.truncf %62 : vector<16x8xf32> to vector<16x8xbf16>
    %c0_42 = arith.constant 0 : index
    %c0_43 = arith.constant 0 : index
    %c0_44 = arith.constant 0 : index
    %64 = vector.load %arg12[%c0_42, %c0_43, %c0_44] : memref<2x8x64xbf16, #tpu.memory_space<vmem>>, vector<1x8x64xbf16>
    %65 = vector.shape_cast %64 : vector<1x8x64xbf16> to vector<8x64xbf16>
    %cst_45 = arith.constant dense<0.000000e+00> : vector<16x64xf32>
    %66 = tpu.matmul %63, %65, %cst_45 {dimension_numbers = #tpu.dot_dimension_numbers<[1], [0], [0], [1], [0, 0, 1, 1], [], []>} : vector<16x8xbf16>, vector<8x64xbf16>, vector<16x64xf32> -> vector<16x64xf32>
    %c1 = arith.constant 1 : index
    %c0_46 = arith.constant 0 : index
    %c0_47 = arith.constant 0 : index
    %67 = vector.load %arg5[%c1, %c0_46, %c0_47] : memref<2x16x8xbf16, #tpu.memory_space<vmem>>, vector<1x16x8xbf16>
    %68 = vector.shape_cast %67 : vector<1x16x8xbf16> to vector<16x8xbf16>
    %cst_48 = arith.constant dense<0.000000e+00> : vector<16x8xf32>
    %69 = tpu.matmul %13, %68, %cst_48 {dimension_numbers = #tpu.dot_dimension_numbers<[1], [0], [0], [1], [0, 0, 1, 1], [], []>} : vector<16x16xbf16>, vector<16x8xbf16>, vector<16x8xf32> -> vector<16x8xf32>
    %c1_49 = arith.constant 1 : index
    %c0_50 = arith.constant 0 : index
    %c0_51 = arith.constant 0 : index
    %70 = vector.load %arg6[%c1_49, %c0_50, %c0_51] : memref<2x16x8xbf16, #tpu.memory_space<vmem>>, vector<1x16x8xbf16>
    %71 = vector.shape_cast %70 : vector<1x16x8xbf16> to vector<16x8xbf16>
    %cst_52 = arith.constant dense<0.000000e+00> : vector<16x8xf32>
    %72 = tpu.matmul %13, %71, %cst_52 {dimension_numbers = #tpu.dot_dimension_numbers<[1], [0], [0], [1], [0, 0, 1, 1], [], []>} : vector<16x16xbf16>, vector<16x8xbf16>, vector<16x8xf32> -> vector<16x8xf32>
    %c1_53 = arith.constant 1 : index
    %c0_54 = arith.constant 0 : index
    %c0_55 = arith.constant 0 : index
    %73 = vector.load %arg7[%c1_53, %c0_54, %c0_55] : memref<2x16x8xbf16, #tpu.memory_space<vmem>>, vector<1x16x8xbf16>
    %74 = vector.shape_cast %73 : vector<1x16x8xbf16> to vector<16x8xbf16>
    %cst_56 = arith.constant dense<0.000000e+00> : vector<16x8xf32>
    %75 = tpu.matmul %13, %74, %cst_56 {dimension_numbers = #tpu.dot_dimension_numbers<[1], [0], [0], [1], [0, 0, 1, 1], [], []>} : vector<16x16xbf16>, vector<16x8xbf16>, vector<16x8xf32> -> vector<16x8xf32>
    %76 = arith.truncf %69 : vector<16x8xf32> to vector<16x8xbf16>
    %77 = arith.addf %72, %18 : vector<16x8xf32>
    %78 = arith.truncf %77 : vector<16x8xf32> to vector<16x8xbf16>
    %cst_57 = arith.constant dense<0.000000e+00> : vector<16x16xf32>
    %79 = tpu.matmul %76, %78, %cst_57 {dimension_numbers = #tpu.dot_dimension_numbers<[1], [1], [0], [0], [0, 0, 1, 0], [], []>} : vector<16x8xbf16>, vector<16x8xbf16>, vector<16x16xf32> -> vector<16x16xf32>
    %cst_58 = arith.constant dense<0xFF800000> : vector<16xf32>
    %80 = vector.multi_reduction <maximumf>, %79, %cst_58 [1] : vector<16x16xf32> to vector<16xf32>
    %81 = vector.shape_cast %80 : vector<16xf32> to vector<16x1xf32>
    %82 = vector.broadcast %81 : vector<16x1xf32> to vector<16x16xf32>
    %83 = arith.subf %79, %82 : vector<16x16xf32>
    %84 = math.exp %83 : vector<16x16xf32>
    %cst_59 = arith.constant dense<0.000000e+00> : vector<16xf32>
    %85 = vector.multi_reduction <add>, %84, %cst_59 [1] : vector<16x16xf32> to vector<16xf32>
    %86 = vector.shape_cast %85 : vector<16xf32> to vector<16x1xf32>
    %87 = tpu.reciprocal %86 {approx = true} : vector<16x1xf32> -> vector<16x1xf32>
    %88 = vector.broadcast %87 : vector<16x1xf32> to vector<16x16xf32>
    %89 = arith.mulf %84, %88 : vector<16x16xf32>
    %90 = arith.truncf %89 : vector<16x16xf32> to vector<16x16xbf16>
    %91 = arith.truncf %75 : vector<16x8xf32> to vector<16x8xbf16>
    %cst_60 = arith.constant dense<0.000000e+00> : vector<16x8xf32>
    %92 = tpu.matmul %90, %91, %cst_60 {dimension_numbers = #tpu.dot_dimension_numbers<[1], [0], [0], [1], [0, 0, 1, 1], [], []>} : vector<16x16xbf16>, vector<16x8xbf16>, vector<16x8xf32> -> vector<16x8xf32>
    %c1_61 = arith.constant 1 : index
    %c0_62 = arith.constant 0 : index
    %c0_63 = arith.constant 0 : index
    %93 = vector.load %arg9[%c1_61, %c0_62, %c0_63] : memref<2x16x8xf32, #tpu.memory_space<vmem>>, vector<1x16x8xf32>
    %94 = vector.shape_cast %93 : vector<1x16x8xf32> to vector<16x8xf32>
    %cst_64 = arith.constant dense<0.000000e+00> : vector<1x8xf32>
    %95 = tpu.matmul %17, %94, %cst_64 {dimension_numbers = #tpu.dot_dimension_numbers<[1], [0], [0], [1], [0, 0, 1, 1], [], []>} : vector<1x16xf32>, vector<16x8xf32>, vector<1x8xf32> -> vector<1x8xf32>
    %cst_65 = arith.constant 5.000000e-01 : f32
    %96 = vector.broadcast %cst_65 : f32 to vector<1x8xf32>
    %97 = arith.mulf %96, %95 : vector<1x8xf32>
    %cst_66 = arith.constant 5.000000e-01 : f32
    %98 = vector.broadcast %cst_66 : f32 to vector<1x8xf32>
    %99 = arith.addf %98, %97 : vector<1x8xf32>
    %c1_67 = arith.constant 1 : index
    %c0_68 = arith.constant 0 : index
    %c0_69 = arith.constant 0 : index
    %100 = vector.load %arg10[%c1_67, %c0_68, %c0_69] : memref<2x1x8xf32, #tpu.memory_space<vmem>>, vector<1x1x8xf32>
    %101 = vector.shape_cast %100 : vector<1x1x8xf32> to vector<1x8xf32>
    %102 = arith.mulf %99, %101 : vector<1x8xf32>
    %103 = vector.broadcast %102 : vector<1x8xf32> to vector<16x8xf32>
    %104 = arith.mulf %92, %103 : vector<16x8xf32>
    %c1_70 = arith.constant 1 : index
    %c0_71 = arith.constant 0 : index
    %c0_72 = arith.constant 0 : index
    %105 = vector.load %arg11[%c1_70, %c0_71, %c0_72] : memref<2x1x8xf32, #tpu.memory_space<vmem>>, vector<1x1x8xf32>
    %106 = vector.shape_cast %105 : vector<1x1x8xf32> to vector<1x8xf32>
    %107 = vector.broadcast %106 : vector<1x8xf32> to vector<16x8xf32>
    %108 = arith.addf %104, %107 : vector<16x8xf32>
    %cst_73 = arith.constant 0.000000e+00 : f32
    %109 = vector.broadcast %cst_73 : f32 to vector<16x8xf32>
    %110 = arith.maximumf %108, %109 : vector<16x8xf32>
    %111 = arith.truncf %110 : vector<16x8xf32> to vector<16x8xbf16>
    %c1_74 = arith.constant 1 : index
    %c0_75 = arith.constant 0 : index
    %c0_76 = arith.constant 0 : index
    %112 = vector.load %arg12[%c1_74, %c0_75, %c0_76] : memref<2x8x64xbf16, #tpu.memory_space<vmem>>, vector<1x8x64xbf16>
    %113 = vector.shape_cast %112 : vector<1x8x64xbf16> to vector<8x64xbf16>
    %cst_77 = arith.constant dense<0.000000e+00> : vector<16x64xf32>
    %114 = tpu.matmul %111, %113, %cst_77 {dimension_numbers = #tpu.dot_dimension_numbers<[1], [0], [0], [1], [0, 0, 1, 1], [], []>} : vector<16x8xbf16>, vector<8x64xbf16>, vector<16x64xf32> -> vector<16x64xf32>
    %115 = arith.addf %66, %114 : vector<16x64xf32>
    %c0_78 = arith.constant 0 : index
    %c0_79 = arith.constant 0 : index
    %116 = vector.load %arg13[%c0_78, %c0_79] : memref<1x64xf32, #tpu.memory_space<vmem>>, vector<1x64xf32>
    %117 = vector.broadcast %116 : vector<1x64xf32> to vector<16x64xf32>
    %118 = arith.mulf %115, %117 : vector<16x64xf32>
    %c0_80 = arith.constant 0 : index
    %c0_81 = arith.constant 0 : index
    %119 = vector.load %arg14[%c0_80, %c0_81] : memref<1x64xf32, #tpu.memory_space<vmem>>, vector<1x64xf32>
    %120 = vector.broadcast %119 : vector<1x64xf32> to vector<16x64xf32>
    %121 = arith.addf %118, %120 : vector<16x64xf32>
    %122 = arith.addf %121, %1 : vector<16x64xf32>
    %cst_82 = arith.constant 0.000000e+00 : f32
    %123 = vector.broadcast %cst_82 : f32 to vector<16x64xf32>
    %124 = arith.maximumf %122, %123 : vector<16x64xf32>
    %c0_83 = arith.constant 0 : index
    %c0_84 = arith.constant 0 : index
    %c0_85 = arith.constant 0 : index
    %125 = vector.load %arg15[%c0_83, %c0_84, %c0_85] : memref<1x16x64xf32, #tpu.memory_space<vmem>>, vector<1x16x64xf32>
    %126 = vector.shape_cast %125 : vector<1x16x64xf32> to vector<16x64xf32>
    %127 = vector.shape_cast %124 : vector<16x64xf32> to vector<1x16x64xf32>
    tpu.vector_store %arg15[%c0_83, %c0_84, %c0_85], %127 {strides = array<i32>} : memref<1x16x64xf32, #tpu.memory_space<vmem>>, vector<1x16x64xf32>,
    return
  }
  func.func @transform_0(%arg0: i32) -> (i32, i32, i32) {
    %c0_i32 = arith.constant 0 : i32
    %c0_i32_0 = arith.constant 0 : i32
    %c0_i32_1 = arith.constant 0 : i32
    return %arg0, %c0_i32, %c0_i32_0 : i32, i32, i32
  }
  func.func @transform_1(%arg0: i32) -> (i32, i32) {
    %c0_i32 = arith.constant 0 : i32
    %c0_i32_0 = arith.constant 0 : i32
    %c0_i32_1 = arith.constant 0 : i32
    return %c0_i32, %c0_i32_0 : i32, i32
  }
  func.func @transform_2(%arg0: i32) -> (i32, i32) {
    %c0_i32 = arith.constant 0 : i32
    %c0_i32_0 = arith.constant 0 : i32
    %c0_i32_1 = arith.constant 0 : i32
    return %c0_i32, %c0_i32_0 : i32, i32
  }
  func.func @transform_3(%arg0: i32) -> (i32, i32) {
    %c0_i32 = arith.constant 0 : i32
    %c0_i32_0 = arith.constant 0 : i32
    %c0_i32_1 = arith.constant 0 : i32
    return %c0_i32, %c0_i32_0 : i32, i32
  }
  func.func @transform_4(%arg0: i32) -> (i32, i32, i32) {
    %c0_i32 = arith.constant 0 : i32
    %c0_i32_0 = arith.constant 0 : i32
    %c0_i32_1 = arith.constant 0 : i32
    %c0_i32_2 = arith.constant 0 : i32
    return %c0_i32, %c0_i32_0, %c0_i32_1 : i32, i32, i32
  }
  func.func @transform_5(%arg0: i32) -> (i32, i32, i32) {
    %c0_i32 = arith.constant 0 : i32
    %c0_i32_0 = arith.constant 0 : i32
    %c0_i32_1 = arith.constant 0 : i32
    %c0_i32_2 = arith.constant 0 : i32
    return %c0_i32, %c0_i32_0, %c0_i32_1 : i32, i32, i32
  }
  func.func @transform_6(%arg0: i32) -> (i32, i32, i32) {
    %c0_i32 = arith.constant 0 : i32
    %c0_i32_0 = arith.constant 0 : i32
    %c0_i32_1 = arith.constant 0 : i32
    %c0_i32_2 = arith.constant 0 : i32
    return %c0_i32, %c0_i32_0, %c0_i32_1 : i32, i32, i32
  }
  func.func @transform_7(%arg0: i32) -> (i32, i32) {
    %c0_i32 = arith.constant 0 : i32
    %c0_i32_0 = arith.constant 0 : i32
    %c0_i32_1 = arith.constant 0 : i32
    return %c0_i32, %c0_i32_0 : i32, i32
  }
  func.func @transform_8(%arg0: i32) -> (i32, i32, i32) {
    %c0_i32 = arith.constant 0 : i32
    %c0_i32_0 = arith.constant 0 : i32
    %c0_i32_1 = arith.constant 0 : i32
    %c0_i32_2 = arith.constant 0 : i32
    return %c0_i32, %c0_i32_0, %c0_i32_1 : i32, i32, i32
  }
  func.func @transform_9(%arg0: i32) -> (i32, i32, i32) {
    %c0_i32 = arith.constant 0 : i32
    %c0_i32_0 = arith.constant 0 : i32
    %c0_i32_1 = arith.constant 0 : i32
    %c0_i32_2 = arith.constant 0 : i32
    return %c0_i32, %c0_i32_0, %c0_i32_1 : i32, i32, i32
  }
  func.func @transform_10(%arg0: i32) -> (i32, i32, i32) {
    %c0_i32 = arith.constant 0 : i32
    %c0_i32_0 = arith.constant 0 : i32
    %c0_i32_1 = arith.constant 0 : i32
    %c0_i32_2 = arith.constant 0 : i32
    return %c0_i32, %c0_i32_0, %c0_i32_1 : i32, i32, i32
  }
  func.func @transform_11(%arg0: i32) -> (i32, i32, i32) {
    %c0_i32 = arith.constant 0 : i32
    %c0_i32_0 = arith.constant 0 : i32
    %c0_i32_1 = arith.constant 0 : i32
    %c0_i32_2 = arith.constant 0 : i32
    return %c0_i32, %c0_i32_0, %c0_i32_1 : i32, i32, i32
  }
  func.func @transform_12(%arg0: i32) -> (i32, i32) {
    %c0_i32 = arith.constant 0 : i32
    %c0_i32_0 = arith.constant 0 : i32
    %c0_i32_1 = arith.constant 0 : i32
    return %c0_i32, %c0_i32_0 : i32, i32
  }
  func.func @transform_13(%arg0: i32) -> (i32, i32) {
    %c0_i32 = arith.constant 0 : i32
    %c0_i32_0 = arith.constant 0 : i32
    %c0_i32_1 = arith.constant 0 : i32
    return %c0_i32, %c0_i32_0 : i32, i32
  }
  func.func @transform_14(%arg0: i32) -> (i32, i32, i32) {
    %c0_i32 = arith.constant 0 : i32
    %c0_i32_0 = arith.constant 0 : i32
    %c0_i32_1 = arith.constant 0 : i32
    return %arg0, %c0_i32, %c0_i32_0 : i32, i32, i32
  }
}

</mosaic_0001>

<bundles_post_ra>
// kernel: _lambda_.5
= control target key start
LH: loop header
LB: loop body
LE: loop exit
PB: predicated region body
PF: predicated region fallthrough
CT: control target
= control target key end

     0   :  { %s2195_s0 = inlined_call_operand.vmem [shape: f32[2,16,64], index: 0, kind: input, shape index: {}]   ;;  %s2196_s1 = inlined_call_operand.vmem [shape: bf16[64,16], index: 1, kind: input, shape index: {}]   ;;  %s2197_s2 = inlined_call_operand.vmem [shape: f32[1,16], index: 2, kind: input, shape index: {}]   ;;  %s2198_s3 = inlined_call_operand.vmem [shape: f32[1,16], index: 3, kind: input, shape index: {}]   ;;  %s2199_s4 = inlined_call_operand.vmem [shape: bf16[2,16,8], index: 4, kind: input, shape index: {}]   ;;  %s2200_s5 = inlined_call_operand.vmem [shape: bf16[2,16,8], index: 5, kind: input, shape index: {}]   ;;  %s2201_s6 = inlined_call_operand.vmem [shape: bf16[2,16,8], index: 6, kind: input, shape index: {}]   ;;  %s2202_s7 = inlined_call_operand.vmem [shape: f32[16,8], index: 7, kind: input, shape index: {}]   ;;  %s2203_s8 = inlined_call_operand.vmem [shape: f32[2,16,8], index: 8, kind: input, shape index: {}]   ;;  %s2204_s9 = inlined_call_operand.vmem [shape: f32[2,1,8], index: 9, kind: input, shape index: {}]   ;;  %s2205_s10 = inlined_call_operand.vmem [shape: f32[2,1,8], index: 10, kind: input, shape index: {}]   ;;  %s2206_s11 = inlined_call_operand.vmem [shape: bf16[2,8,64], index: 11, kind: input, shape index: {}]   ;;  %s2207_s12 = inlined_call_operand.vmem [shape: f32[1,64], index: 12, kind: input, shape index: {}]   ;;  %s2208_s13 = inlined_call_operand.vmem [shape: f32[1,64], index: 13, kind: input, shape index: {}]   ;;  %s2209_s14 = inlined_call_operand.hbm [shape: f32[2,16,64], index: 14, kind: output, shape index: {}]  }
   0x1   :  { %2211 = sst [smem:[#allocation7_spill]] %s2195_s0 }
   0x2   :  { %2212 = sst [smem:[#allocation8_spill]] %s2196_s1 }
   0x3   :  { %19 = vsyncpa [#allocation3], 0 }
   0x4   :  { %21 = vsyncpa [#allocation3 + $0x1], 0  ;;  %s1909_s29 = smov 0   ;;  %s1911_s30 = smov 0  }
   0x5   :  { %s1913_s15 = smov 0   ;;  %s1915_s16 = smov 0  }
   0x6 LB: > { %2213 = sst [smem:[#allocation5_spill]] %s1823_s15  ;;  %s1930_s17 = sadd.s32 4294967295, %s1827_s16   ;;  %s1827_s16 = sphi %s1915_s16, %s2223_s16   ;;  %s1823_s15 = sphi %s1913_s15, %s2220_s15   ;;  %s1819_s30 = sphi %s1911_s30, %s2222_s30   ;;  %s1815_s29 = sphi %s1909_s29, %s2221_s29  }
   0x7   : > { %s1509_s18 = sadd.s32 4294967294, %s1827_s16   ;;  %s1934_s19 = sadd.s32 1, %s1827_s16  }
   0x8   : > { %s333_s20 = sadd.s32 1, %s1823_s15  ;;  %s330_s21 = ssub.s32 %s1827_s16, %s1934_s19 }
   0x9   : > { %p343_p0 = scmp.ne.s32.totalorder %s1823_s15, %s1819_s30  ;;  %p331_p1 = scmp.eq.s32.totalorder %s330_s21, 0 }
   0xa   : > { %p344_p2 = scmp.eq.s32.totalorder %s1930_s17, 1  ;;  %p349_p3 = scmp.ne.s32.totalorder %s1819_s30, %s1815_s29 }
   0xb   : > { %p350_p4 = scmp.eq.s32.totalorder %s1509_s18, 1  ;;  %p1512_p7 = scmp.ge.s32.totalorder %s1827_s16, 1 }
   0xc   : > { %s1945_s22 = scalar_select %p331_p1, %s1823_s15, %s333_s20  }
   0xd   : > { %p1947_p5 = por %p344_p2, %p343_p0  ;;  %p1951_p6 = por %p350_p4, %p349_p3 }
   0xe   : > { %2214 = sst [smem:[#allocation6_spill]] %s1945_s22  ;;  %p415_p8 = scmp.lt.s32.totalorder %s1827_s16, 3 }
  0x10   : > { %p416_p9 = pnand %p1512_p7, %p415_p8 }
  0x11   : > { %s2217_s1 = sld [smem:[#allocation8_spill]] (!%p416_p9)  ;;  %p461_p10 = scmp.lt.s32.totalorder (!%p416_p9), %s1930_s17, 1 }
  0x12   : > { %419 = sbr.rel (%p416_p9) target bundleno = 1934 (0x78e), region = 76  ;;  %s2218_s0 = sld [smem:[#allocation7_spill]] (!%p416_p9) }
  0x13   : > { %s458_s26 = sand.u32 (!%p416_p9), 1, %s1819_s30   ;;  %s1564_s22 = sshll.u32 (!%p416_p9), %s1930_s17, 8 }
  0x14   : > { %s1513_s15 = sshll.u32 (!%p416_p9), %s458_s26, 4  ;;  %s2150_s27 = scalar_lea.hbm (!%p416_p9), %s2209_s14, %s1564_s22 }
  0x17   : > { %v1741_v0 = vld [vmem:[%s2217_s1 + $0x18] sm:$0xff]   ;;  %v1829_v1 = vmov 0.0   ;;  %v1742_v2 = vld [vmem:[%s2217_s1 + $0x10] sm:$0xff]   ;;  %vm1830_vm0 = vmmov 0   ;;  %s462_s18 = scalar_select %p461_p10, %s1930_s17, 1  ;;  %v1743_v3 = vld [vmem:[%s2217_s1 + $0x8] sm:$0xff]  }
  0x18   : > { %1600 = vmatprep.subr.bf16.mxu0 %v1829_v1  ;;  %1612 = vmatprep.subr.bf16.mxu1 %v1829_v1  ;;  %v1744_v4 = vld [vmem:[%s2217_s1] sm:$0xff]   ;;  %vm502_vm1 = vcmask 523264   ;;  %vm568_vm2 = vcmask 130048   ;;  %v581_v40 = vld [vmem:[%s2202_s7 + $0x8] sm:$0xff]  ;;  %vm734_vm3 = vcmask 64512   ;;  %vm1317_vm4 = vcmask 1043456  }
  0x19   : > { %1601 = vmatpush3.bf16.msra.mxu0 %v1741_v0  ;;  %1608 = vmatprep.mubr.msk.bf16.mxu0 %vm1830_vm0, %v1829_v1  ;;  %s1563_s25 = sshll.u32 %s462_s18, 4  ;;  %v1745_v8 = vld [vmem:[%s2199_s4] sm:$0xff]   ;;  %v851_v52 = vld [vmem:[%s2203_s8 + $0x8] sm:$0xff]  ;;  %s460_s18 = scalar_lea.vmem [#allocation2], %s1513_s15 }
  0x1a   : > { %1602 = vmatprep.subr.bf16.mxu0 %v1829_v1  ;;  %1614 = vmatprep.mubr.msk.bf16.mxu1 %vm1830_vm0, %v1829_v1  ;;  %s465_s28 = scalar_lea.vmem %s2218_s0, %s1563_s25  ;;  %v1521_v9 = vld [vmem:[%s2197_s2] ss:$0 sm:$0xff]  ;;  %v1748_v55 = vld [vmem:[%s2199_s4 + $0x8] sm:$0xff]   ;;  %s1447_s20 = sshll.u32 %s460_s18, 4  ;;  %s2152_s20 = int_to_ptr.vmem [resolvable:$true] %s1447_s20 }
  0x1b   : > { %v1982_v5 = vld [vmem:[%s465_s28] sm:$0xff]  ;;  %v1984_v6 = vld [vmem:[%s465_s28 + $0x8] sm:$0xff]  ;;  %1613 = vmatpush3.bf16.msra.mxu1 %v1745_v8  ;;  %s2155_s17 = scalar_lea.sflag [#allocation3], %s458_s26  ;;  %s1767_s28 = scalar_lea.vmem %s2152_s20, 256 }
  0x1c   : > { %v469_v7 = vpack.c.bf16 %v1984_v6, %v1982_v5  ;;  %1618 = vmatprep.subr.bf16.mxu1 %v1829_v1  ;;  %v1522_v11 = vld [vmem:[%s2198_s3] ss:$0 sm:$0xff]  ;;  %v1749_v57 = vld [vmem:[%s2200_s5 + $0x8] sm:$0xff]   ;;  %p1768_p11 = scmp.ne.s32.totalorder %s2152_s20, %s1767_s28  ;;  %s1831_s15 = smov [#allocation2]  }
  0x1d   : > { %1603 = vmatpush3.bf16.msra.mxu0 %v1742_v2  ;;  %v1746_v21 = vld [vmem:[%s2201_s6] sm:$0xff]   ;;  %s1771_s0 = sshll.u32 %s1831_s15, 4  ;;  %s1772_s0 = int_to_ptr.vmem [resolvable:$false] %s1771_s0 }
  0x1e   : > { %1604 = vmatprep.subr.bf16.mxu0 %v1829_v1  ;;  %v1747_v26 = vld [vmem:[%s2200_s5] sm:$0xff]   ;;  %p1769_p12 = pnand %p1768_p11, %p1947_p5  ;;  %s1773_s22 = scalar_lea.vmem %s1772_s0, 512 }
  0x1f   : > { %v580_v38 = vld [vmem:[%s2202_s7] sm:$0xff]  ;;  %p1774_p0 = scmp.lt.s32.totalorder %s2152_s20, %s1772_s0  ;;  %p1775_p1 = scmp.lt.s32.totalorder %s1773_s22, %s1767_s28 }
  0x20   : > { %v850_v53 = vld [vmem:[%s2203_s8] sm:$0xff]  ;;  %p1770_p13 = pneg %p1769_p12 }
  0x21   : > { %1605 = vmatpush3.bf16.msra.mxu0 %v1743_v3  ;;  %p1776_p2 = por %p1775_p1, %p1774_p0 }
  0x22   : > { %1606 = vmatprep.subr.bf16.mxu0 %v1829_v1 }
  0x23   : > { %p1777_p3 = pnand %p1776_p2, %p1770_p13 }
  0x25   : > { %1607 = vmatpush3.bf16.msra.mxu0 %v1744_v4 }
  0x26   : > { %1630 = vmatprep.subr.bf16.mxu0 %v1829_v1 }
  0x28   : > { %1609 = vmatmul.mubr.msk.bf16.vlgmr.msra.gmra.mxu0 %vm502_vm1, %v469_v7 }
  0x29   : > { %1632 = vmatprep.mubr.msk.bf16.mxu0 %vm1830_vm0, %v1829_v1 }
  0xe8   : > { %v540_v10 = vpop.f32.mrf.mxu0 }
  0xe9   : > { %v554_v12 = vmul.f32 %v1521_v9, %v540_v10 }
  0xea   : > { %v1610_v13 = vpop.f32.mrf.mxu0 }
  0xeb   : > { %v563_v14 = vadd.f32 %v1522_v11, %v554_v12 }
  0xec   : > { %v543_v15 = vpop.f32.mrf.mxu0 }
  0xed   : > { %v555_v16 = vmul.f32 %v1521_v9, %v543_v15  ;;  %v565_v18 = vmax.f32 %v563_v14, 0.0 }
  0xee   : > { %v1611_v17 = vpop.f32.mrf.mxu0 }
  0xef   : > { %v564_v19 = vadd.f32 %v1522_v11, %v555_v16  ;;  %v569_v22 = vsel %vm568_vm2, %v565_v18, 0.0 }
  0xf1   : > { %v566_v20 = vmax.f32 %v564_v19, 0.0 }
  0xf3   : > { %v2007_v23 = vpack.c.bf16 %v566_v20, %v565_v18  ;;  %v570_v24 = vsel %vm568_vm2, %v566_v20, 0.0 }
  0xf4   : > { %v571_v25 = vadd.f32 %v570_v24, %v569_v22 }
  0xf5   : > { %1615 = vmatmul.mubr.msk.bf16.vlgmr.msra.gmra.mxu1 %vm568_vm2, %v2007_v23 }
  0xf6   : > { %1619 = vmatpush3.bf16.msra.mxu1 %v1746_v21  ;;  %1620 = vmatprep.mubr.msk.bf16.mxu1 %vm1830_vm0, %v1829_v1  ;;  %v572_v36 = vrot.slane %v571_v25, 4 }
  0xf7   : > { %1624 = vmatprep.subr.bf16.mxu1 %v1829_v1 }
  0xf8   : > { %v573_v41 = vadd.f32 %v572_v36, %v571_v25 }
  0xfa   : > { %v574_v46 = vrot.slane %v573_v41, 2 }
  0xfc   : > { %v575_v49 = vadd.f32 %v574_v46, %v573_v41 }
  0xfd   : > { %1621 = vmatmul.mubr.msk.bf16.vlgmr.msra.gmra.mxu1 %vm568_vm2, %v2007_v23 }
  0xfe   : > { %1625 = vmatpush3.bf16.msra.mxu1 %v1747_v26  ;;  %1626 = vmatprep.mubr.msk.bf16.mxu1 %vm1830_vm0, %v1829_v1  ;;  %v576_v50 = vrot.slane %v575_v49, 1 }
  0xff   : > { %1636 = vmatprep.subr.bf16.mxu1 %v1829_v1 }
 0x100   : > { %v577_v54 = vadd.f32 %v576_v50, %v575_v49 }
 0x102   : > { %v2050_v56 = vmul.f32 0.0625, %v577_v54 }
 0x105   : > { %1627 = vmatmul.mubr.msk.bf16.vlgmr.msra.gmra.mxu1 %vm568_vm2, %v2007_v23 }
 0x106   : > { %1638 = vmatprep.mubr.msk.bf16.mxu1 %vm1830_vm0, %v1829_v1 }
 0x1b5   : > { %v627_v27 = vpop.f32.mrf.mxu1 }
 0x1b7   : > { %v1616_v28 = vpop.f32.mrf.mxu1 }
 0x1b9   : > { %v630_v29 = vpop.f32.mrf.mxu1 }
 0x1ba   : > { %v685_v51 = vpack.c.bf16 %v630_v29, %v627_v27 }
 0x1bb   : > { %v1617_v30 = vpop.f32.mrf.mxu1 }
 0x1bd   : > { %v678_v31 = vpop.f32.mrf.mxu1 }
 0x1bf   : > { %v1622_v32 = vpop.f32.mrf.mxu1 }
 0x1c1   : > { %v681_v33 = vpop.f32.mrf.mxu1 }
 0x1c2   : > { %v805_v34 = vpack.c.bf16 %v681_v33, %v678_v31 }
 0x1c3   : > { %v1623_v35 = vpop.f32.mrf.mxu1 }
 0x1c4   : > { %1637 = vmatpush3.bf16.msra.mxu1 %v805_v34  ;;  %v1750_v34 = vld [vmem:[%s2201_s6 + $0x8] sm:$0xff]  }
 0x1c5   : > { %v726_v37 = vpop.f32.mrf.mxu1  ;;  %1655 = vmatprep.subr.bf16.mxu1 %v1829_v1 }
 0x1c6   : > { %v727_v43 = vadd.f32 %v726_v37, %v580_v38  ;;  %v1548_v37 = vld [vmem:[%s2203_s8 + $0x18] sm:$0xff] }
 0x1c7   : > { %v1628_v39 = vpop.f32.mrf.mxu1 }
 0x1c8   : > { %v929_v39 = vlaneseq }
 0x1c9   : > { %v729_v42 = vpop.f32.mrf.mxu1 }
 0x1ca   : > { %v730_v44 = vadd.f32 %v729_v42, %v581_v40  ;;  %v2101_v41 = vshrl.u32 %v929_v39, 7  ;;  %v927_v42 = vld [vmem:[%s2204_s9] sm:$0x1] }
 0x1cb   : > { %v1629_v45 = vpop.f32.mrf.mxu1 }
 0x1cc   : > { %v733_v47 = vpack.c.bf16 %v730_v44, %v727_v43  ;;  %v931_v44 = vsub.s32 0, %v2101_v41 }
 0x1ce   : > { %v739_v48 = vsel %vm734_vm3, %v733_v47, 0 }
 0x1cf   : > { %1631 = vmatpush3.bf16.xpose.msra.mxu0 %v739_v48  ;;  %v1532_v48 = vld [vmem:[%s2205_s10] ss:$0 sm:$0xff] }
 0x1d0   : > { %1642 = vmatprep.subr.mxu0 %v1829_v1 }
 0x1d6   : > { %1633 = vmatmul.mubr.msk.bf16.vlgmr.msra.gmra.mxu0 %vm734_vm3, %v685_v51 }
 0x1d7   : > { %1643 = vmatpush3.msra.mxu0 %v851_v52  ;;  %1646 = vmatprep.mubr.msk.f32.mxu0 %vm1830_vm0, %v1829_v1 }
 0x1d8   : > { %1644 = vmatprep.subr.mxu0 %v1829_v1 }
 0x1d9   : > { %1645 = vmatpush3.msra.mxu0 %v850_v53 }
 0x1da   : > { %1649 = vmatprep.subr.bf16.mxu0 %v1829_v1 }
 0x1de   : > { %1647 = vmatmul.mubr.msk.f32.vlgmr.msra.gmra.mxu0 %vm568_vm2, %v2050_v56 }
 0x1df   : > { %1650 = vmatpush3.bf16.msra.mxu0 %v1748_v55  ;;  %1651 = vmatprep.mubr.msk.bf16.mxu0 %vm1830_vm0, %v1829_v1 }
 0x1e0   : > { %1661 = vmatprep.subr.bf16.mxu0 %v1829_v1 }
 0x1e2   : > { %1652 = vmatmul.mubr.msk.bf16.vlgmr.msra.gmra.mxu0 %vm568_vm2, %v2007_v23 }
 0x1e3   : > { %1662 = vmatpush3.bf16.msra.mxu0 %v1749_v57  ;;  %1663 = vmatprep.mubr.msk.bf16.mxu0 %vm1830_vm0, %v1829_v1 }
 0x1e4   : > { %1673 = vmatprep.subr.bf16.mxu0 %v1829_v1 }
 0x1ea   : > { %1664 = vmatmul.mubr.msk.bf16.vlgmr.msra.gmra.mxu0 %vm568_vm2, %v2007_v23 }
 0x1eb   : > { %1675 = vmatprep.mubr.msk.bf16.mxu0 %vm1830_vm0, %v1829_v1 }
 0x296   : > { %v775_v58 = vpop.f32.mrf.mxu0 }
 0x297   : > { %v782_v59 = vsel %vm568_vm2, %v775_v58, -inf }
 0x298   : > { %783 = vmax.xlane.f32.xlu0 %v782_v59  ;;  %v1634_v60 = vpop.f32.mrf.mxu0 }
 0x29a   : > { %v778_v61 = vpop.f32.mrf.mxu0 }
 0x29b   : > { %v785_v62 = vsel %vm568_vm2, %v778_v61, -inf }
 0x29c   : > { %786 = vmax.xlane.f32.xlu0 %v785_v62  ;;  %v1635_v63 = vpop.f32.mrf.mxu0 }
 0x29e   : > { %v921_v0 = vpop.f32.mrf.mxu0 }
 0x2a0   : > { %v1648_v2 = vpop.f32.mrf.mxu0 }
 0x2a2   : > { %v991_v3 = vpop.f32.mrf.mxu0 }
 0x2a4   : > { %v1653_v4 = vpop.f32.mrf.mxu0 }
 0x2a6   : > { %v994_v7 = vpop.f32.mrf.mxu0 }
 0x2a7   : > { %v1051_v8 = vpack.c.bf16 %v994_v7, %v991_v3 }
 0x2a8   : > { %v1654_v9 = vpop.f32.mrf.mxu0 }
 0x2aa   : > { %v1092_v10 = vpop.f32.mrf.mxu0 }
 0x2ab   : > { %v1093_v13 = vadd.f32 %v1092_v10, %v580_v38  ;;  %v1547_v38 = vld [vmem:[%s2203_s8 + $0x10] sm:$0xff] }
 0x2ac   : > { %v1665_v11 = vpop.f32.mrf.mxu0 }
 0x2ae   : > { %v1095_v12 = vpop.f32.mrf.mxu0 }
 0x2af   : > { %v1096_v14 = vadd.f32 %v1095_v12, %v581_v40 }
 0x2b0   : > { %v1666_v15 = vpop.f32.mrf.mxu0 }
 0x2b1   : > { %v1099_v16 = vpack.c.bf16 %v1096_v14, %v1093_v13 }
 0x2b3   : > { %v1104_v36 = vsel %vm734_vm3, %v1099_v16, 0 }
 0x321   : > { %v784_v17 = vpop.xlane.xlu0 %783 }
 0x322   : > { %v788_v18 = vsub.f32 %v775_v58, %v784_v17 }
 0x324   : > { %v790_v19 = vmul.f32 1.442695, %v788_v18 }
 0x325   : > { %v787_v20 = vpop.xlane.xlu0 %786 }
 0x326   : > { %1751 = vpow2.f32 %v790_v19  ;;  %v789_v21 = vsub.f32 %v778_v61, %v787_v20 }
 0x328   : > { %v792_v22 = vmul.f32 1.442695, %v789_v21 }
 0x32a   : > { %1753 = vpow2.f32 %v792_v22 }
 0x333   : > { %v1752_v24 = vpop.eup %1751 }
 0x334   : > { %v794_v25 = vsel %vm568_vm2, %v1752_v24, 0.0 }
 0x335   : > { %795 = vadd.xlane.f32.xlu1 %v794_v25  ;;  %v947_v25 = vld [vmem:[%s2206_s11] sm:$0xf] }
 0x337   : > { %v1754_v26 = vpop.eup %1753 }
 0x338   : > { %v797_v27 = vsel %vm568_vm2, %v1754_v26, 0.0 }
 0x339   : > { %798 = vadd.xlane.f32.xlu1 %v797_v27 }
 0x3be   : > { %v796_v28 = vpop.xlane.xlu1 %795 }
 0x3bf   : > { %1755 = vrcp.f32 %v796_v28 }
 0x3c2   : > { %v799_v29 = vpop.xlane.xlu1 %798 }
 0x3c3   : > { %1757 = vrcp.f32 %v799_v29  ;;  %v1366_v29 = vsel %vm1317_vm4, %v947_v25, 0 }
 0x3cc   : > { %v1756_v30 = vpop.eup %1755 }
 0x3cd   : > { %v802_v32 = vmul.f32 %v1756_v30, %v1752_v24  ;;  %v1553_v30 = vld [vmem:[%s2206_s11 + $0x4] sm:$0xf] }
 0x3d0   : > { %v1758_v31 = vpop.eup %1757 }
 0x3d1   : > { %v803_v33 = vmul.f32 %v1758_v31, %v1754_v26  ;;  %v1319_v31 = vsel %vm1317_vm4, %v1553_v30, 0 }
 0x3d3   : > { %v804_v35 = vpack.c.bf16 %v803_v33, %v802_v32 }
 0x3d5   : > { %1639 = vmatmul.mubr.msk.bf16.vlgmr.msra.gmra.mxu1 %vm568_vm2, %v804_v35 }
 0x3d6   : > { %1656 = vmatpush3.bf16.msra.mxu1 %v1750_v34  ;;  %1657 = vmatprep.mubr.msk.bf16.mxu1 %vm1830_vm0, %v1829_v1  ;;  %v1550_v34 = vld [vmem:[%s2204_s9 + $0x1] sm:$0x1] }
 0x3d7   : > { %1667 = vmatprep.subr.bf16.mxu1 %v1829_v1 }
 0x3dd   : > { %1658 = vmatmul.mubr.msk.bf16.vlgmr.msra.gmra.mxu1 %vm568_vm2, %v2007_v23  ;;  %v925_v23 = vmul.f32 0.5, %v921_v0 }
 0x3de   : > { %1668 = vmatpush3.bf16.xpose.msra.mxu1 %v1104_v36  ;;  %1669 = vmatprep.mubr.msk.bf16.mxu1 %vm1830_vm0, %v1829_v1 }
 0x3df   : > { %1679 = vmatprep.subr.mxu1 %v1829_v1  ;;  %v926_v40 = vadd.f32 0.5, %v925_v23 }
 0x3e1   : > { %v928_v43 = vmul.f32 %v927_v42, %v926_v40 }
 0x3e3   : > { %v932_v45 = vrot.slane %v928_v43, %v931_v44 }
 0x3e5   : > { %1670 = vmatmul.mubr.msk.bf16.vlgmr.msra.gmra.mxu1 %vm734_vm3, %v1051_v8 }
 0x3e6   : > { %1680 = vmatpush3.msra.mxu1 %v1548_v37  ;;  %1683 = vmatprep.mubr.msk.f32.mxu1 %vm1830_vm0, %v1829_v1 }
 0x3e7   : > { %1681 = vmatprep.subr.mxu1 %v1829_v1 }
 0x3e8   : > { %1682 = vmatpush3.msra.mxu1 %v1547_v38  ;;  %v1552_v38 = vld [vmem:[%s2205_s10 + $0x1] ss:$0 sm:$0xff] }
 0x3e9   : > { %1686 = vmatprep.subr.bf16.mxu1 %v1829_v1 }
 0x3ed   : > { %1684 = vmatmul.mubr.msk.f32.vlgmr.msra.gmra.mxu1 %vm568_vm2, %v2050_v56 }
 0x3ee   : > { %1688 = vmatprep.mubr.msk.bf16.mxu1 %vm1830_vm0, %v1829_v1  ;;  %1687 = vmatpush3.bf16.msra.mxu1 %v1319_v31 }
 0x495   : > { %v843_v46 = vpop.f32.mrf.mxu1 }
 0x496   : > { %v933_v47 = vmul.f32 %v932_v45, %v843_v46 }
 0x497   : > { %v1640_v49 = vpop.f32.mrf.mxu1 }
 0x498   : > { %v942_v51 = vadd.f32 %v1532_v48, %v933_v47 }
 0x499   : > { %v846_v50 = vpop.f32.mrf.mxu1 }
 0x49a   : > { %v934_v52 = vmul.f32 %v932_v45, %v846_v50  ;;  %v944_v56 = vmax.f32 %v942_v51, 0.0 }
 0x49b   : > { %v1641_v53 = vpop.f32.mrf.mxu1 }
 0x49c   : > { %v943_v54 = vadd.f32 %v1532_v48, %v934_v52  ;;  %v1556_v52 = vld [vmem:[%s2207_s12] ss:$0 sm:$0xff] }
 0x49d   : > { %v1044_v55 = vpop.f32.mrf.mxu1 }
 0x49e   : > { %v945_v57 = vmax.f32 %v943_v54, 0.0  ;;  %v1557_v54 = vld [vmem:[%s2208_s13] ss:$0 sm:$0xff] }
 0x49f   : > { %v1659_v58 = vpop.f32.mrf.mxu1 }
 0x4a0   : > { %v946_v59 = vpack.c.bf16 %v945_v57, %v944_v56 }
 0x4a1   : > { %v1047_v60 = vpop.f32.mrf.mxu1 }
 0x4a2   : > { %v1170_v61 = vpack.c.bf16 %v1047_v60, %v1044_v55 }
 0x4a3   : > { %v1660_v62 = vpop.f32.mrf.mxu1 }
 0x4a4   : > { %1674 = vmatpush3.bf16.msra.mxu0 %v1170_v61 }
 0x4a5   : > { %v1140_v63 = vpop.f32.mrf.mxu1  ;;  %1692 = vmatprep.subr.bf16.mxu0 %v1829_v1 }
 0x4a6   : > { %v1147_v0 = vsel %vm568_vm2, %v1140_v63, -inf }
 0x4a7   : > { %1148 = vmax.xlane.f32.xlu0 %v1147_v0  ;;  %v1671_v2 = vpop.f32.mrf.mxu1 }
 0x4a9   : > { %v1143_v3 = vpop.f32.mrf.mxu1 }
 0x4aa   : > { %v1150_v4 = vsel %vm568_vm2, %v1143_v3, -inf }
 0x4ab   : > { %1151 = vmax.xlane.f32.xlu1 %v1150_v4  ;;  %v1672_v7 = vpop.f32.mrf.mxu1 }
 0x4ad   : > { %v1284_v8 = vpop.f32.mrf.mxu1 }
 0x4ae   : > { %v1288_v32 = vmul.f32 0.5, %v1284_v8 }
 0x4af   : > { %v1685_v9 = vpop.f32.mrf.mxu1 }
 0x4b0   : > { %v1289_v33 = vadd.f32 0.5, %v1288_v32 }
 0x4b2   : > { %v1292_v35 = vmul.f32 %v1550_v34, %v1289_v33 }
 0x4b4   : > { %v1296_v36 = vrot.slane %v1292_v35, %v931_v44 }
 0x530   : > { %v1149_v10 = vpop.xlane.xlu0 %1148 }
 0x531   : > { %v1153_v11 = vsub.f32 %v1140_v63, %v1149_v10 }
 0x533   : > { %v1155_v12 = vmul.f32 1.442695, %v1153_v11 }
 0x534   : > { %v1152_v13 = vpop.xlane.xlu1 %1151 }
 0x535   : > { %1759 = vpow2.f32 %v1155_v12  ;;  %v1154_v14 = vsub.f32 %v1143_v3, %v1152_v13 }
 0x537   : > { %v1157_v15 = vmul.f32 1.442695, %v1154_v14 }
 0x539   : > { %1761 = vpow2.f32 %v1157_v15 }
 0x542   : > { %v1760_v16 = vpop.eup %1759 }
 0x543   : > { %v1159_v17 = vsel %vm568_vm2, %v1760_v16, 0.0 }
 0x544   : > { %1160 = vadd.xlane.f32.xlu0 %v1159_v17 }
 0x546   : > { %v1762_v18 = vpop.eup %1761 }
 0x547   : > { %v1162_v19 = vsel %vm568_vm2, %v1762_v18, 0.0 }
 0x548   : > { %1163 = vadd.xlane.f32.xlu1 %v1162_v19 }
 0x5cd   : > { %v1161_v20 = vpop.xlane.xlu0 %1160 }
 0x5ce   : > { %1763 = vrcp.f32 %v1161_v20 }
 0x5d1   : > { %v1164_v21 = vpop.xlane.xlu1 %1163 }
 0x5d2   : > { %1765 = vrcp.f32 %v1164_v21 }
 0x5db   : > { %v1764_v22 = vpop.eup %1763 }
 0x5dc   : > { %v1167_v26 = vmul.f32 %v1764_v22, %v1760_v16 }
 0x5df   : > { %v1766_v24 = vpop.eup %1765 }
 0x5e0   : > { %v1168_v27 = vmul.f32 %v1766_v24, %v1762_v18 }
 0x5e2   : > { %v1169_v28 = vpack.c.bf16 %v1168_v27, %v1167_v26 }
 0x5e4   : > { %1676 = vmatmul.mubr.msk.bf16.vlgmr.msra.gmra.mxu0 %vm568_vm2, %v1169_v28 }
 0x5e5   : > { %1693 = vmatpush3.bf16.msra.mxu0 %v1366_v29  ;;  %1694 = vmatprep.mubr.msk.bf16.mxu0 %vm1830_vm0, %v1829_v1 }
 0x5ec   : > { %1695 = vmatmul.mubr.msk.bf16.vlgmr.msra.gmra.mxu0 %vm734_vm3, %v946_v59 }
 0x6a4   : > { %v1208_v37 = vpop.f32.mrf.mxu0 }
 0x6a5   : > { %v1297_v1 = vmul.f32 %v1296_v36, %v1208_v37 }
 0x6a6   : > { %v1677_v23 = vpop.f32.mrf.mxu0 }
 0x6a7   : > { %v1307_v40 = vadd.f32 %v1552_v38, %v1297_v1 }
 0x6a8   : > { %v1211_v39 = vpop.f32.mrf.mxu0 }
 0x6a9   : > { %v1298_v42 = vmul.f32 %v1296_v36, %v1211_v39  ;;  %v1309_v47 = vmax.f32 %v1307_v40, 0.0 }
 0x6aa   : > { %v1678_v43 = vpop.f32.mrf.mxu0 }
 0x6ab   : > { %v1308_v45 = vadd.f32 %v1552_v38, %v1298_v42 }
 0x6ac   : > { %v1402_v46 = vpop.f32.mrf.mxu0 }
 0x6ad   : > { %v1310_v48 = vmax.f32 %v1308_v45, 0.0 }
 0x6ae   : > { %v1696_v49 = vpop.f32.mrf.mxu0 }
 0x6af   : > { %v1311_v50 = vpack.c.bf16 %v1310_v48, %v1309_v47 }
 0x6b0   : > { %v1405_v41 = vpop.f32.mrf.mxu0 }
 0x6b1   : > { %1689 = vmatmul.mubr.msk.bf16.vlgmr.msra.gmra.mxu1 %vm734_vm3, %v1311_v50 }
 0x6b2   : > { %v1697_v44 = vpop.f32.mrf.mxu0 }
 0x771   : > { %v1355_v51 = vpop.f32.mrf.mxu1 }
 0x772   : > { %v1403_v53 = vadd.f32 %v1402_v46, %v1355_v51 }
 0x773   : > { %v1690_v55 = vpop.f32.mrf.mxu1 }
 0x774   : > { %v1416_v56 = vmul.f32 %v1556_v52, %v1403_v53 }
 0x775   : > { %v1358_v57 = vpop.f32.mrf.mxu1 }
 0x776   : > { %v1425_v58 = vadd.f32 %v1557_v54, %v1416_v56  ;;  %v1406_v59 = vadd.f32 %v1405_v41, %v1358_v57 }
 0x777   : > { %v1691_v60 = vpop.f32.mrf.mxu1 }
 0x778   : > { %v1427_v61 = vadd.f32 %v1425_v58, %v1982_v5  ;;  %v1417_v62 = vmul.f32 %v1556_v52, %v1406_v59 }
 0x77a   : > { %v1429_v63 = vmax.f32 %v1427_v61, 0.0  ;;  %v1426_v0 = vadd.f32 %v1557_v54, %v1417_v62 }
 0x77c   : > { %1431 = vst.msk [vmem:[%s460_s18] sm:$0xff] %vm502_vm1, %v1429_v63  ;;  %v1428_v2 = vadd.f32 %v1426_v0, %v1984_v6 }
 0x77e   : > { %v1430_v5 = vmax.f32 %v1428_v2, 0.0 }
 0x780   : > { %1432 = vst.msk [vmem:[%s460_s18 + $0x8] sm:$0xff] %vm502_vm1, %v1430_v5 }
 0x781   : > { %1780 = shalt.err (!%p1777_p3)
}
 0x782   : > { %s1781_s26 = scalar_lea.hbm %s2150_s27, 256  ;;  %s1785_s25 = scalar_lea.hbm %s2209_s14, 512 }
 0x783   : > { %p1782_p4 = scmp.ne.s32.totalorder %s2150_s27, %s1781_s26  ;;  %p1786_p9 = scmp.lt.s32.totalorder %s2150_s27, %s2209_s14 }
 0x784   : > { %p1787_p10 = scmp.lt.s32.totalorder %s1785_s25, %s1781_s26 }
 0x785   : > { %p1783_p7 = pnand %p1782_p4, %p1947_p5 }
 0x786   : > { %p1788_p11 = por %p1787_p10, %p1786_p9 }
 0x787   : > { %p1784_p8 = pneg %p1783_p7 }
 0x789   : > { %p1789_p12 = pnand %p1788_p11, %p1784_p8 }
 0x78b   : > { %1792 = shalt.err (!%p1789_p12)
}
 0x78c   : > { %s1832_s0 = smov 128   ;;  %s1833_s28 = smov 8  }
 0x78d   : > { %1698 = dma.vmem_to_hbm [thread:$0]  (%p1947_p5), %s2152_s20, 256, %s2150_s27, %s2155_s17, %s1832_s0, %s1832_s0, %s1833_s28  }
 0x78e PF: > { %p1704_p13 = scmp.ge.s32.totalorder %s1827_s16, 2  ;;  %s1462_s22 = sand.u32 1, %s1815_s29  }
 0x78f   : > { %s1463_s1 = scalar_lea.sflag [#allocation3], %s1462_s22 }
 0x790   : > { %p1701_p0 = pnand %p1704_p13, %p1951_p6 }
 0x792   : > { %p1702_p1 = pneg %p1701_p0 }
 0x794   : > { %1810 = dma.done.wait (%p1702_p1), %s1463_s1, 256  }
 0x795   : > { %1812 = vsyncadd (%p1702_p1), %s1463_s1, 4294967040  ;;  %s2219_s26 = sld [smem:[#allocation5_spill]]  ;;  %p24_p2 = scmp.ge.s32.totalorder %s1934_s19, 4  }
 0x796   : > { %s2220_s15 = sld [smem:[#allocation6_spill]]  ;;  %s2221_s29 = smov %s1819_s30 }
 0x797   : > { %s2223_s16 = smov %s1934_s19  ;;  %26 = sbr.rel (!%p24_p2) target bundleno = 6 (0x6), region = 118 }
 0x79b   : > { %s2222_s30 = smov %s2219_s26 }
 0x79c   :  { %1468 = vsyncpa [#allocation3], 1 }
 0x79d   :  { %1470 = vsyncpa [#allocation3 + $0x1], 1 }

// kernel: _lambda_.4
= control target key start
LH: loop header
LB: loop body
LE: loop exit
PB: predicated region body
PF: predicated region fallthrough
CT: control target
= control target key end

     0   :  { %s1799_s29 = smov 0   ;;  %s2007_s0 = inlined_call_operand.vmem [shape: f32[2,16,64], index: 0, kind: input, shape index: {}]   ;;  %s2008_s1 = inlined_call_operand.vmem [shape: bf16[64,16], index: 1, kind: input, shape index: {}]   ;;  %s2009_s2 = inlined_call_operand.vmem [shape: f32[1,16], index: 2, kind: input, shape index: {}]   ;;  %s2010_s3 = inlined_call_operand.vmem [shape: f32[1,16], index: 3, kind: input, shape index: {}]   ;;  %s2011_s4 = inlined_call_operand.vmem [shape: bf16[2,16,8], index: 4, kind: input, shape index: {}]   ;;  %s2012_s5 = inlined_call_operand.vmem [shape: bf16[2,16,8], index: 5, kind: input, shape index: {}]   ;;  %s2013_s6 = inlined_call_operand.vmem [shape: bf16[2,16,8], index: 6, kind: input, shape index: {}]   ;;  %s2014_s7 = inlined_call_operand.vmem [shape: f32[16,8], index: 7, kind: input, shape index: {}]   ;;  %s2015_s8 = inlined_call_operand.vmem [shape: f32[2,16,8], index: 8, kind: input, shape index: {}]   ;;  %s2016_s9 = inlined_call_operand.vmem [shape: f32[2,1,8], index: 9, kind: input, shape index: {}]   ;;  %s2017_s10 = inlined_call_operand.vmem [shape: f32[2,1,8], index: 10, kind: input, shape index: {}]   ;;  %s2018_s11 = inlined_call_operand.vmem [shape: bf16[2,8,64], index: 11, kind: input, shape index: {}]   ;;  %s2019_s12 = inlined_call_operand.vmem [shape: f32[1,64], index: 12, kind: input, shape index: {}]   ;;  %s2020_s13 = inlined_call_operand.vmem [shape: f32[1,64], index: 13, kind: input, shape index: {}]   ;;  %s2021_s14 = inlined_call_operand.vmem [shape: f32[2,16,64], index: 14, kind: output, shape index: {}]  }
   0x1 LB: > { %s1490_s30 = sadd.s32 4294967295, %s1720_s29   ;;  %p1494_p0 = scmp.ge.s32.totalorder %s1720_s29, 1  ;;  %s1720_s29 = sphi %s1799_s29, %s24_s29  }
   0x2   : > { %p412_p1 = scmp.lt.s32.totalorder %s1720_s29, 3 }
   0x4   : > { %p413_p2 = pnand %p1494_p0, %p412_p1 }
   0x5   : > { %p458_p3 = scmp.lt.s32.totalorder (!%p413_p2), %s1490_s30, 1 }
   0x6   : > { %416 = sbr.rel (%p413_p2) target bundleno = 1909 (0x775), region = 76 }
   0xb   : > { %v1688_v0 = vld [vmem:[%s2008_s1 + $0x18] sm:$0xff]   ;;  %v1722_v1 = vmov 0.0   ;;  %v1689_v2 = vld [vmem:[%s2008_s1 + $0x10] sm:$0xff]   ;;  %vm1723_vm0 = vmmov 0   ;;  %s2023_s30 = smov (!%p458_p3, %s1490_s30), 1  ;;  %v1690_v3 = vld [vmem:[%s2008_s1 + $0x8] sm:$0xff]  }
   0xc   : > { %1580 = vmatprep.subr.bf16.mxu0 %v1722_v1  ;;  %1592 = vmatprep.subr.bf16.mxu1 %v1722_v1  ;;  %s1543_s21 = sshll.u32 %s2023_s30, 4  ;;  %v1691_v4 = vld [vmem:[%s2008_s1] sm:$0xff]   ;;  %vm504_vm1 = vcmask 523264   ;;  %vm570_vm2 = vcmask 130048   ;;  %v583_v40 = vld [vmem:[%s2014_s7 + $0x8] sm:$0xff]  ;;  %vm736_vm3 = vcmask 64512  }
   0xd   : > { %1581 = vmatpush3.bf16.msra.mxu0 %v1688_v0  ;;  %1588 = vmatprep.mubr.msk.bf16.mxu0 %vm1723_vm0, %v1722_v1  ;;  %s462_s24 = scalar_lea.vmem %s2007_s0, %s1543_s21  ;;  %v1692_v8 = vld [vmem:[%s2011_s4] sm:$0xff]   ;;  %v853_v52 = vld [vmem:[%s2015_s8 + $0x8] sm:$0xff]  ;;  %vm1319_vm4 = vcmask 1043456   ;;  %s467_s20 = scalar_lea.vmem %s2021_s14, %s1543_s21 }
   0xe   : > { %1582 = vmatprep.subr.bf16.mxu0 %v1722_v1  ;;  %1594 = vmatprep.mubr.msk.bf16.mxu1 %vm1723_vm0, %v1722_v1  ;;  %v1835_v5 = vld [vmem:[%s462_s24] sm:$0xff]  ;;  %v1837_v6 = vld [vmem:[%s462_s24 + $0x8] sm:$0xff] }
   0xf   : > { %v471_v7 = vpack.c.bf16 %v1837_v6, %v1835_v5  ;;  %1593 = vmatpush3.bf16.msra.mxu1 %v1692_v8  ;;  %v1504_v9 = vld [vmem:[%s2009_s2] ss:$0 sm:$0xff]  ;;  %v1695_v55 = vld [vmem:[%s2011_s4 + $0x8] sm:$0xff]  }
  0x10   : > { %1598 = vmatprep.subr.bf16.mxu1 %v1722_v1  ;;  %v1505_v11 = vld [vmem:[%s2010_s3] ss:$0 sm:$0xff]  ;;  %v1696_v57 = vld [vmem:[%s2012_s5 + $0x8] sm:$0xff]  }
  0x11   : > { %1583 = vmatpush3.bf16.msra.mxu0 %v1689_v2  ;;  %v1693_v21 = vld [vmem:[%s2013_s6] sm:$0xff]  }
  0x12   : > { %1584 = vmatprep.subr.bf16.mxu0 %v1722_v1  ;;  %v1694_v26 = vld [vmem:[%s2012_s5] sm:$0xff]  }
  0x13   : > { %v582_v38 = vld [vmem:[%s2014_s7] sm:$0xff] }
  0x14   : > { %v852_v53 = vld [vmem:[%s2015_s8] sm:$0xff] }
  0x15   : > { %1585 = vmatpush3.bf16.msra.mxu0 %v1690_v3 }
  0x16   : > { %1586 = vmatprep.subr.bf16.mxu0 %v1722_v1 }
  0x19   : > { %1587 = vmatpush3.bf16.msra.mxu0 %v1691_v4 }
  0x1a   : > { %1610 = vmatprep.subr.bf16.mxu0 %v1722_v1 }
  0x1c   : > { %1589 = vmatmul.mubr.msk.bf16.vlgmr.msra.gmra.mxu0 %vm504_vm1, %v471_v7 }
  0x1d   : > { %1612 = vmatprep.mubr.msk.bf16.mxu0 %vm1723_vm0, %v1722_v1 }
  0xdc   : > { %v542_v10 = vpop.f32.mrf.mxu0 }
  0xdd   : > { %v556_v12 = vmul.f32 %v1504_v9, %v542_v10 }
  0xde   : > { %v1590_v13 = vpop.f32.mrf.mxu0 }
  0xdf   : > { %v565_v14 = vadd.f32 %v1505_v11, %v556_v12 }
  0xe0   : > { %v545_v15 = vpop.f32.mrf.mxu0 }
  0xe1   : > { %v557_v16 = vmul.f32 %v1504_v9, %v545_v15  ;;  %v567_v18 = vmax.f32 %v565_v14, 0.0 }
  0xe2   : > { %v1591_v17 = vpop.f32.mrf.mxu0 }
  0xe3   : > { %v566_v19 = vadd.f32 %v1505_v11, %v557_v16  ;;  %v571_v22 = vsel %vm570_vm2, %v567_v18, 0.0 }
  0xe5   : > { %v568_v20 = vmax.f32 %v566_v19, 0.0 }
  0xe7   : > { %v1860_v23 = vpack.c.bf16 %v568_v20, %v567_v18  ;;  %v572_v24 = vsel %vm570_vm2, %v568_v20, 0.0 }
  0xe8   : > { %v573_v25 = vadd.f32 %v572_v24, %v571_v22 }
  0xe9   : > { %1595 = vmatmul.mubr.msk.bf16.vlgmr.msra.gmra.mxu1 %vm570_vm2, %v1860_v23 }
  0xea   : > { %1599 = vmatpush3.bf16.msra.mxu1 %v1693_v21  ;;  %1600 = vmatprep.mubr.msk.bf16.mxu1 %vm1723_vm0, %v1722_v1  ;;  %v574_v36 = vrot.slane %v573_v25, 4 }
  0xeb   : > { %1604 = vmatprep.subr.bf16.mxu1 %v1722_v1 }
  0xec   : > { %v575_v41 = vadd.f32 %v574_v36, %v573_v25 }
  0xee   : > { %v576_v46 = vrot.slane %v575_v41, 2 }
  0xf0   : > { %v577_v49 = vadd.f32 %v576_v46, %v575_v41 }
  0xf1   : > { %1601 = vmatmul.mubr.msk.bf16.vlgmr.msra.gmra.mxu1 %vm570_vm2, %v1860_v23 }
  0xf2   : > { %1605 = vmatpush3.bf16.msra.mxu1 %v1694_v26  ;;  %1606 = vmatprep.mubr.msk.bf16.mxu1 %vm1723_vm0, %v1722_v1  ;;  %v578_v50 = vrot.slane %v577_v49, 1 }
  0xf3   : > { %1616 = vmatprep.subr.bf16.mxu1 %v1722_v1 }
  0xf4   : > { %v579_v54 = vadd.f32 %v578_v50, %v577_v49 }
  0xf6   : > { %v1903_v56 = vmul.f32 0.0625, %v579_v54 }
  0xf9   : > { %1607 = vmatmul.mubr.msk.bf16.vlgmr.msra.gmra.mxu1 %vm570_vm2, %v1860_v23 }
  0xfa   : > { %1618 = vmatprep.mubr.msk.bf16.mxu1 %vm1723_vm0, %v1722_v1 }
 0x1a9   : > { %v629_v27 = vpop.f32.mrf.mxu1 }
 0x1ab   : > { %v1596_v28 = vpop.f32.mrf.mxu1 }
 0x1ad   : > { %v632_v29 = vpop.f32.mrf.mxu1 }
 0x1ae   : > { %v687_v51 = vpack.c.bf16 %v632_v29, %v629_v27 }
 0x1af   : > { %v1597_v30 = vpop.f32.mrf.mxu1 }
 0x1b1   : > { %v680_v31 = vpop.f32.mrf.mxu1 }
 0x1b3   : > { %v1602_v32 = vpop.f32.mrf.mxu1 }
 0x1b5   : > { %v683_v33 = vpop.f32.mrf.mxu1 }
 0x1b6   : > { %v807_v34 = vpack.c.bf16 %v683_v33, %v680_v31 }
 0x1b7   : > { %v1603_v35 = vpop.f32.mrf.mxu1 }
 0x1b8   : > { %1617 = vmatpush3.bf16.msra.mxu1 %v807_v34  ;;  %v1697_v34 = vld [vmem:[%s2013_s6 + $0x8] sm:$0xff]  }
 0x1b9   : > { %v728_v37 = vpop.f32.mrf.mxu1  ;;  %1635 = vmatprep.subr.bf16.mxu1 %v1722_v1 }
 0x1ba   : > { %v729_v43 = vadd.f32 %v728_v37, %v582_v38  ;;  %v1531_v37 = vld [vmem:[%s2015_s8 + $0x18] sm:$0xff] }
 0x1bb   : > { %v1608_v39 = vpop.f32.mrf.mxu1 }
 0x1bc   : > { %v931_v39 = vlaneseq }
 0x1bd   : > { %v731_v42 = vpop.f32.mrf.mxu1 }
 0x1be   : > { %v732_v44 = vadd.f32 %v731_v42, %v583_v40  ;;  %v1954_v41 = vshrl.u32 %v931_v39, 7  ;;  %v929_v42 = vld [vmem:[%s2016_s9] sm:$0x1] }
 0x1bf   : > { %v1609_v45 = vpop.f32.mrf.mxu1 }
 0x1c0   : > { %v735_v47 = vpack.c.bf16 %v732_v44, %v729_v43  ;;  %v933_v44 = vsub.s32 0, %v1954_v41 }
 0x1c2   : > { %v741_v48 = vsel %vm736_vm3, %v735_v47, 0 }
 0x1c3   : > { %1611 = vmatpush3.bf16.xpose.msra.mxu0 %v741_v48  ;;  %v1515_v48 = vld [vmem:[%s2017_s10] ss:$0 sm:$0xff] }
 0x1c4   : > { %1622 = vmatprep.subr.mxu0 %v1722_v1 }
 0x1ca   : > { %1613 = vmatmul.mubr.msk.bf16.vlgmr.msra.gmra.mxu0 %vm736_vm3, %v687_v51 }
 0x1cb   : > { %1623 = vmatpush3.msra.mxu0 %v853_v52  ;;  %1626 = vmatprep.mubr.msk.f32.mxu0 %vm1723_vm0, %v1722_v1 }
 0x1cc   : > { %1624 = vmatprep.subr.mxu0 %v1722_v1 }
 0x1cd   : > { %1625 = vmatpush3.msra.mxu0 %v852_v53 }
 0x1ce   : > { %1629 = vmatprep.subr.bf16.mxu0 %v1722_v1 }
 0x1d2   : > { %1627 = vmatmul.mubr.msk.f32.vlgmr.msra.gmra.mxu0 %vm570_vm2, %v1903_v56 }
 0x1d3   : > { %1630 = vmatpush3.bf16.msra.mxu0 %v1695_v55  ;;  %1631 = vmatprep.mubr.msk.bf16.mxu0 %vm1723_vm0, %v1722_v1 }
 0x1d4   : > { %1641 = vmatprep.subr.bf16.mxu0 %v1722_v1 }
 0x1d6   : > { %1632 = vmatmul.mubr.msk.bf16.vlgmr.msra.gmra.mxu0 %vm570_vm2, %v1860_v23 }
 0x1d7   : > { %1642 = vmatpush3.bf16.msra.mxu0 %v1696_v57  ;;  %1643 = vmatprep.mubr.msk.bf16.mxu0 %vm1723_vm0, %v1722_v1 }
 0x1d8   : > { %1653 = vmatprep.subr.bf16.mxu0 %v1722_v1 }
 0x1de   : > { %1644 = vmatmul.mubr.msk.bf16.vlgmr.msra.gmra.mxu0 %vm570_vm2, %v1860_v23 }
 0x1df   : > { %1655 = vmatprep.mubr.msk.bf16.mxu0 %vm1723_vm0, %v1722_v1 }
 0x28a   : > { %v777_v58 = vpop.f32.mrf.mxu0 }
 0x28b   : > { %v784_v59 = vsel %vm570_vm2, %v777_v58, -inf }
 0x28c   : > { %785 = vmax.xlane.f32.xlu0 %v784_v59  ;;  %v1614_v60 = vpop.f32.mrf.mxu0 }
 0x28e   : > { %v780_v61 = vpop.f32.mrf.mxu0 }
 0x28f   : > { %v787_v62 = vsel %vm570_vm2, %v780_v61, -inf }
 0x290   : > { %788 = vmax.xlane.f32.xlu0 %v787_v62  ;;  %v1615_v63 = vpop.f32.mrf.mxu0 }
 0x292   : > { %v923_v0 = vpop.f32.mrf.mxu0 }
 0x294   : > { %v1628_v2 = vpop.f32.mrf.mxu0 }
 0x296   : > { %v993_v3 = vpop.f32.mrf.mxu0 }
 0x298   : > { %v1633_v4 = vpop.f32.mrf.mxu0 }
 0x29a   : > { %v996_v7 = vpop.f32.mrf.mxu0 }
 0x29b   : > { %v1053_v8 = vpack.c.bf16 %v996_v7, %v993_v3 }
 0x29c   : > { %v1634_v9 = vpop.f32.mrf.mxu0 }
 0x29e   : > { %v1094_v10 = vpop.f32.mrf.mxu0 }
 0x29f   : > { %v1095_v13 = vadd.f32 %v1094_v10, %v582_v38  ;;  %v1530_v38 = vld [vmem:[%s2015_s8 + $0x10] sm:$0xff] }
 0x2a0   : > { %v1645_v11 = vpop.f32.mrf.mxu0 }
 0x2a2   : > { %v1097_v12 = vpop.f32.mrf.mxu0 }
 0x2a3   : > { %v1098_v14 = vadd.f32 %v1097_v12, %v583_v40 }
 0x2a4   : > { %v1646_v15 = vpop.f32.mrf.mxu0 }
 0x2a5   : > { %v1101_v16 = vpack.c.bf16 %v1098_v14, %v1095_v13 }
 0x2a7   : > { %v1106_v36 = vsel %vm736_vm3, %v1101_v16, 0 }
 0x315   : > { %v786_v17 = vpop.xlane.xlu0 %785 }
 0x316   : > { %v790_v18 = vsub.f32 %v777_v58, %v786_v17 }
 0x318   : > { %v792_v19 = vmul.f32 1.442695, %v790_v18 }
 0x319   : > { %v789_v20 = vpop.xlane.xlu0 %788 }
 0x31a   : > { %1698 = vpow2.f32 %v792_v19  ;;  %v791_v21 = vsub.f32 %v780_v61, %v789_v20 }
 0x31c   : > { %v794_v22 = vmul.f32 1.442695, %v791_v21 }
 0x31e   : > { %1700 = vpow2.f32 %v794_v22 }
 0x327   : > { %v1699_v24 = vpop.eup %1698 }
 0x328   : > { %v796_v25 = vsel %vm570_vm2, %v1699_v24, 0.0 }
 0x329   : > { %797 = vadd.xlane.f32.xlu1 %v796_v25  ;;  %v949_v25 = vld [vmem:[%s2018_s11] sm:$0xf] }
 0x32b   : > { %v1701_v26 = vpop.eup %1700 }
 0x32c   : > { %v799_v27 = vsel %vm570_vm2, %v1701_v26, 0.0 }
 0x32d   : > { %800 = vadd.xlane.f32.xlu1 %v799_v27 }
 0x3b2   : > { %v798_v28 = vpop.xlane.xlu1 %797 }
 0x3b3   : > { %1702 = vrcp.f32 %v798_v28 }
 0x3b6   : > { %v801_v29 = vpop.xlane.xlu1 %800 }
 0x3b7   : > { %1704 = vrcp.f32 %v801_v29  ;;  %v1368_v29 = vsel %vm1319_vm4, %v949_v25, 0 }
 0x3c0   : > { %v1703_v30 = vpop.eup %1702 }
 0x3c1   : > { %v804_v32 = vmul.f32 %v1703_v30, %v1699_v24  ;;  %v1536_v30 = vld [vmem:[%s2018_s11 + $0x4] sm:$0xf] }
 0x3c4   : > { %v1705_v31 = vpop.eup %1704 }
 0x3c5   : > { %v805_v33 = vmul.f32 %v1705_v31, %v1701_v26  ;;  %v1321_v31 = vsel %vm1319_vm4, %v1536_v30, 0 }
 0x3c7   : > { %v806_v35 = vpack.c.bf16 %v805_v33, %v804_v32 }
 0x3c9   : > { %1619 = vmatmul.mubr.msk.bf16.vlgmr.msra.gmra.mxu1 %vm570_vm2, %v806_v35 }
 0x3ca   : > { %1636 = vmatpush3.bf16.msra.mxu1 %v1697_v34  ;;  %1637 = vmatprep.mubr.msk.bf16.mxu1 %vm1723_vm0, %v1722_v1  ;;  %v1533_v34 = vld [vmem:[%s2016_s9 + $0x1] sm:$0x1] }
 0x3cb   : > { %1647 = vmatprep.subr.bf16.mxu1 %v1722_v1 }
 0x3d1   : > { %1638 = vmatmul.mubr.msk.bf16.vlgmr.msra.gmra.mxu1 %vm570_vm2, %v1860_v23  ;;  %v927_v23 = vmul.f32 0.5, %v923_v0 }
 0x3d2   : > { %1648 = vmatpush3.bf16.xpose.msra.mxu1 %v1106_v36  ;;  %1649 = vmatprep.mubr.msk.bf16.mxu1 %vm1723_vm0, %v1722_v1 }
 0x3d3   : > { %1659 = vmatprep.subr.mxu1 %v1722_v1  ;;  %v928_v40 = vadd.f32 0.5, %v927_v23 }
 0x3d5   : > { %v930_v43 = vmul.f32 %v929_v42, %v928_v40 }
 0x3d7   : > { %v934_v45 = vrot.slane %v930_v43, %v933_v44 }
 0x3d9   : > { %1650 = vmatmul.mubr.msk.bf16.vlgmr.msra.gmra.mxu1 %vm736_vm3, %v1053_v8 }
 0x3da   : > { %1660 = vmatpush3.msra.mxu1 %v1531_v37  ;;  %1663 = vmatprep.mubr.msk.f32.mxu1 %vm1723_vm0, %v1722_v1 }
 0x3db   : > { %1661 = vmatprep.subr.mxu1 %v1722_v1 }
 0x3dc   : > { %1662 = vmatpush3.msra.mxu1 %v1530_v38  ;;  %v1535_v38 = vld [vmem:[%s2017_s10 + $0x1] ss:$0 sm:$0xff] }
 0x3dd   : > { %1666 = vmatprep.subr.bf16.mxu1 %v1722_v1 }
 0x3e1   : > { %1664 = vmatmul.mubr.msk.f32.vlgmr.msra.gmra.mxu1 %vm570_vm2, %v1903_v56 }
 0x3e2   : > { %1668 = vmatprep.mubr.msk.bf16.mxu1 %vm1723_vm0, %v1722_v1  ;;  %1667 = vmatpush3.bf16.msra.mxu1 %v1321_v31 }
 0x489   : > { %v845_v46 = vpop.f32.mrf.mxu1 }
 0x48a   : > { %v935_v47 = vmul.f32 %v934_v45, %v845_v46 }
 0x48b   : > { %v1620_v49 = vpop.f32.mrf.mxu1 }
 0x48c   : > { %v944_v51 = vadd.f32 %v1515_v48, %v935_v47 }
 0x48d   : > { %v848_v50 = vpop.f32.mrf.mxu1 }
 0x48e   : > { %v936_v52 = vmul.f32 %v934_v45, %v848_v50  ;;  %v946_v56 = vmax.f32 %v944_v51, 0.0 }
 0x48f   : > { %v1621_v53 = vpop.f32.mrf.mxu1 }
 0x490   : > { %v945_v54 = vadd.f32 %v1515_v48, %v936_v52  ;;  %v1539_v52 = vld [vmem:[%s2019_s12] ss:$0 sm:$0xff] }
 0x491   : > { %v1046_v55 = vpop.f32.mrf.mxu1 }
 0x492   : > { %v947_v57 = vmax.f32 %v945_v54, 0.0  ;;  %v1540_v54 = vld [vmem:[%s2020_s13] ss:$0 sm:$0xff] }
 0x493   : > { %v1639_v58 = vpop.f32.mrf.mxu1 }
 0x494   : > { %v948_v59 = vpack.c.bf16 %v947_v57, %v946_v56 }
 0x495   : > { %v1049_v60 = vpop.f32.mrf.mxu1 }
 0x496   : > { %v1172_v61 = vpack.c.bf16 %v1049_v60, %v1046_v55 }
 0x497   : > { %v1640_v62 = vpop.f32.mrf.mxu1 }
 0x498   : > { %1654 = vmatpush3.bf16.msra.mxu0 %v1172_v61 }
 0x499   : > { %v1142_v63 = vpop.f32.mrf.mxu1  ;;  %1672 = vmatprep.subr.bf16.mxu0 %v1722_v1 }
 0x49a   : > { %v1149_v0 = vsel %vm570_vm2, %v1142_v63, -inf }
 0x49b   : > { %1150 = vmax.xlane.f32.xlu0 %v1149_v0  ;;  %v1651_v2 = vpop.f32.mrf.mxu1 }
 0x49d   : > { %v1145_v3 = vpop.f32.mrf.mxu1 }
 0x49e   : > { %v1152_v4 = vsel %vm570_vm2, %v1145_v3, -inf }
 0x49f   : > { %1153 = vmax.xlane.f32.xlu1 %v1152_v4  ;;  %v1652_v7 = vpop.f32.mrf.mxu1 }
 0x4a1   : > { %v1286_v8 = vpop.f32.mrf.mxu1 }
 0x4a2   : > { %v1290_v32 = vmul.f32 0.5, %v1286_v8 }
 0x4a3   : > { %v1665_v9 = vpop.f32.mrf.mxu1 }
 0x4a4   : > { %v1291_v33 = vadd.f32 0.5, %v1290_v32 }
 0x4a6   : > { %v1294_v35 = vmul.f32 %v1533_v34, %v1291_v33 }
 0x4a8   : > { %v1298_v36 = vrot.slane %v1294_v35, %v933_v44 }
 0x524   : > { %v1151_v10 = vpop.xlane.xlu0 %1150 }
 0x525   : > { %v1155_v11 = vsub.f32 %v1142_v63, %v1151_v10 }
 0x527   : > { %v1157_v12 = vmul.f32 1.442695, %v1155_v11 }
 0x528   : > { %v1154_v13 = vpop.xlane.xlu1 %1153 }
 0x529   : > { %1706 = vpow2.f32 %v1157_v12  ;;  %v1156_v14 = vsub.f32 %v1145_v3, %v1154_v13 }
 0x52b   : > { %v1159_v15 = vmul.f32 1.442695, %v1156_v14 }
 0x52d   : > { %1708 = vpow2.f32 %v1159_v15 }
 0x536   : > { %v1707_v16 = vpop.eup %1706 }
 0x537   : > { %v1161_v17 = vsel %vm570_vm2, %v1707_v16, 0.0 }
 0x538   : > { %1162 = vadd.xlane.f32.xlu0 %v1161_v17 }
 0x53a   : > { %v1709_v18 = vpop.eup %1708 }
 0x53b   : > { %v1164_v19 = vsel %vm570_vm2, %v1709_v18, 0.0 }
 0x53c   : > { %1165 = vadd.xlane.f32.xlu1 %v1164_v19 }
 0x5c1   : > { %v1163_v20 = vpop.xlane.xlu0 %1162 }
 0x5c2   : > { %1710 = vrcp.f32 %v1163_v20 }
 0x5c5   : > { %v1166_v21 = vpop.xlane.xlu1 %1165 }
 0x5c6   : > { %1712 = vrcp.f32 %v1166_v21 }
 0x5cf   : > { %v1711_v22 = vpop.eup %1710 }
 0x5d0   : > { %v1169_v26 = vmul.f32 %v1711_v22, %v1707_v16 }
 0x5d3   : > { %v1713_v24 = vpop.eup %1712 }
 0x5d4   : > { %v1170_v27 = vmul.f32 %v1713_v24, %v1709_v18 }
 0x5d6   : > { %v1171_v28 = vpack.c.bf16 %v1170_v27, %v1169_v26 }
 0x5d8   : > { %1656 = vmatmul.mubr.msk.bf16.vlgmr.msra.gmra.mxu0 %vm570_vm2, %v1171_v28 }
 0x5d9   : > { %1673 = vmatpush3.bf16.msra.mxu0 %v1368_v29  ;;  %1674 = vmatprep.mubr.msk.bf16.mxu0 %vm1723_vm0, %v1722_v1 }
 0x5e0   : > { %1675 = vmatmul.mubr.msk.bf16.vlgmr.msra.gmra.mxu0 %vm736_vm3, %v948_v59 }
 0x698   : > { %v1210_v37 = vpop.f32.mrf.mxu0 }
 0x699   : > { %v1299_v1 = vmul.f32 %v1298_v36, %v1210_v37 }
 0x69a   : > { %v1657_v23 = vpop.f32.mrf.mxu0 }
 0x69b   : > { %v1309_v40 = vadd.f32 %v1535_v38, %v1299_v1 }
 0x69c   : > { %v1213_v39 = vpop.f32.mrf.mxu0 }
 0x69d   : > { %v1300_v42 = vmul.f32 %v1298_v36, %v1213_v39  ;;  %v1311_v47 = vmax.f32 %v1309_v40, 0.0 }
 0x69e   : > { %v1658_v43 = vpop.f32.mrf.mxu0 }
 0x69f   : > { %v1310_v45 = vadd.f32 %v1535_v38, %v1300_v42 }
 0x6a0   : > { %v1404_v46 = vpop.f32.mrf.mxu0 }
 0x6a1   : > { %v1312_v48 = vmax.f32 %v1310_v45, 0.0 }
 0x6a2   : > { %v1676_v49 = vpop.f32.mrf.mxu0 }
 0x6a3   : > { %v1313_v50 = vpack.c.bf16 %v1312_v48, %v1311_v47 }
 0x6a4   : > { %v1407_v41 = vpop.f32.mrf.mxu0 }
 0x6a5   : > { %1669 = vmatmul.mubr.msk.bf16.vlgmr.msra.gmra.mxu1 %vm736_vm3, %v1313_v50 }
 0x6a6   : > { %v1677_v44 = vpop.f32.mrf.mxu0 }
 0x765   : > { %v1357_v51 = vpop.f32.mrf.mxu1 }
 0x766   : > { %v1405_v53 = vadd.f32 %v1404_v46, %v1357_v51 }
 0x767   : > { %v1670_v55 = vpop.f32.mrf.mxu1 }
 0x768   : > { %v1418_v56 = vmul.f32 %v1539_v52, %v1405_v53 }
 0x769   : > { %v1360_v57 = vpop.f32.mrf.mxu1 }
 0x76a   : > { %v1427_v58 = vadd.f32 %v1540_v54, %v1418_v56  ;;  %v1408_v59 = vadd.f32 %v1407_v41, %v1360_v57 }
 0x76b   : > { %v1671_v60 = vpop.f32.mrf.mxu1 }
 0x76c   : > { %v1429_v61 = vadd.f32 %v1427_v58, %v1835_v5  ;;  %v1419_v62 = vmul.f32 %v1539_v52, %v1408_v59 }
 0x76e   : > { %v1431_v63 = vmax.f32 %v1429_v61, 0.0  ;;  %v1428_v0 = vadd.f32 %v1540_v54, %v1419_v62 }
 0x770   : > { %1433 = vst.msk [vmem:[%s467_s20] sm:$0xff] %vm504_vm1, %v1431_v63  ;;  %v1430_v2 = vadd.f32 %v1428_v0, %v1837_v6 }
 0x772   : > { %v1432_v3 = vmax.f32 %v1430_v2, 0.0 }
 0x774   : > { %1434 = vst.msk [vmem:[%s467_s20 + $0x8] sm:$0xff] %vm504_vm1, %v1432_v3 }
 0x775 PF: > { %s24_s29 = sadd.s32 1, %s1720_s29  }
 0x776   : > { %p21_p4 = scmp.ge.s32.totalorder %s24_s29, 4  }
 0x778   :  { %23 = sbr.rel (!%p21_p4) target bundleno = 1 (0x1), region = 113 }

// kernel: _lambda_.3
= control target key start
LH: loop header
LB: loop body
LE: loop exit
PB: predicated region body
PF: predicated region fallthrough
CT: control target
= control target key end

     0   :  { %s3404_s0 = inlined_call_operand.vmem [shape: f32[2,64,4], index: 0, kind: input, shape index: {}]   ;;  %s3405_s1 = inlined_call_operand.vmem [shape: f32[2,16,36], index: 1, kind: input, shape index: {}]   ;;  %s3406_s2 = inlined_call_operand.vmem [shape: bf16[36,64], index: 2, kind: input, shape index: {}]   ;;  %s3407_s3 = inlined_call_operand.vmem [shape: f32[1,64], index: 3, kind: input, shape index: {}]   ;;  %s3408_s4 = inlined_call_operand.vmem [shape: f32[1,64], index: 4, kind: input, shape index: {}]   ;;  %s3409_s5 = inlined_call_operand.vmem [shape: bf16[4,16], index: 5, kind: input, shape index: {}]   ;;  %s3410_s6 = inlined_call_operand.vmem [shape: f32[1,16], index: 6, kind: input, shape index: {}]   ;;  %s3411_s7 = inlined_call_operand.vmem [shape: f32[1,16], index: 7, kind: input, shape index: {}]   ;;  %s3412_s8 = inlined_call_operand.vmem [shape: bf16[2,16,8], index: 8, kind: input, shape index: {}]   ;;  %s3413_s9 = inlined_call_operand.vmem [shape: bf16[2,16,8], index: 9, kind: input, shape index: {}]   ;;  %s3414_s10 = inlined_call_operand.vmem [shape: bf16[2,16,8], index: 10, kind: input, shape index: {}]   ;;  %s3415_s11 = inlined_call_operand.vmem [shape: f32[64,8], index: 11, kind: input, shape index: {}]   ;;  %s3416_s12 = inlined_call_operand.vmem [shape: f32[2,16,8], index: 12, kind: input, shape index: {}]   ;;  %s3417_s13 = inlined_call_operand.vmem [shape: f32[16,64], index: 13, kind: input, shape index: {}]   ;;  %s3418_s14 = inlined_call_operand.vmem [shape: f32[2,1,8], index: 14, kind: input, shape index: {}]   ;;  %s3419_s15 = inlined_call_operand.vmem [shape: f32[2,1,8], index: 15, kind: input, shape index: {}]   ;;  %s3420_s16 = inlined_call_operand.vmem [shape: bf16[2,8,64], index: 16, kind: input, shape index: {}]   ;;  %s3421_s17 = inlined_call_operand.vmem [shape: f32[1,64], index: 17, kind: input, shape index: {}]   ;;  %s3422_s18 = inlined_call_operand.vmem [shape: f32[1,64], index: 18, kind: input, shape index: {}]   ;;  %s3423_s19 = inlined_call_operand.vmem [shape: f32[2,16,64], index: 19, kind: output, shape index: {}]  }
   0x1   :  { %3425 = sst [smem:[#allocation2_spill]] %s3404_s0  ;;  %s3031_s0 = smov 0  }
   0x2   :  { %3426 = sst [smem:[#allocation3_spill]] %s3405_s1 }
   0x3   :  { %3427 = sst [smem:[#allocation4_spill]] %s3406_s2 }
   0x4   :  { %3428 = sst [smem:[#allocation5_spill]] %s3407_s3 }
   0x5 LB: > { %s2420_s30 = sadd.s32 4294967295, %s2927_s0   ;;  %p2424_p0 = scmp.ge.s32.totalorder %s2927_s0, 1  ;;  %s2927_s0 = sphi %s3031_s0, %s29_s0  }
   0x6   : > { %p547_p1 = scmp.lt.s32.totalorder %s2927_s0, 3 }
   0x8   : > { %p548_p2 = pnand %p2424_p0, %p547_p1 }
   0x9   : > { %p608_p3 = scmp.lt.s32.totalorder (!%p548_p2), %s2420_s30, 1  ;;  %s3429_s23 = sld [smem:[#allocation2_spill]] (!%p548_p2) }
   0xa   : > { %551 = sbr.rel (%p548_p2) target bundleno = 2663 (0xa67), region = 96  ;;  %s3430_s20 = sld [smem:[#allocation4_spill]] (!%p548_p2) }
   0xb   : > { %s3432_s22 = sld [smem:[#allocation5_spill]] (!%p548_p2) }
   0xf   : > { %v636_v0 = vld [vmem:[%s3409_s5] sm:$0x3]  ;;  %vm650_vm0 = vcmask 1041408   ;;  %s3434_s30 = smov (!%p608_p3, %s2420_s30), 1  ;;  %vm637_vm1 = vcmask 31744   ;;  %vm761_vm2 = vcmask 130048  }
  0x10   : > { %2828 = vmatprep.subr.msk.bf16.mxu0 %vm650_vm0, %v636_v0  ;;  %v652_v1 = vsel %vm650_vm0, %v636_v0, 0  ;;  %2829 = vmatprep.subr.msk.bf16.mxu1 %vm650_vm0, %v636_v0  ;;  %s2514_s1 = sshll.u32 %s3434_s30, 6  ;;  %v2848_v14 = vld [vmem:[%s3412_s8] sm:$0xff]   ;;  %vm1034_vm3 = vcmask 64512   ;;  %vm1124_vm4 = vcmask 523264   ;;  %vm2930_vm5 = vmmov 0  }
  0x11   : > { %2619 = vmatpush3.bf16.msra.mxu0 %v652_v1  ;;  %2827 = vmatpush3.bf16.msra.mxu1 %v652_v1  ;;  %s612_s24 = scalar_lea.vmem %s3429_s23, %s2514_s1  ;;  %v2849_v15 = vld [vmem:[%s3414_s10] sm:$0xff]   ;;  %vm2146_vm6 = vcmask 1043456   ;;  %s2515_s21 = sshll.u32 %s3434_s30, 4  ;;  %vm2279_vm7 = vcmask 293888  }
  0x12   : > { %v624_v2 = vld [vmem:[%s612_s24] sm:$0xff]  ;;  %v625_v3 = vld [vmem:[%s612_s24 + $0x8] sm:$0xff]  ;;  %v626_v4 = vld [vmem:[%s612_s24 + $0x10] sm:$0xff]  ;;  %2628 = vmatprep.subr.bf16.mxu1 %v2848_v14  ;;  %2638 = vmatprep.subr.bf16.mxu0 %v2849_v15  ;;  %s622_s27 = scalar_lea.vmem %s3423_s19, %s2515_s21 }
  0x13   : > { %v632_v5 = vpack.c.bf16 %v625_v3, %v624_v2  ;;  %v627_v6 = vld [vmem:[%s612_s24 + $0x18] sm:$0xff]  ;;  %v628_v7 = vld [vmem:[%s612_s24 + $0x20] sm:$0xff]  ;;  %v629_v8 = vld [vmem:[%s612_s24 + $0x28] sm:$0xff] }
  0x14   : > { %v633_v9 = vpack.c.bf16 %v627_v6, %v626_v4  ;;  %v634_v10 = vpack.c.bf16 %v629_v8, %v628_v7  ;;  %v630_v11 = vld [vmem:[%s612_s24 + $0x30] sm:$0xff]  ;;  %v631_v12 = vld [vmem:[%s612_s24 + $0x38] sm:$0xff]  ;;  %v2850_v16 = vld [vmem:[%s3413_s9] sm:$0xff]   ;;  %s3431_s24 = sld [smem:[#allocation3_spill]] }
  0x15   : > { %2620 = vmatprep.mubr.msk.bf16.mxu0 %vm637_vm1, %v632_v5  ;;  %v635_v13 = vpack.c.bf16 %v631_v12, %v630_v11  ;;  %v2435_v18 = vld [vmem:[%s3410_s6] ss:$0 sm:$0xff] }
  0x16   : > { %2621 = vmatmul.mubr.msk.bf16.vlgmr.msra.gmra.mxu0 %vm637_vm1, %v633_v9  ;;  %2624 = vmatprep.mubr.msk.bf16.mxu1 %vm637_vm1, %v634_v10  ;;  %v2436_v24 = vld [vmem:[%s3411_s7] ss:$0 sm:$0xff] }
  0x17   : > { %2625 = vmatmul.mubr.msk.bf16.vlgmr.msra.gmra.mxu1 %vm637_vm1, %v635_v13  ;;  %2639 = vmatpush3.bf16.msra.mxu0 %v2849_v15 }
  0x18   : > { %2629 = vmatpush3.bf16.msra.mxu1 %v2848_v14 }
  0x19   : > { %2648 = vmatprep.subr.bf16.mxu1 %v2850_v16 }
  0x1a   : > { %s617_s25 = scalar_lea.vmem %s3431_s24, %s2515_s21 }
  0xd6   : > { %v2622_v17 = vpop.f32.mrf.mxu0 }
  0xd7   : > { %v2626_v19 = vpop.f32.mrf.mxu1  ;;  %v728_v21 = vmul.f32 %v2622_v17, %v2435_v18 }
  0xd8   : > { %v688_v20 = vpop.f32.mrf.mxu0  ;;  %v732_v38 = vmul.f32 %v2626_v19, %v2435_v18 }
  0xd9   : > { %v726_v22 = vmul.f32 %v2435_v18, %v688_v20  ;;  %v704_v23 = vpop.f32.mrf.mxu1  ;;  %v743_v32 = vadd.f32 %v2436_v24, %v728_v21 }
  0xda   : > { %v2623_v25 = vpop.f32.mrf.mxu0  ;;  %v730_v26 = vmul.f32 %v2435_v18, %v704_v23  ;;  %v747_v48 = vadd.f32 %v2436_v24, %v732_v38 }
  0xdb   : > { %v741_v27 = vadd.f32 %v2436_v24, %v726_v22  ;;  %v729_v28 = vmul.f32 %v2623_v25, %v2435_v18  ;;  %v2627_v29 = vpop.f32.mrf.mxu1  ;;  %v751_v44 = vmax.f32 %v743_v32, 0.0  ;;  %v3122_v32 = vld [vmem:[%s3415_s11 + $0x30] sm:$0xff] }
  0xdc   : > { %v745_v30 = vadd.f32 %v2436_v24, %v730_v26  ;;  %v691_v31 = vpop.f32.mrf.mxu0  ;;  %v733_v42 = vmul.f32 %v2627_v29, %v2435_v18  ;;  %v755_v58 = vmax.f32 %v747_v48, 0.0 }
  0xdd   : > { %v744_v33 = vadd.f32 %v2436_v24, %v729_v28  ;;  %v727_v34 = vmul.f32 %v2435_v18, %v691_v31  ;;  %v707_v35 = vpop.f32.mrf.mxu1  ;;  %v749_v37 = vmax.f32 %v741_v27, 0.0  ;;  %v765_v55 = vsel %vm761_vm2, %v751_v44, 0.0 }
  0xde   : > { %v731_v36 = vmul.f32 %v2435_v18, %v707_v35  ;;  %v753_v41 = vmax.f32 %v745_v30, 0.0  ;;  %v748_v53 = vadd.f32 %v2436_v24, %v733_v42  ;;  %v773_v2 = vsel %vm761_vm2, %v755_v58, 0.0  ;;  %v3132_v35 = vld [vmem:[%s3415_s11 + $0x20] sm:$0xff] }
  0xdf   : > { %v742_v39 = vadd.f32 %v2436_v24, %v727_v34  ;;  %v752_v40 = vmax.f32 %v744_v33, 0.0  ;;  %v762_v47 = vsel %vm761_vm2, %v749_v37, 0.0  ;;  %v3127_v34 = vld [vmem:[%s3415_s11 + $0x38] sm:$0xff] }
  0xe0   : > { %v746_v43 = vadd.f32 %v2436_v24, %v731_v36  ;;  %v756_v59 = vmax.f32 %v748_v53, 0.0  ;;  %v769_v61 = vsel %vm761_vm2, %v753_v41, 0.0 }
  0xe1   : > { %v750_v45 = vmax.f32 %v742_v39, 0.0  ;;  %v3070_v51 = vpack.c.bf16 %v752_v40, %v751_v44  ;;  %v767_v57 = vsel %vm761_vm2, %v752_v40, 0.0 }
  0xe2   : > { %v754_v46 = vmax.f32 %v746_v43, 0.0  ;;  %v3090_v0 = vpack.c.bf16 %v756_v59, %v755_v58  ;;  %v775_v4 = vsel %vm761_vm2, %v756_v59, 0.0 }
  0xe3   : > { %v3067_v49 = vpack.c.bf16 %v750_v45, %v749_v37  ;;  %v763_v50 = vsel %vm761_vm2, %v750_v45, 0.0  ;;  %v3137_v37 = vld [vmem:[%s3415_s11 + $0x28] sm:$0xff] }
  0xe4   : > { %v764_v52 = vadd.f32 %v763_v50, %v762_v47  ;;  %v3072_v54 = vpack.c.bf16 %v754_v46, %v753_v41  ;;  %v771_v63 = vsel %vm761_vm2, %v754_v46, 0.0  ;;  %v3148_v46 = vld [vmem:[%s3415_s11 + $0x18] sm:$0xff]  ;;  %v3154_v47 = vld [vmem:[%s3415_s11 + $0x10] sm:$0xff] }
  0xe5   : > { %2630 = vmatprep.mubr.msk.bf16.mxu1 %vm761_vm2, %v3067_v49  ;;  %2640 = vmatprep.mubr.msk.bf16.mxu0 %vm761_vm2, %v3067_v49 }
  0xe6   : > { %v766_v56 = vadd.f32 %v765_v55, %v764_v52  ;;  %2631 = vmatmul.mubr.msk.bf16.vlgmr.msra.gmra.mxu1 %vm761_vm2, %v3070_v51  ;;  %2641 = vmatmul.mubr.msk.bf16.vlgmr.msra.gmra.mxu0 %vm761_vm2, %v3070_v51  ;;  %v3162_v55 = vld [vmem:[%s3415_s11 + $0x8] sm:$0xff] }
  0xe7   : > { %2634 = vmatprep.mubr.msk.bf16.mxu1 %vm761_vm2, %v3072_v54  ;;  %2644 = vmatprep.mubr.msk.bf16.mxu0 %vm761_vm2, %v3072_v54 }
  0xe8   : > { %v768_v60 = vadd.f32 %v767_v57, %v766_v56  ;;  %2649 = vmatpush3.bf16.msra.mxu1 %v2850_v16  ;;  %v3168_v56 = vld [vmem:[%s3415_s11] sm:$0xff] }
  0xea   : > { %v770_v62 = vadd.f32 %v769_v61, %v768_v60  ;;  %v2851_v61 = vld [vmem:[%s3414_s10 + $0x8] sm:$0xff]  }
  0xec   : > { %v772_v1 = vadd.f32 %v771_v63, %v770_v62 }
  0xee   : > { %v774_v3 = vadd.f32 %v773_v2, %v772_v1  ;;  %2635 = vmatmul.mubr.msk.bf16.gmra.mxu1 %vm761_vm2, %v3090_v0  ;;  %2645 = vmatmul.mubr.msk.bf16.gmra.mxu0 %vm761_vm2, %v3090_v0 }
  0xef   : > { %2650 = vmatprep.mubr.msk.bf16.mxu1 %vm761_vm2, %v3067_v49 }
  0xf0   : > { %v3100_v5 = vadd.f32 %v775_v4, %v774_v3 }
  0xf6   : > { %2651 = vmatmul.mubr.msk.bf16.vlgmr.msra.gmra.mxu1 %vm761_vm2, %v3070_v51 }
  0xf7   : > { %2654 = vmatprep.mubr.msk.bf16.mxu1 %vm761_vm2, %v3072_v54 }
  0xfe   : > { %2655 = vmatmul.mubr.msk.bf16.gmra.mxu1 %vm761_vm2, %v3090_v0 }
 0x1a6   : > { %v3108_v6 = vpop.f32.mrf.mxu1  ;;  %v2642_v7 = vpop.f32.mrf.mxu0 }
 0x1a8   : > { %v849_v8 = vpop.f32.mrf.mxu1  ;;  %v924_v9 = vpop.f32.mrf.mxu0 }
 0x1aa   : > { %v3110_v10 = vpop.f32.mrf.mxu1  ;;  %v2643_v11 = vpop.f32.mrf.mxu0 }
 0x1ab   : > { %v1218_v27 = vpack.c.bf16 %v2643_v11, %v2642_v7  ;;  %v956_v63 = vpack.c.bf16 %v3110_v10, %v3108_v6 }
 0x1ac   : > { %v852_v12 = vpop.f32.mrf.mxu1  ;;  %v927_v13 = vpop.f32.mrf.mxu0 }
 0x1ad   : > { %v955_v14 = vpack.c.bf16 %v852_v12, %v849_v8  ;;  %v1217_v30 = vpack.c.bf16 %v927_v13, %v924_v9 }
 0x1ae   : > { %v3112_v15 = vpop.f32.mrf.mxu1  ;;  %v2646_v16 = vpop.f32.mrf.mxu0 }
 0x1af   : > { %2666 = vmatprep.mubr.msk.bf16.mxu0 %vm1034_vm3, %v955_v14 }
 0x1b0   : > { %v3115_v17 = vpop.f32.mrf.mxu1  ;;  %v940_v18 = vpop.f32.mrf.mxu0 }
 0x1b2   : > { %v3117_v19 = vpop.f32.mrf.mxu1  ;;  %v2647_v20 = vpop.f32.mrf.mxu0 }
 0x1b3   : > { %v1220_v21 = vpack.c.bf16 %v2647_v20, %v2646_v16  ;;  %v958_v2 = vpack.c.bf16 %v3117_v19, %v3112_v15 }
 0x1b4   : > { %v868_v22 = vpop.f32.mrf.mxu1  ;;  %v943_v23 = vpop.f32.mrf.mxu0 }
 0x1b5   : > { %v1219_v24 = vpack.c.bf16 %v943_v23, %v940_v18  ;;  %2674 = vmatprep.subr.bf16.mxu1 %v1220_v21  ;;  %v957_v1 = vpack.c.bf16 %v868_v22, %v3115_v17 }
 0x1b6   : > { %v2652_v25 = vpop.f32.mrf.mxu1  ;;  %2675 = vmatpush3.bf16.msra.mxu1 %v1220_v21 }
 0x1b7   : > { %2676 = vmatprep.subr.bf16.mxu1 %v1219_v24  ;;  %v1008_v50 = vadd.f32 %v2652_v25, %v3154_v47 }
 0x1b8   : > { %v999_v26 = vpop.f32.mrf.mxu1 }
 0x1b9   : > { %v1000_v58 = vadd.f32 %v999_v26, %v3168_v56 }
 0x1ba   : > { %v2653_v28 = vpop.f32.mrf.mxu1  ;;  %2677 = vmatpush3.bf16.msra.mxu1 %v1219_v24 }
 0x1bb   : > { %2678 = vmatprep.subr.bf16.mxu1 %v1218_v27  ;;  %v1011_v48 = vadd.f32 %v2653_v28, %v3148_v46 }
 0x1bc   : > { %v1002_v29 = vpop.f32.mrf.mxu1 }
 0x1bd   : > { %v1031_v52 = vpack.c.bf16 %v1011_v48, %v1008_v50  ;;  %v1003_v57 = vadd.f32 %v1002_v29, %v3162_v55 }
 0x1be   : > { %v2656_v31 = vpop.f32.mrf.mxu1  ;;  %2679 = vmatpush3.bf16.msra.mxu1 %v1218_v27 }
 0x1bf   : > { %2680 = vmatprep.subr.bf16.mxu1 %v1217_v30  ;;  %v1024_v38 = vadd.f32 %v2656_v31, %v3122_v32  ;;  %v1030_v59 = vpack.c.bf16 %v1003_v57, %v1000_v58  ;;  %v1051_v60 = vsel %vm1034_vm3, %v1031_v52, 0 }
 0x1c0   : > { %v1015_v33 = vpop.f32.mrf.mxu1 }
 0x1c1   : > { %v1016_v41 = vadd.f32 %v1015_v33, %v3132_v35  ;;  %v1048_v62 = vsel %vm1034_vm3, %v1030_v59, 0 }
 0x1c2   : > { %v2657_v36 = vpop.f32.mrf.mxu1  ;;  %2681 = vmatpush3.bf16.msra.mxu1 %v1217_v30 }
 0x1c3   : > { %v1027_v39 = vadd.f32 %v2657_v36, %v3127_v34 }
 0x1c4   : > { %v1018_v40 = vpop.f32.mrf.mxu1 }
 0x1c5   : > { %v1033_v42 = vpack.c.bf16 %v1027_v39, %v1024_v38  ;;  %v1019_v43 = vadd.f32 %v1018_v40, %v3137_v37 }
 0x1c7   : > { %v1032_v44 = vpack.c.bf16 %v1019_v43, %v1016_v41  ;;  %2830 = vmatprep.subr.msk.bf16.mxu0 %vm1034_vm3, %v1033_v42  ;;  %v1057_v45 = vsel %vm1034_vm3, %v1033_v42, 0 }
 0x1c8   : > { %2659 = vmatpush3.bf16.xpose.msra.mxu0 %v1057_v45 }
 0x1c9   : > { %2831 = vmatprep.subr.msk.bf16.mxu0 %vm1034_vm3, %v1032_v44  ;;  %v1054_v53 = vsel %vm1034_vm3, %v1032_v44, 0 }
 0x1d0   : > { %2661 = vmatpush3.bf16.xpose.msra.mxu0 %v1054_v53 }
 0x1d1   : > { %2832 = vmatprep.subr.msk.bf16.mxu0 %vm1034_vm3, %v1031_v52 }
 0x1d8   : > { %2663 = vmatpush3.bf16.xpose.msra.mxu0 %v1051_v60 }
 0x1d9   : > { %2833 = vmatprep.subr.msk.bf16.mxu0 %vm1034_vm3, %v1030_v59 }
 0x1e0   : > { %2665 = vmatpush3.bf16.xpose.msra.mxu0 %v1048_v62 }
 0x1e1   : > { %2726 = vmatprep.subr.bf16.mxu0 %v2851_v61 }
 0x1e7   : > { %2667 = vmatmul.mubr.msk.bf16.vlgmr.msra.gmra.mxu0 %vm1034_vm3, %v956_v63 }
 0x1e8   : > { %2670 = vmatprep.mubr.msk.bf16.mxu0 %vm1034_vm3, %v957_v1  ;;  %2727 = vmatpush3.bf16.msra.mxu0 %v2851_v61 }
 0x1ef   : > { %2671 = vmatmul.mubr.msk.bf16.gmra.mxu0 %vm1034_vm3, %v958_v2 }
 0x1f0   : > { %2728 = vmatprep.mubr.msk.bf16.mxu0 %vm761_vm2, %v3067_v49 }
 0x1f7   : > { %2729 = vmatmul.mubr.msk.bf16.vlgmr.msra.gmra.mxu0 %vm761_vm2, %v3070_v51 }
 0x1f8   : > { %2732 = vmatprep.mubr.msk.bf16.mxu0 %vm761_vm2, %v3072_v54 }
 0x1ff   : > { %2733 = vmatmul.mubr.msk.bf16.gmra.mxu0 %vm761_vm2, %v3090_v0 }
 0x2a7   : > { %v2668_v3 = vpop.f32.mrf.mxu0 }
 0x2a8   : > { %v1131_v4 = vsel %vm1124_vm4, %v2668_v3, -inf }
 0x2a9   : > { %1132 = vmax.xlane.f32.xlu1 %v1131_v4  ;;  %v1093_v6 = vpop.f32.mrf.mxu0 }
 0x2aa   : > { %v1125_v7 = vsel %vm1124_vm4, %v1093_v6, -inf }
 0x2ab   : > { %1126 = vmax.xlane.f32.xlu0 %v1125_v7  ;;  %v2669_v8 = vpop.f32.mrf.mxu0 }
 0x2ac   : > { %v1134_v9 = vsel %vm1124_vm4, %v2669_v8, -inf }
 0x2ad   : > { %1135 = vmax.xlane.f32.xlu1 %v1134_v9  ;;  %v1096_v10 = vpop.f32.mrf.mxu0 }
 0x2ae   : > { %v1128_v11 = vsel %vm1124_vm4, %v1096_v10, -inf }
 0x2af   : > { %1129 = vmax.xlane.f32.xlu0 %v1128_v11  ;;  %v2672_v12 = vpop.f32.mrf.mxu0 }
 0x2b0   : > { %v1143_v17 = vsel %vm1124_vm4, %v2672_v12, -inf }
 0x2b1   : > { %v1109_v13 = vpop.f32.mrf.mxu0 }
 0x2b2   : > { %v1137_v14 = vsel %vm1124_vm4, %v1109_v13, -inf }
 0x2b3   : > { %1138 = vmax.xlane.f32.xlu0 %v1137_v14  ;;  %v2673_v15 = vpop.f32.mrf.mxu0 }
 0x2b4   : > { %v1146_v19 = vsel %vm1124_vm4, %v2673_v15, -inf }
 0x2b5   : > { %v1112_v16 = vpop.f32.mrf.mxu0 }
 0x2b6   : > { %v1140_v18 = vsel %vm1124_vm4, %v1112_v16, -inf }
 0x2b7   : > { %1144 = vmax.xlane.f32.xlu0 %v1143_v17  ;;  %1141 = vmax.xlane.f32.xlu1 %v1140_v18 }
 0x2bb   : > { %1147 = vmax.xlane.f32.xlu1 %v1146_v19 }
 0x332   : > { %v1133_v20 = vpop.xlane.xlu1 %1132 }
 0x333   : > { %v1151_v21 = vsub.f32 %v2668_v3, %v1133_v20 }
 0x334   : > { %v1127_v22 = vpop.xlane.xlu0 %1126 }
 0x335   : > { %v1149_v23 = vsub.f32 %v1093_v6, %v1127_v22  ;;  %v1161_v25 = vmul.f32 1.442695, %v1151_v21 }
 0x336   : > { %v1136_v24 = vpop.xlane.xlu1 %1135 }
 0x337   : > { %v1157_v26 = vmul.f32 1.442695, %v1149_v23  ;;  %v1152_v27 = vsub.f32 %v2669_v8, %v1136_v24 }
 0x338   : > { %v1130_v28 = vpop.xlane.xlu0 %1129 }
 0x339   : > { %2857 = vpow2.f32 %v1157_v26  ;;  %v1150_v29 = vsub.f32 %v1096_v10, %v1130_v28  ;;  %v1163_v30 = vmul.f32 1.442695, %v1152_v27 }
 0x33a   : > { %2859 = vpow2.f32 %v1161_v25 }
 0x33b   : > { %v1159_v31 = vmul.f32 1.442695, %v1150_v29 }
 0x33c   : > { %v1139_v33 = vpop.xlane.xlu0 %1138 }
 0x33d   : > { %2861 = vpow2.f32 %v1159_v31  ;;  %v1153_v36 = vsub.f32 %v1109_v13, %v1139_v33 }
 0x33e   : > { %2863 = vpow2.f32 %v1163_v30 }
 0x33f   : > { %v1165_v38 = vmul.f32 1.442695, %v1153_v36 }
 0x340   : > { %v1145_v39 = vpop.xlane.xlu0 %1144  ;;  %v1142_v40 = vpop.xlane.xlu1 %1141 }
 0x341   : > { %2865 = vpow2.f32 %v1165_v38  ;;  %v1155_v41 = vsub.f32 %v2672_v12, %v1145_v39  ;;  %v1154_v42 = vsub.f32 %v1112_v16, %v1142_v40 }
 0x343   : > { %v1169_v43 = vmul.f32 1.442695, %v1155_v41  ;;  %v1167_v44 = vmul.f32 1.442695, %v1154_v42  ;;  %v3217_v41 = vld [vmem:[%s3417_s13] sm:$0xff] }
 0x344   : > { %v1148_v45 = vpop.xlane.xlu1 %1147 }
 0x345   : > { %2867 = vpow2.f32 %v1169_v43  ;;  %v1156_v48 = vsub.f32 %v2673_v15, %v1148_v45 }
 0x346   : > { %v2858_v50 = vpop.eup %2857  ;;  %2869 = vpow2.f32 %v1167_v44 }
 0x347   : > { %v1171_v52 = vmul.f32 1.442695, %v1156_v48  ;;  %v1173_v53 = vsel %vm1124_vm4, %v2858_v50, 0.0  ;;  %v2860_v57 = vpop.eup %2859  ;;  %v777_v48 = vrot.slane %v3100_v5, 4 }
 0x348   : > { %1174 = vadd.xlane.f32.xlu0 %v1173_v53  ;;  %v1179_v59 = vsel %vm1124_vm4, %v2860_v57, 0.0 }
 0x349   : > { %2871 = vpow2.f32 %v1171_v52  ;;  %v3222_v52 = vpop.f32.mrf.mxu0 }
 0x34a   : > { %v2862_v58 = vpop.eup %2861 }
 0x34b   : > { %v1176_v60 = vsel %vm1124_vm4, %v2862_v58, 0.0  ;;  %v2864_v61 = vpop.eup %2863 }
 0x34c   : > { %1180 = vadd.xlane.f32.xlu0 %v1179_v59  ;;  %1177 = vadd.xlane.f32.xlu1 %v1176_v60  ;;  %v1182_v1 = vsel %vm1124_vm4, %v2864_v61, 0.0  ;;  %v1597_v59 = vpop.f32.mrf.mxu0 }
 0x34e   : > { %v2866_v62 = vpop.eup %2865 }
 0x34f   : > { %v1185_v63 = vsel %vm1124_vm4, %v2866_v62, 0.0 }
 0x350   : > { %1186 = vadd.xlane.f32.xlu0 %v1185_v63  ;;  %1183 = vadd.xlane.f32.xlu1 %v1182_v1 }
 0x352   : > { %v2868_v2 = vpop.eup %2867 }
 0x353   : > { %v2870_v3 = vpop.eup %2869  ;;  %v1191_v4 = vsel %vm1124_vm4, %v2868_v2, 0.0 }
 0x354   : > { %1192 = vadd.xlane.f32.xlu0 %v1191_v4  ;;  %v1188_v6 = vsel %vm1124_vm4, %v2870_v3, 0.0  ;;  %v1380_v4 = vld [vmem:[%s3416_s12 + $0x8] sm:$0xff] }
 0x355   : > { %1189 = vadd.xlane.f32.xlu1 %v1188_v6 }
 0x356   : > { %v2872_v7 = vpop.eup %2871 }
 0x357   : > { %v1194_v8 = vsel %vm1124_vm4, %v2872_v7, 0.0 }
 0x359   : > { %1195 = vadd.xlane.f32.xlu1 %v1194_v8  ;;  %v1379_v8 = vld [vmem:[%s3416_s12] sm:$0xff] }
 0x3d1   : > { %v1175_v9 = vpop.xlane.xlu0 %1174 }
 0x3d2   : > { %2873 = vrcp.f32 %v1175_v9  ;;  %v2852_v9 = vld [vmem:[%s3412_s8 + $0x8] sm:$0xff]  }
 0x3d5   : > { %v1181_v10 = vpop.xlane.xlu0 %1180  ;;  %v1178_v11 = vpop.xlane.xlu1 %1177 }
 0x3d6   : > { %2875 = vrcp.f32 %v1178_v11 }
 0x3d7   : > { %2877 = vrcp.f32 %v1181_v10 }
 0x3d9   : > { %v1187_v12 = vpop.xlane.xlu0 %1186  ;;  %v1184_v13 = vpop.xlane.xlu1 %1183 }
 0x3da   : > { %2879 = vrcp.f32 %v1184_v13 }
 0x3db   : > { %2881 = vrcp.f32 %v1187_v12  ;;  %v2853_v12 = vld [vmem:[%s3413_s9 + $0x8] sm:$0xff]  }
 0x3dd   : > { %v1193_v14 = vpop.xlane.xlu0 %1192 }
 0x3de   : > { %v1190_v15 = vpop.xlane.xlu1 %1189 }
 0x3df   : > { %2883 = vrcp.f32 %v1190_v15  ;;  %v2874_v16 = vpop.eup %2873 }
 0x3e0   : > { %2885 = vrcp.f32 %v1193_v14  ;;  %v1205_v19 = vmul.f32 %v2874_v16, %v2858_v50 }
 0x3e2   : > { %v1196_v17 = vpop.xlane.xlu1 %1195 }
 0x3e3   : > { %2887 = vrcp.f32 %v1196_v17  ;;  %v2876_v18 = vpop.eup %2875 }
 0x3e4   : > { %v1206_v20 = vmul.f32 %v2876_v18, %v2862_v58  ;;  %v2878_v21 = vpop.eup %2877 }
 0x3e5   : > { %v1207_v24 = vmul.f32 %v2878_v21, %v2860_v57  ;;  %v778_v57 = vadd.f32 %v777_v48, %v3100_v5 }
 0x3e6   : > { %v1213_v22 = vpack.c.bf16 %v1206_v20, %v1205_v19 }
 0x3e7   : > { %v2880_v23 = vpop.eup %2879  ;;  %v779_v60 = vrot.slane %v778_v57, 2 }
 0x3e8   : > { %v1208_v25 = vmul.f32 %v2880_v23, %v2864_v61  ;;  %2682 = vmatprep.mubr.msk.bf16.mxu1 %vm1124_vm4, %v1213_v22  ;;  %v2882_v26 = vpop.eup %2881 }
 0x3e9   : > { %v1209_v29 = vmul.f32 %v2882_v26, %v2866_v62  ;;  %v2731_v62 = vpop.f32.mrf.mxu0  ;;  %v780_v63 = vadd.f32 %v779_v60, %v778_v57 }
 0x3ea   : > { %v1214_v27 = vpack.c.bf16 %v1208_v25, %v1207_v24  ;;  %v1889_v17 = vpack.c.bf16 %v2731_v62, %v3222_v52 }
 0x3eb   : > { %v1600_v1 = vpop.f32.mrf.mxu0 }
 0x3ec   : > { %v2884_v28 = vpop.eup %2883  ;;  %2683 = vmatmul.mubr.msk.bf16.vlgmr.msra.gmra.mxu1 %vm1124_vm4, %v1214_v27  ;;  %v1888_v18 = vpack.c.bf16 %v1600_v1, %v1597_v59 }
 0x3ed   : > { %v1210_v30 = vmul.f32 %v2884_v28, %v2870_v3  ;;  %v2886_v31 = vpop.eup %2885  ;;  %v2734_v5 = vpop.f32.mrf.mxu0  ;;  %v3228_v3 = vld [vmem:[%s3417_s13 + $0x8] sm:$0xff] }
 0x3ee   : > { %v1211_v38 = vmul.f32 %v2886_v31, %v2868_v2  ;;  %v781_v2 = vrot.slane %v780_v63, 1 }
 0x3ef   : > { %v1215_v33 = vpack.c.bf16 %v1210_v30, %v1209_v29  ;;  %v1613_v10 = vpop.f32.mrf.mxu0  ;;  %v2463_v29 = vld [vmem:[%s3419_s15] ss:$0 sm:$0xff] }
 0x3f0   : > { %v2888_v36 = vpop.eup %2887  ;;  %v782_v6 = vadd.f32 %v781_v2, %v780_v63 }
 0x3f1   : > { %2686 = vmatprep.mubr.msk.bf16.mxu1 %vm1124_vm4, %v1215_v33  ;;  %v1212_v39 = vmul.f32 %v2888_v36, %v2872_v7  ;;  %v2929_v7 = vmov 0.0   ;;  %v2735_v13 = vpop.f32.mrf.mxu0 }
 0x3f2   : > { %v3245_v11 = vmul.f32 0.015625, %v782_v6  ;;  %v1891_v14 = vpack.c.bf16 %v2735_v13, %v2734_v5 }
 0x3f3   : > { %v1216_v40 = vpack.c.bf16 %v1212_v39, %v1211_v38  ;;  %v1616_v15 = vpop.f32.mrf.mxu0 }
 0x3f4   : > { %v1890_v16 = vpack.c.bf16 %v1616_v15, %v1613_v10 }
 0x3f5   : > { %2687 = vmatmul.mubr.msk.bf16.gmra.mxu1 %vm1124_vm4, %v1216_v40 }
 0x3f6   : > { %2706 = vmatprep.mubr.msk.f32.mxu1 %vm1124_vm4, %v3217_v41 }
 0x4ac   : > { %v2684_v42 = vpop.f32.mrf.mxu1 }
 0x4ae   : > { %v1267_v43 = vpop.f32.mrf.mxu1 }
 0x4b0   : > { %v2685_v44 = vpop.f32.mrf.mxu1 }
 0x4b2   : > { %v1270_v45 = vpop.f32.mrf.mxu1 }
 0x4b5   : > { %v2688_v50 = vpop.f32.mrf.mxu1 }
 0x4b7   : > { %v1283_v53 = vpop.f32.mrf.mxu1 }
 0x4b9   : > { %v2689_v58 = vpop.f32.mrf.mxu1 }
 0x4ba   : > { %2690 = vmatprep.subr.mxu1 %v2689_v58 }
 0x4bb   : > { %2691 = vmatpush3.msra.mxu1 %v2689_v58  ;;  %v1286_v61 = vpop.f32.mrf.mxu1 }
 0x4bc   : > { %2692 = vmatprep.subr.mxu1 %v2688_v50 }
 0x4bd   : > { %2693 = vmatpush3.msra.mxu1 %v2688_v50 }
 0x4be   : > { %2694 = vmatprep.subr.mxu1 %v1286_v61 }
 0x4bf   : > { %2695 = vmatpush3.msra.mxu1 %v1286_v61 }
 0x4c0   : > { %2696 = vmatprep.subr.mxu1 %v1283_v53 }
 0x4c1   : > { %2697 = vmatpush3.msra.mxu1 %v1283_v53 }
 0x4c2   : > { %2698 = vmatprep.subr.mxu1 %v2685_v44 }
 0x4c3   : > { %2699 = vmatpush3.msra.mxu1 %v2685_v44 }
 0x4c4   : > { %2700 = vmatprep.subr.mxu1 %v2684_v42 }
 0x4c5   : > { %2701 = vmatpush3.msra.mxu1 %v2684_v42 }
 0x4c6   : > { %2702 = vmatprep.subr.mxu1 %v1270_v45 }
 0x4c7   : > { %2703 = vmatpush3.msra.mxu1 %v1270_v45 }
 0x4c8   : > { %2704 = vmatprep.subr.mxu1 %v1267_v43 }
 0x4c9   : > { %2705 = vmatpush3.msra.mxu1 %v1267_v43 }
 0x4ca   : > { %2707 = vmatmul.mubr.msk.f32.vlgmr.msra.gmra.mxu1 %vm1124_vm4, %v3228_v3  ;;  %2709 = vmatprep.subr.mxu1 %v2929_v7 }
 0x4cb   : > { %2710 = vmatpush3.msra.mxu1 %v1380_v4  ;;  %2713 = vmatprep.mubr.msk.f32.mxu1 %vm2930_vm5, %v2929_v7 }
 0x4cc   : > { %2711 = vmatprep.subr.mxu1 %v2929_v7 }
 0x4cd   : > { %2712 = vmatpush3.msra.mxu1 %v1379_v8 }
 0x4ce   : > { %2714 = vmatmul.mubr.msk.f32.vlgmr.msra.gmra.mxu1 %vm761_vm2, %v3245_v11  ;;  %2716 = vmatprep.subr.bf16.mxu1 %v2852_v9 }
 0x4cf   : > { %2717 = vmatpush3.bf16.msra.mxu1 %v2852_v9  ;;  %2718 = vmatprep.mubr.msk.bf16.mxu1 %vm761_vm2, %v3067_v49 }
 0x4d0   : > { %2736 = vmatprep.subr.bf16.mxu1 %v2853_v12 }
 0x4d2   : > { %2719 = vmatmul.mubr.msk.bf16.vlgmr.msra.gmra.mxu1 %vm761_vm2, %v3070_v51 }
 0x4d3   : > { %2722 = vmatprep.mubr.msk.bf16.mxu1 %vm761_vm2, %v3072_v54  ;;  %2737 = vmatpush3.bf16.msra.mxu1 %v2853_v12 }
 0x4d4   : > { %2762 = vmatprep.subr.bf16.mxu1 %v1891_v14 }
 0x4da   : > { %2723 = vmatmul.mubr.msk.bf16.gmra.mxu1 %vm761_vm2, %v3090_v0 }
 0x4db   : > { %2738 = vmatprep.mubr.msk.bf16.mxu1 %vm761_vm2, %v3067_v49  ;;  %v1458_v49 = vlaneseq }
 0x4e2   : > { %2739 = vmatmul.mubr.msk.bf16.vlgmr.msra.gmra.mxu1 %vm761_vm2, %v3070_v51  ;;  %v3269_v51 = vshrl.u32 %v1458_v49, 7 }
 0x4e3   : > { %2763 = vmatpush3.bf16.msra.mxu1 %v1891_v14  ;;  %2742 = vmatprep.mubr.msk.bf16.mxu1 %vm761_vm2, %v3072_v54  ;;  %v1456_v54 = vld [vmem:[%s3418_s14] sm:$0x1] }
 0x4e4   : > { %2764 = vmatprep.subr.bf16.mxu1 %v1890_v16  ;;  %v1460_v25 = vsub.s32 0, %v3269_v51 }
 0x4e7   : > { %2765 = vmatpush3.bf16.msra.mxu1 %v1890_v16 }
 0x4e8   : > { %2766 = vmatprep.subr.bf16.mxu1 %v1889_v17 }
 0x4ea   : > { %2743 = vmatmul.mubr.msk.bf16.gmra.mxu1 %vm761_vm2, %v3090_v0 }
 0x4eb   : > { %2767 = vmatpush3.bf16.msra.mxu1 %v1889_v17 }
 0x4ec   : > { %2768 = vmatprep.subr.bf16.mxu1 %v1888_v18 }
 0x4ef   : > { %2769 = vmatpush3.bf16.msra.mxu1 %v1888_v18 }
 0x58a   : > { %v2708_v19 = vpop.f32.mrf.mxu1 }
 0x58c   : > { %v1370_v20 = vpop.f32.mrf.mxu1 }
 0x58e   : > { %v1450_v21 = vpop.f32.mrf.mxu1 }
 0x58f   : > { %v1454_v22 = vmul.f32 0.5, %v1450_v21 }
 0x590   : > { %v2715_v23 = vpop.f32.mrf.mxu1 }
 0x591   : > { %v1455_v24 = vadd.f32 0.5, %v1454_v22 }
 0x592   : > { %v2720_v26 = vpop.f32.mrf.mxu1 }
 0x593   : > { %v1457_v0 = vmul.f32 %v1456_v54, %v1455_v24 }
 0x594   : > { %v1520_v27 = vpop.f32.mrf.mxu1 }
 0x595   : > { %v1461_v28 = vrot.slane %v1457_v0, %v1460_v25 }
 0x596   : > { %v2721_v30 = vpop.f32.mrf.mxu1 }
 0x597   : > { %v1462_v31 = vmul.f32 %v1461_v28, %v1370_v20  ;;  %v1463_v33 = vmul.f32 %v2708_v19, %v1461_v28 }
 0x598   : > { %v1523_v36 = vpop.f32.mrf.mxu1 }
 0x599   : > { %v1471_v38 = vadd.f32 %v2463_v29, %v1462_v31  ;;  %v1472_v39 = vadd.f32 %v2463_v29, %v1463_v33  ;;  %v1628_v40 = vpack.c.bf16 %v1523_v36, %v1520_v27 }
 0x59a   : > { %v2724_v42 = vpop.f32.mrf.mxu1 }
 0x59b   : > { %v1473_v43 = vmax.f32 %v1471_v38, 0.0  ;;  %v1474_v44 = vmax.f32 %v1472_v39, 0.0  ;;  %2754 = vmatprep.mubr.msk.bf16.mxu0 %vm1034_vm3, %v1628_v40 }
 0x59c   : > { %v1536_v45 = vpop.f32.mrf.mxu1 }
 0x59d   : > { %v3281_v48 = vpack.c.bf16 %v1474_v44, %v1473_v43 }
 0x59e   : > { %v2725_v50 = vpop.f32.mrf.mxu1 }
 0x5a0   : > { %v1539_v52 = vpop.f32.mrf.mxu1 }
 0x5a1   : > { %v1630_v15 = vpack.c.bf16 %v1539_v52, %v1536_v45 }
 0x5a2   : > { %v2740_v53 = vpop.f32.mrf.mxu1 }
 0x5a4   : > { %v1672_v57 = vpop.f32.mrf.mxu1 }
 0x5a6   : > { %v2741_v58 = vpop.f32.mrf.mxu1 }
 0x5a7   : > { %v1684_v10 = vadd.f32 %v2741_v58, %v3148_v46 }
 0x5a8   : > { %v1675_v59 = vpop.f32.mrf.mxu1 }
 0x5aa   : > { %v2744_v60 = vpop.f32.mrf.mxu1 }
 0x5ab   : > { %v1697_v63 = vadd.f32 %v2744_v60, %v3122_v32  ;;  %v1681_v32 = vadd.f32 %v2740_v53, %v3154_v47  ;;  %v1629_v47 = vpack.c.bf16 %v2721_v30, %v2720_v26 }
 0x5ac   : > { %v1688_v61 = vpop.f32.mrf.mxu1 }
 0x5ad   : > { %v1689_v5 = vadd.f32 %v1688_v61, %v3132_v35  ;;  %v1704_v12 = vpack.c.bf16 %v1684_v10, %v1681_v32  ;;  %v1676_v35 = vadd.f32 %v1675_v59, %v3162_v55  ;;  %v1631_v55 = vpack.c.bf16 %v2725_v50, %v2724_v42 }
 0x5ae   : > { %v2745_v62 = vpop.f32.mrf.mxu1 }
 0x5af   : > { %v1700_v1 = vadd.f32 %v2745_v62, %v3127_v34  ;;  %v1723_v14 = vsel %vm1034_vm3, %v1704_v12, 0 }
 0x5b0   : > { %v1691_v2 = vpop.f32.mrf.mxu1 }
 0x5b1   : > { %v1706_v4 = vpack.c.bf16 %v1700_v1, %v1697_v63  ;;  %v1692_v6 = vadd.f32 %v1691_v2, %v3137_v37  ;;  %v1673_v37 = vadd.f32 %v1672_v57, %v3168_v56 }
 0x5b3   : > { %v1705_v8 = vpack.c.bf16 %v1692_v6, %v1689_v5  ;;  %2834 = vmatprep.subr.msk.bf16.mxu0 %vm1034_vm3, %v1706_v4  ;;  %v1729_v9 = vsel %vm1034_vm3, %v1706_v4, 0  ;;  %v1703_v13 = vpack.c.bf16 %v1676_v35, %v1673_v37 }
 0x5b4   : > { %2747 = vmatpush3.bf16.xpose.msra.mxu0 %v1729_v9 }
 0x5b5   : > { %2835 = vmatprep.subr.msk.bf16.mxu0 %vm1034_vm3, %v1705_v8  ;;  %v1726_v34 = vsel %vm1034_vm3, %v1705_v8, 0  ;;  %v1720_v46 = vsel %vm1034_vm3, %v1703_v13, 0 }
 0x5bc   : > { %2749 = vmatpush3.bf16.xpose.msra.mxu0 %v1726_v34 }
 0x5bd   : > { %2836 = vmatprep.subr.msk.bf16.mxu0 %vm1034_vm3, %v1704_v12 }
 0x5c4   : > { %2751 = vmatpush3.bf16.xpose.msra.mxu0 %v1723_v14 }
 0x5c5   : > { %2837 = vmatprep.subr.msk.bf16.mxu0 %vm1034_vm3, %v1703_v13 }
 0x5cc   : > { %2753 = vmatpush3.bf16.xpose.msra.mxu0 %v1720_v46 }
 0x5cd   : > { %2804 = vmatprep.subr.bf16.mxu0 %v2929_v7 }
 0x5d3   : > { %2755 = vmatmul.mubr.msk.bf16.vlgmr.msra.gmra.mxu0 %vm1034_vm3, %v1629_v47 }
 0x5d4   : > { %2758 = vmatprep.mubr.msk.bf16.mxu0 %vm1034_vm3, %v1630_v15 }
 0x5db   : > { %2759 = vmatmul.mubr.msk.bf16.gmra.mxu0 %vm1034_vm3, %v1631_v55 }
 0x5dc   : > { %2806 = vmatprep.mubr.msk.bf16.mxu0 %vm2930_vm5, %v2929_v7 }
 0x693   : > { %v2756_v56 = vpop.f32.mrf.mxu0 }
 0x694   : > { %v1802_v19 = vsel %vm1124_vm4, %v2756_v56, -inf }
 0x695   : > { %v1765_v16 = vpop.f32.mrf.mxu0 }
 0x696   : > { %v1796_v17 = vsel %vm1124_vm4, %v1765_v16, -inf }
 0x697   : > { %1797 = vmax.xlane.f32.xlu0 %v1796_v17  ;;  %v2757_v18 = vpop.f32.mrf.mxu0 }
 0x698   : > { %v1805_v54 = vsel %vm1124_vm4, %v2757_v18, -inf }
 0x699   : > { %v1768_v49 = vpop.f32.mrf.mxu0 }
 0x69a   : > { %v1799_v20 = vsel %vm1124_vm4, %v1768_v49, -inf }
 0x69b   : > { %1803 = vmax.xlane.f32.xlu0 %v1802_v19  ;;  %1800 = vmax.xlane.f32.xlu1 %v1799_v20  ;;  %v2760_v21 = vpop.f32.mrf.mxu0 }
 0x69c   : > { %v1814_v0 = vsel %vm1124_vm4, %v2760_v21, -inf }
 0x69d   : > { %v1781_v22 = vpop.f32.mrf.mxu0 }
 0x69e   : > { %v1808_v23 = vsel %vm1124_vm4, %v1781_v22, -inf }
 0x69f   : > { %1806 = vmax.xlane.f32.xlu1 %v1805_v54  ;;  %1809 = vmax.xlane.f32.xlu0 %v1808_v23  ;;  %v2761_v24 = vpop.f32.mrf.mxu0 }
 0x6a0   : > { %v1817_v28 = vsel %vm1124_vm4, %v2761_v24, -inf }
 0x6a1   : > { %v1784_v26 = vpop.f32.mrf.mxu0 }
 0x6a2   : > { %v1811_v27 = vsel %vm1124_vm4, %v1784_v26, -inf }
 0x6a3   : > { %1815 = vmax.xlane.f32.xlu0 %v1814_v0  ;;  %1812 = vmax.xlane.f32.xlu1 %v1811_v27 }
 0x6a7   : > { %1818 = vmax.xlane.f32.xlu1 %v1817_v28 }
 0x720   : > { %v1798_v29 = vpop.xlane.xlu0 %1797 }
 0x721   : > { %v1820_v30 = vsub.f32 %v1765_v16, %v1798_v29 }
 0x723   : > { %v1828_v31 = vmul.f32 1.442695, %v1820_v30 }
 0x724   : > { %v1804_v33 = vpop.xlane.xlu0 %1803  ;;  %v1801_v36 = vpop.xlane.xlu1 %1800 }
 0x725   : > { %2889 = vpow2.f32 %v1828_v31  ;;  %v1822_v38 = vsub.f32 %v2756_v56, %v1804_v33  ;;  %v1821_v39 = vsub.f32 %v1768_v49, %v1801_v36 }
 0x727   : > { %v1832_v40 = vmul.f32 1.442695, %v1822_v38  ;;  %v1830_v42 = vmul.f32 1.442695, %v1821_v39 }
 0x728   : > { %v1807_v43 = vpop.xlane.xlu1 %1806  ;;  %v1810_v44 = vpop.xlane.xlu0 %1809 }
 0x729   : > { %2891 = vpow2.f32 %v1832_v40  ;;  %v1823_v45 = vsub.f32 %v2757_v18, %v1807_v43  ;;  %v1824_v50 = vsub.f32 %v1781_v22, %v1810_v44 }
 0x72a   : > { %2893 = vpow2.f32 %v1830_v42 }
 0x72b   : > { %v1834_v52 = vmul.f32 1.442695, %v1823_v45  ;;  %v1836_v53 = vmul.f32 1.442695, %v1824_v50 }
 0x72c   : > { %v1816_v57 = vpop.xlane.xlu0 %1815  ;;  %v1813_v58 = vpop.xlane.xlu1 %1812 }
 0x72d   : > { %2895 = vpow2.f32 %v1834_v52  ;;  %v1826_v59 = vsub.f32 %v2760_v21, %v1816_v57  ;;  %v1825_v60 = vsub.f32 %v1784_v26, %v1813_v58 }
 0x72e   : > { %2897 = vpow2.f32 %v1836_v53 }
 0x72f   : > { %v1840_v61 = vmul.f32 1.442695, %v1826_v59  ;;  %v1838_v62 = vmul.f32 1.442695, %v1825_v60 }
 0x730   : > { %v1819_v63 = vpop.xlane.xlu1 %1818 }
 0x731   : > { %2899 = vpow2.f32 %v1840_v61  ;;  %v1827_v1 = vsub.f32 %v2761_v24, %v1819_v63  ;;  %v1476_v61 = vld [vmem:[%s3420_s16] sm:$0xf] }
 0x732   : > { %v2890_v2 = vpop.eup %2889  ;;  %2901 = vpow2.f32 %v1838_v62  ;;  %v2495_v62 = vld [vmem:[%s3416_s12 + $0x10] sm:$0xff]  ;;  %v2195_v63 = vsel %vm2146_vm6, %v1476_v61, 0 }
 0x733   : > { %v1842_v5 = vmul.f32 1.442695, %v1827_v1  ;;  %v1844_v4 = vsel %vm1124_vm4, %v2890_v2, 0.0 }
 0x734   : > { %1845 = vadd.xlane.f32.xlu0 %v1844_v4 }
 0x735   : > { %2903 = vpow2.f32 %v1842_v5 }
 0x736   : > { %v2892_v6 = vpop.eup %2891 }
 0x737   : > { %v2894_v8 = vpop.eup %2893  ;;  %v1850_v9 = vsel %vm1124_vm4, %v2892_v6, 0.0 }
 0x738   : > { %1851 = vadd.xlane.f32.xlu0 %v1850_v9  ;;  %v1847_v10 = vsel %vm1124_vm4, %v2894_v8, 0.0 }
 0x739   : > { %1848 = vadd.xlane.f32.xlu1 %v1847_v10 }
 0x73a   : > { %v2896_v32 = vpop.eup %2895 }
 0x73b   : > { %v2898_v12 = vpop.eup %2897  ;;  %v1853_v34 = vsel %vm1124_vm4, %v2896_v32, 0.0 }
 0x73c   : > { %v1856_v35 = vsel %vm1124_vm4, %v2898_v12, 0.0 }
 0x73d   : > { %1857 = vadd.xlane.f32.xlu0 %v1856_v35  ;;  %1854 = vadd.xlane.f32.xlu1 %v1853_v34  ;;  %v2500_v34 = vld [vmem:[%s3419_s15 + $0x1] ss:$0 sm:$0xff] }
 0x73e   : > { %v2900_v37 = vpop.eup %2899 }
 0x73f   : > { %v2902_v13 = vpop.eup %2901  ;;  %v1862_v14 = vsel %vm1124_vm4, %v2900_v37, 0.0 }
 0x740   : > { %v1859_v46 = vsel %vm1124_vm4, %v2902_v13, 0.0 }
 0x741   : > { %1863 = vadd.xlane.f32.xlu0 %v1862_v14  ;;  %1860 = vadd.xlane.f32.xlu1 %v1859_v46 }
 0x742   : > { %v2904_v47 = vpop.eup %2903 }
 0x743   : > { %v1865_v15 = vsel %vm1124_vm4, %v2904_v47, 0.0 }
 0x745   : > { %1866 = vadd.xlane.f32.xlu1 %v1865_v15  ;;  %v2854_v15 = vld [vmem:[%s3430_s20 + $0x10] ss:$0 sps:$4 sm:$0x33]  }
 0x746   : > { %v2284_v51 = vsel %vm650_vm0, %v2854_v15, 0 }
 0x7bd   : > { %v1846_v55 = vpop.xlane.xlu0 %1845 }
 0x7be   : > { %2905 = vrcp.f32 %v1846_v55 }
 0x7c1   : > { %v1852_v56 = vpop.xlane.xlu0 %1851 }
 0x7c2   : > { %v1849_v16 = vpop.xlane.xlu1 %1848 }
 0x7c3   : > { %2907 = vrcp.f32 %v1849_v16 }
 0x7c4   : > { %2909 = vrcp.f32 %v1852_v56 }
 0x7c6   : > { %v1858_v17 = vpop.xlane.xlu0 %1857  ;;  %v1855_v18 = vpop.xlane.xlu1 %1854 }
 0x7c7   : > { %2911 = vrcp.f32 %v1855_v18  ;;  %v2256_v18 = vld [vmem:[%s617_s25] sm:$0xff] }
 0x7c8   : > { %2913 = vrcp.f32 %v1858_v17  ;;  %v2856_v17 = vld [vmem:[%s3430_s20] sm:$0xff]  }
 0x7ca   : > { %v1864_v49 = vpop.xlane.xlu0 %1863  ;;  %v1861_v19 = vpop.xlane.xlu1 %1860 }
 0x7cb   : > { %2915 = vrcp.f32 %v1861_v19  ;;  %v2906_v20 = vpop.eup %2905 }
 0x7cc   : > { %2917 = vrcp.f32 %v1864_v49  ;;  %v1876_v54 = vmul.f32 %v2906_v20, %v2890_v2  ;;  %v2257_v49 = vld [vmem:[%s617_s25 + $0x8] sm:$0xff] }
 0x7cd   : > { %v2258_v19 = vpack.c.bf16 %v2257_v49, %v2256_v18 }
 0x7ce   : > { %v1867_v21 = vpop.xlane.xlu1 %1866 }
 0x7cf   : > { %2919 = vrcp.f32 %v1867_v21 }
 0x7d0   : > { %v2908_v22 = vpop.eup %2907 }
 0x7d1   : > { %v1877_v23 = vmul.f32 %v2908_v22, %v2894_v8  ;;  %v2910_v24 = vpop.eup %2909 }
 0x7d2   : > { %v1878_v27 = vmul.f32 %v2910_v24, %v2892_v6  ;;  %v2498_v6 = vld [vmem:[%s3418_s14 + $0x1] sm:$0x1]  ;;  %v2504_v24 = vld [vmem:[%s3421_s17] ss:$0 sm:$0xff] }
 0x7d3   : > { %v1884_v26 = vpack.c.bf16 %v1877_v23, %v1876_v54 }
 0x7d4   : > { %v2912_v0 = vpop.eup %2911 }
 0x7d5   : > { %2770 = vmatprep.mubr.msk.bf16.mxu1 %vm1124_vm4, %v1884_v26  ;;  %v1879_v28 = vmul.f32 %v2912_v0, %v2896_v32  ;;  %v2914_v29 = vpop.eup %2913  ;;  %v2510_v26 = vld [vmem:[%s3432_s22] ss:$0 sm:$0xff] }
 0x7d6   : > { %v1880_v36 = vmul.f32 %v2914_v29, %v2898_v12 }
 0x7d7   : > { %v1885_v30 = vpack.c.bf16 %v1879_v28, %v1878_v27 }
 0x7d8   : > { %v2916_v31 = vpop.eup %2915 }
 0x7d9   : > { %v2918_v33 = vpop.eup %2917  ;;  %2771 = vmatmul.mubr.msk.bf16.vlgmr.msra.gmra.mxu1 %vm1124_vm4, %v1885_v30  ;;  %v1881_v38 = vmul.f32 %v2916_v31, %v2902_v13  ;;  %v2505_v30 = vld [vmem:[%s3422_s18] ss:$0 sm:$0xff] }
 0x7da   : > { %v1882_v42 = vmul.f32 %v2918_v33, %v2900_v37 }
 0x7db   : > { %v1886_v40 = vpack.c.bf16 %v1881_v38, %v1880_v36 }
 0x7dc   : > { %v2920_v39 = vpop.eup %2919 }
 0x7dd   : > { %v1883_v43 = vmul.f32 %v2920_v39, %v2904_v47  ;;  %2774 = vmatprep.mubr.msk.bf16.mxu1 %vm1124_vm4, %v1886_v40 }
 0x7df   : > { %v1887_v44 = vpack.c.bf16 %v1883_v43, %v1882_v42 }
 0x7e1   : > { %2775 = vmatmul.mubr.msk.bf16.gmra.mxu1 %vm1124_vm4, %v1887_v44 }
 0x7e2   : > { %2794 = vmatprep.mubr.msk.f32.mxu1 %vm1124_vm4, %v3217_v41  ;;  %v2496_v41 = vld [vmem:[%s3416_s12 + $0x18] sm:$0xff] }
 0x899   : > { %v2772_v45 = vpop.f32.mrf.mxu1 }
 0x89b   : > { %v1938_v50 = vpop.f32.mrf.mxu1 }
 0x89d   : > { %v2773_v52 = vpop.f32.mrf.mxu1 }
 0x89f   : > { %v1941_v53 = vpop.f32.mrf.mxu1 }
 0x8a1   : > { %v2776_v57 = vpop.f32.mrf.mxu1 }
 0x8a3   : > { %v1954_v58 = vpop.f32.mrf.mxu1 }
 0x8a5   : > { %v2777_v59 = vpop.f32.mrf.mxu1 }
 0x8a6   : > { %2778 = vmatprep.subr.mxu1 %v2777_v59 }
 0x8a7   : > { %2779 = vmatpush3.msra.mxu1 %v2777_v59  ;;  %v1957_v60 = vpop.f32.mrf.mxu1 }
 0x8a8   : > { %2780 = vmatprep.subr.mxu1 %v2776_v57 }
 0x8a9   : > { %2781 = vmatpush3.msra.mxu1 %v2776_v57 }
 0x8aa   : > { %2782 = vmatprep.subr.mxu1 %v1957_v60 }
 0x8ab   : > { %2783 = vmatpush3.msra.mxu1 %v1957_v60 }
 0x8ac   : > { %2784 = vmatprep.subr.mxu1 %v1954_v58 }
 0x8ad   : > { %2785 = vmatpush3.msra.mxu1 %v1954_v58 }
 0x8ae   : > { %2786 = vmatprep.subr.mxu1 %v2773_v52 }
 0x8af   : > { %2787 = vmatpush3.msra.mxu1 %v2773_v52 }
 0x8b0   : > { %2788 = vmatprep.subr.mxu1 %v2772_v45 }
 0x8b1   : > { %2789 = vmatpush3.msra.mxu1 %v2772_v45 }
 0x8b2   : > { %2790 = vmatprep.subr.mxu1 %v1941_v53 }
 0x8b3   : > { %2791 = vmatpush3.msra.mxu1 %v1941_v53 }
 0x8b4   : > { %2792 = vmatprep.subr.mxu1 %v1938_v50 }
 0x8b5   : > { %2793 = vmatpush3.msra.mxu1 %v1938_v50 }
 0x8b6   : > { %2795 = vmatmul.mubr.msk.f32.vlgmr.msra.gmra.mxu1 %vm1124_vm4, %v3228_v3  ;;  %2797 = vmatprep.subr.mxu1 %v2929_v7  ;;  %v2501_v3 = vld [vmem:[%s3420_s16 + $0x4] sm:$0xf] }
 0x8b7   : > { %2798 = vmatpush3.msra.mxu1 %v2496_v41  ;;  %2801 = vmatprep.mubr.msk.f32.mxu1 %vm2930_vm5, %v2929_v7  ;;  %v2148_v1 = vsel %vm2146_vm6, %v2501_v3, 0 }
 0x8b8   : > { %2799 = vmatprep.subr.mxu1 %v2929_v7  ;;  %2805 = vmatpush3.bf16.msra.mxu0 %v2148_v1 }
 0x8b9   : > { %2800 = vmatpush3.msra.mxu1 %v2495_v62  ;;  %2816 = vmatprep.subr.bf16.mxu0 %v2929_v7 }
 0x8ba   : > { %2802 = vmatmul.mubr.msk.f32.vlgmr.msra.gmra.mxu1 %vm761_vm2, %v3245_v11  ;;  %2810 = vmatprep.subr.bf16.mxu1 %v2929_v7 }
 0x8bb   : > { %2811 = vmatpush3.bf16.msra.mxu1 %v2195_v63  ;;  %2812 = vmatprep.mubr.msk.bf16.mxu1 %vm2930_vm5, %v2929_v7 }
 0x8be   : > { %2813 = vmatmul.mubr.msk.bf16.vlgmr.msra.gmra.mxu1 %vm1034_vm3, %v3281_v48 }
 0x976   : > { %v2796_v2 = vpop.f32.mrf.mxu1 }
 0x978   : > { %v2035_v5 = vpop.f32.mrf.mxu1 }
 0x97a   : > { %v2113_v11 = vpop.f32.mrf.mxu1 }
 0x97b   : > { %v2117_v4 = vmul.f32 0.5, %v2113_v11 }
 0x97c   : > { %v2803_v8 = vpop.f32.mrf.mxu1 }
 0x97d   : > { %v2118_v9 = vadd.f32 0.5, %v2117_v4 }
 0x97e   : > { %v2231_v10 = vpop.f32.mrf.mxu1 }
 0x97f   : > { %v2121_v48 = vmul.f32 %v2498_v6, %v2118_v9 }
 0x980   : > { %v2814_v32 = vpop.f32.mrf.mxu1 }
 0x981   : > { %v2125_v12 = vrot.slane %v2121_v48, %v1460_v25  ;;  %v2855_v25 = vld [vmem:[%s3430_s20 + $0x8] sm:$0xff]  }
 0x982   : > { %v2234_v35 = vpop.f32.mrf.mxu1 }
 0x983   : > { %v2126_v37 = vmul.f32 %v2125_v12, %v2035_v5  ;;  %v2127_v13 = vmul.f32 %v2796_v2, %v2125_v12 }
 0x984   : > { %v2815_v14 = vpop.f32.mrf.mxu1 }
 0x985   : > { %v2136_v46 = vadd.f32 %v2500_v34, %v2126_v37  ;;  %v2137_v47 = vadd.f32 %v2500_v34, %v2127_v13 }
 0x987   : > { %v2138_v55 = vmax.f32 %v2136_v46, 0.0  ;;  %v2139_v56 = vmax.f32 %v2137_v47, 0.0 }
 0x989   : > { %v2140_v16 = vpack.c.bf16 %v2139_v56, %v2138_v55 }
 0x98b   : > { %2807 = vmatmul.mubr.msk.bf16.vlgmr.msra.gmra.mxu0 %vm1034_vm3, %v2140_v16 }
 0x98c   : > { %2817 = vmatpush3.bf16.msra.mxu0 %v2284_v51  ;;  %2822 = vmatprep.mubr.msk.bf16.mxu0 %vm2930_vm5, %v2929_v7 }
 0x98d   : > { %2818 = vmatprep.subr.bf16.mxu0 %v2929_v7 }
 0x990   : > { %2819 = vmatpush3.bf16.msra.mxu0 %v2855_v25 }
 0x991   : > { %2820 = vmatprep.subr.bf16.mxu0 %v2929_v7  ;;  %v2511_v7 = vld [vmem:[%s3408_s4] ss:$0 sm:$0xff] }
 0x994   : > { %2821 = vmatpush3.bf16.msra.mxu0 %v2856_v17 }
 0x997   : > { %2823 = vmatmul.mubr.msk.bf16.vlgmr.msra.gmra.mxu0 %vm2279_vm7, %v2258_v19 }
 0xa4b   : > { %v2184_v20 = vpop.f32.mrf.mxu0 }
 0xa4c   : > { %v2232_v23 = vadd.f32 %v2231_v10, %v2184_v20 }
 0xa4d   : > { %v2808_v21 = vpop.f32.mrf.mxu0 }
 0xa4e   : > { %v2245_v27 = vmul.f32 %v2504_v24, %v2232_v23 }
 0xa4f   : > { %v2187_v22 = vpop.f32.mrf.mxu0 }
 0xa50   : > { %v2235_v28 = vadd.f32 %v2234_v35, %v2187_v22  ;;  %v2254_v38 = vadd.f32 %v2505_v30, %v2245_v27 }
 0xa51   : > { %v2809_v54 = vpop.f32.mrf.mxu0 }
 0xa52   : > { %v2246_v39 = vmul.f32 %v2504_v24, %v2235_v28 }
 0xa54   : > { %v2255_v50 = vadd.f32 %v2505_v30, %v2246_v39 }
 0xa57   : > { %v2320_v0 = vpop.f32.mrf.mxu0 }
 0xa58   : > { %v2334_v29 = vmul.f32 %v2510_v26, %v2320_v0 }
 0xa59   : > { %v2824_v31 = vpop.f32.mrf.mxu0 }
 0xa5a   : > { %v2343_v33 = vadd.f32 %v2511_v7, %v2334_v29 }
 0xa5b   : > { %v2323_v36 = vpop.f32.mrf.mxu0 }
 0xa5c   : > { %v2345_v40 = vmax.f32 %v2343_v33, 0.0  ;;  %v2335_v42 = vmul.f32 %v2510_v26, %v2323_v36 }
 0xa5d   : > { %v2825_v43 = vpop.f32.mrf.mxu0 }
 0xa5e   : > { %v2347_v44 = vadd.f32 %v2345_v40, %v2254_v38  ;;  %v2344_v45 = vadd.f32 %v2511_v7, %v2335_v42 }
 0xa60   : > { %v2349_v52 = vmax.f32 %v2347_v44, 0.0  ;;  %v2346_v53 = vmax.f32 %v2344_v45, 0.0 }
 0xa62   : > { %2351 = vst.msk [vmem:[%s622_s27] sm:$0xff] %vm1124_vm4, %v2349_v52  ;;  %v2348_v57 = vadd.f32 %v2346_v53, %v2255_v50 }
 0xa64   : > { %v2350_v58 = vmax.f32 %v2348_v57, 0.0 }
 0xa66   : > { %2352 = vst.msk [vmem:[%s622_s27 + $0x8] sm:$0xff] %vm1124_vm4, %v2350_v58 }
 0xa67 PF: > { %s29_s0 = sadd.s32 1, %s2927_s0  }
 0xa68   : > { %p26_p4 = scmp.ge.s32.totalorder %s29_s0, 4  }
 0xa6a   :  { %28 = sbr.rel (!%p26_p4) target bundleno = 5 (0x5), region = 136 }

</bundles_post_ra>
